<compile_context>
chip_gen: v5e
topology: v5e:2x2
jax: 0.10.0
libtpu: 0.0.40
codegen_flags: <defaults>
</compile_context>

<pallas_src>
import math

import jax
import jax.numpy as jnp
from jax.experimental import pallas as pl
from jax.experimental.pallas import tpu as pltpu

VMEM = pltpu.MemorySpace.VMEM
MXU_DTYPE = jnp.bfloat16          # MXU operand dtype (f32 accumulation everywhere)
VMEM_LIMIT = 32 * 1024 * 1024     # explicit scoped-VMEM budget (safe on v5e/v6e/v7x)


def _replicated_spec(arr):
    # Full-array block, replicated across the grid.
    n = arr.ndim
    return pl.BlockSpec(arr.shape, lambda b, n=n: (0,) * n)


# --------------------------------------------------------------------------------------
# Kernel 1: fused bidirectional single-layer GRU recurrence (PyTorch nn.GRU gate equations)
#   r = sigmoid(W_ir x + b_ir + W_hr h + b_hr)
#   z = sigmoid(W_iz x + b_iz + W_hz h + b_hz)
#   n = tanh  (W_in x + b_in + r * (W_hn h + b_hn))
#   h = (1 - z) * n + z * h_prev        (computed as n + z * (h_prev - n))
# Both directions are interleaved in one body: two independent latency-bound chains fill
# each other's MXU pipeline bubbles on single-TensorCore chips (v5e / v6e).
# --------------------------------------------------------------------------------------
def gru_bidir_kernel(x_ref, wih_ref, whh_f_ref, whh_b_ref, bih_ref, bhh_ref,
                     out_ref, gates_ref):
    # x_ref:     (T*BN, Cin) f32      wih_ref:   (Cin, 6H) bf16  [fwd r|z|n , bwd r|z|n]
    # whh_f_ref: (H, 3H) bf16         whh_b_ref: (H, 3H) bf16
    # bih_ref:   (1, 6H) f32          bhh_ref:   (1, 6H) f32
    # out_ref:   (T, BN, 2H) f32  ([:H]=fwd, [H:]=bwd)
    # gates_ref: (T*BN, 6H) f32 VMEM scratch (hoisted input projection, both directions)
    T, BN, H2 = out_ref.shape
    H = H2 // 2
    H3 = 3 * H

    # Hoisted input projection for ALL timesteps and BOTH directions: one MXU matmul.
    gates_ref[...] = (
        jnp.dot(x_ref[...].astype(MXU_DTYPE), wih_ref[...],
                preferred_element_type=jnp.float32)
        + bih_ref[...]
    )

    whh_f = whh_f_ref[...]            # bf16, loaded once outside the recurrence
    whh_b = whh_b_ref[...]
    bhh = bhh_ref[...]
    bhh_f = bhh[:, :H3]
    bhh_b = bhh[:, H3:]

    def gate_update(gi, gh, h):
        # gi, gh: (BN, 3H).  One fused sigmoid over the contiguous (r|z) lanes.
        rz = jax.nn.sigmoid(gi[:, :2 * H] + gh[:, :2 * H])
        r = rz[:, :H]
        z = rz[:, H:]
        n = jnp.tanh(gi[:, 2 * H:] + r * gh[:, 2 * H:])   # b_hn stays inside r * (.)
        return n + z * (h - n)                            # == (1-z)*n + z*h

    def step(i, carry):
        h_f, h_b = carry
        tf = i                 # forward direction time index
        tb = T - 1 - i         # backward direction time index (no jnp.flip round trips)

        g_f = gates_ref[pl.ds(pl.multiple_of(tf * BN, BN), BN), :]
        g_b = gates_ref[pl.ds(pl.multiple_of(tb * BN, BN), BN), :]
        gi_f = g_f[:, :H3]
        gi_b = g_b[:, H3:]

        # Two independent MXU pushes per step -> they pipeline against the gate math.
        gh_f = jnp.dot(h_f.astype(MXU_DTYPE), whh_f,
                       preferred_element_type=jnp.float32) + bhh_f
        gh_b = jnp.dot(h_b.astype(MXU_DTYPE), whh_b,
                       preferred_element_type=jnp.float32) + bhh_b

        h_f = gate_update(gi_f, gh_f, h_f)
        h_b = gate_update(gi_b, gh_b, h_b)

        # Lane-dense output written directly (no wrapper concatenate).
        out_ref[tf, :, :H] = h_f
        out_ref[tb, :, H:] = h_b
        return (h_f, h_b)

    h0 = jnp.zeros((BN, H), jnp.float32)
    # T is small & static here; cap the unroll (e.g. unroll=4) once T grows beyond toy size.
    jax.lax.fori_loop(0, T, step, (h0, h0), unroll=True)


def gru_bidir_layer(x_tm, wih, whh_f, whh_b, bih, bhh):
    # x_tm: (T, BN, Cin) time-major f32 input.  Returns (T, BN, 2H), [fwd | bwd] on lanes.
    T, BN, Cin = x_tm.shape
    H = whh_f.shape[0]
    x2d = x_tm.reshape(T * BN, Cin)        # wrapper-side raw reshape (layout plumbing, free)
    return pl.pallas_call(
        gru_bidir_kernel,
        out_shape=jax.ShapeDtypeStruct((T, BN, 2 * H), jnp.float32),
        in_specs=[pl.BlockSpec(memory_space=VMEM)] * 6,
        out_specs=pl.BlockSpec(memory_space=VMEM),
        scratch_shapes=[pltpu.VMEM((T * BN, 6 * H), jnp.float32)],
        compiler_params=pltpu.CompilerParams(vmem_limit_bytes=VMEM_LIMIT),
    )(x2d, wih, whh_f, whh_b, bih, bhh)


# --------------------------------------------------------------------------------------
# Kernel 2: fused epilogue, gridded over the batch axis ("parallel").
#   att = softmax_T(tanh(x @ W + b)); pooled = sum_T(x * att); LayerNorm;
#   entity -> squad mean pool (exact {0,1} bf16 one-hot matmul + f32 1/count scale);
#   then either the int head (Linear+Sigmoid) or the attack-pair head.
# --------------------------------------------------------------------------------------
def _att_ln_squadpool(x, attw, attb, gamma, beta, pool1h, inv_counts):
    # x: (N, T, D) f32 (one batch element, rows = entities); softmax over axis 1 (time).
    N, T, D = x.shape
    # NOTE: these per-batch value reshapes are tiny here; at production sizes grid over N
    # tiles as well (or use a batched contraction) so no relayout copy is materialized.
    x2 = x.reshape(N * T, D)
    s = jnp.dot(x2.astype(MXU_DTYPE), attw, preferred_element_type=jnp.float32)
    s = jnp.tanh(s + attb).reshape(N, T, D)
    s = s - jnp.max(s, axis=1, keepdims=True)
    e = jnp.exp(s)
    att = e * pl.reciprocal(jnp.sum(e, axis=1, keepdims=True), approx=True)
    pooled = jnp.sum(x * att, axis=1)                          # (N, D)
    # LayerNorm over the feature dim, eps = 1e-5 (PyTorch default)
    mu = jnp.mean(pooled, axis=-1, keepdims=True)
    var = jnp.mean(jnp.square(pooled - mu), axis=-1, keepdims=True)
    normed = (pooled - mu) * jax.lax.rsqrt(var + 1e-5)
    normed = normed * gamma + beta
    # entity -> squad mean pool: exact {0,1} one-hot (bf16) matmul, f32 1/count scale.
    return jnp.dot(pool1h, normed.astype(MXU_DTYPE),
                   preferred_element_type=jnp.float32) * inv_counts       # (S, D)


def epilogue_int_kernel(x_ref, attw_ref, attb_ref, g_ref, b_ref, pool_ref, invc_ref,
                        w_ref, wb_ref, o_ref):
    xsq = _att_ln_squadpool(x_ref[...], attw_ref[...], attb_ref[...],
                            g_ref[...], b_ref[...], pool_ref[...], invc_ref[...])
    y = jnp.dot(xsq.astype(MXU_DTYPE), w_ref[...],
                preferred_element_type=jnp.float32) + wb_ref[...]
    o_ref[...] = jax.nn.sigmoid(y)


def epilogue_atk_kernel(x_ref, attw_ref, attb_ref, g_ref, b_ref, pool_ref, invc_ref,
                        sel_i_ref, sel_j_ref, w_ref, wb_ref, o_ref):
    xsq = _att_ln_squadpool(x_ref[...], attw_ref[...], attb_ref[...],
                            g_ref[...], b_ref[...], pool_ref[...], invc_ref[...])  # (S, D)
    xsq_b = xsq.astype(MXU_DTYPE)
    pair = (jnp.dot(sel_i_ref[...], xsq_b, preferred_element_type=jnp.float32)
            * jnp.dot(sel_j_ref[...], xsq_b, preferred_element_type=jnp.float32))  # (P, D)
    y = jnp.dot(pair.astype(MXU_DTYPE), w_ref[...],
                preferred_element_type=jnp.float32) + wb_ref[...]
    o_ref[...] = jax.nn.sigmoid(y)


# --------------------------------------------------------------------------------------
# Parameters & forward pass
# --------------------------------------------------------------------------------------
def init_gru_classifier_params(key, in_channels, hid_dim, out_channels, num_layers):
    H = hid_dim // 2
    keys = iter(jax.random.split(key, 64))

    def uni(shape, scale):
        return jax.random.uniform(next(keys), shape, jnp.float32, minval=-scale, maxval=scale)

    gru_layers = []
    for layer_idx in range(num_layers):
        cin = in_channels if layer_idx == 0 else hid_dim
        s = 1.0 / math.sqrt(H)
        gru_layers.append(dict(
            # weights pre-cast to bf16 on the host; gate columns ordered (r|z|n) per direction
            wih=uni((cin, 6 * H), s).astype(MXU_DTYPE),      # [fwd 3H | bwd 3H]
            whh_f=uni((H, 3 * H), s).astype(MXU_DTYPE),
            whh_b=uni((H, 3 * H), s).astype(MXU_DTYPE),
            bih=uni((1, 6 * H), s),                          # biases stay f32
            bhh=uni((1, 6 * H), s),
        ))

    s_lin = 1.0 / math.sqrt(hid_dim)
    return dict(
        hid_dim=hid_dim,
        gru=gru_layers,
        att_w=uni((hid_dim, hid_dim), s_lin).astype(MXU_DTYPE),
        att_b=uni((1, hid_dim), s_lin),
        ln_gamma=jnp.ones((1, hid_dim), jnp.float32),
        ln_beta=jnp.zeros((1, hid_dim), jnp.float32),
        int_w=uni((hid_dim, out_channels), s_lin).astype(MXU_DTYPE),
        int_b=uni((1, out_channels), s_lin),
        atk_w=uni((hid_dim, 1), s_lin).astype(MXU_DTYPE),
        atk_b=uni((1, 1), s_lin),
    )


def gru_classifier_forward(params, x, entity2squad_idx, squad2squad_idx, num_squads,
                           pred="y_int"):
    B, T, N, C = x.shape
    D = params["hid_dim"]
    S = num_squads

    # ---- GRU module ----
    # PyTorch does a *raw* reshape (B, T, N, C) -> (B*N, T, C); reproduce exactly (not a
    # (B,N,T,C) transpose).  This is the most likely silent-mismatch point; it matches.
    xr = x.reshape(B * N, T, C)
    h = jnp.transpose(xr, (1, 0, 2))                      # time-major (T, B*N, C)
    for layer in params["gru"]:
        h = gru_bidir_layer(h, layer["wih"], layer["whh_f"], layer["whh_b"],
                            layer["bih"], layer["bhh"])
    rnn_out = jnp.transpose(h, (1, 0, 2))                 # (B*N, T, D)

    x4 = rnn_out.reshape(B, T, N, D)                      # raw reshape back, matches torch
    # Attention/softmax is over time per (b, n): present a (B*N, T, D) slab, rows (b, n).
    x_att = jnp.transpose(x4, (0, 2, 1, 3)).reshape(B * N, T, D)

    # TODO(synk): entity2squad_pool is not defined in the reference source; implemented as a
    # per-batch segment mean-pool of entities into their squad (one-hot-sum matmul + 1/count).
    one_hot_t = jax.nn.one_hot(entity2squad_idx, S, dtype=jnp.float32).T       # (S, N)
    counts = jnp.maximum(jnp.sum(one_hot_t, axis=1, keepdims=True), 1.0)       # (S, 1)
    inv_counts = 1.0 / counts                                                   # f32, exact scale
    pool1h = one_hot_t.astype(MXU_DTYPE)                                        # exact {0,1}

    x_spec = pl.BlockSpec((N, T, D), lambda b: (b, 0, 0))
    common_args = (params["att_w"], params["att_b"], params["ln_gamma"], params["ln_beta"],
                   pool1h, inv_counts)
    common_specs = [_replicated_spec(a) for a in common_args]
    cparams = pltpu.CompilerParams(dimension_semantics=("parallel",),
                                   vmem_limit_bytes=VMEM_LIMIT)

    if pred == "y_int":
        O = params["int_w"].shape[-1]
        out = pl.pallas_call(
            epilogue_int_kernel,
            out_shape=jax.ShapeDtypeStruct((B, S, O), jnp.float32),
            grid=(B,),
            in_specs=[x_spec] + common_specs
                     + [_replicated_spec(params["int_w"]), _replicated_spec(params["int_b"])],
            out_specs=pl.BlockSpec((None, S, O), lambda b: (b, 0, 0)),
            compiler_params=cparams,
        )(x_att, *common_args, params["int_w"], params["int_b"])
        return out, None
    elif pred == "y_atk":
        P = squad2squad_idx.shape[1]
        sel_i = jax.nn.one_hot(squad2squad_idx[0], S, dtype=MXU_DTYPE)          # (P, S) exact
        sel_j = jax.nn.one_hot(squad2squad_idx[1], S, dtype=MXU_DTYPE)
        out = pl.pallas_call(
            epilogue_atk_kernel,
            out_shape=jax.ShapeDtypeStruct((B, P, 1), jnp.float32),
            grid=(B,),
            in_specs=[x_spec] + common_specs
                     + [_replicated_spec(sel_i), _replicated_spec(sel_j),
                        _replicated_spec(params["atk_w"]), _replicated_spec(params["atk_b"])],
            out_specs=pl.BlockSpec((None, P, 1), lambda b: (b, 0, 0)),
            compiler_params=cparams,
        )(x_att, *common_args, sel_i, sel_j, params["atk_w"], params["atk_b"])
        # jit-safe: use num_squads instead of int(squad2squad_idx.max()) + 1
        return None, out.reshape(B, S, S)
    else:
        raise ValueError(pred)


if __name__ == "__main__":
    B, T, N, C = 2, 8, 8, 16
    hid_dim, out_channels, num_layers, num_squads = 32, 4, 1, 4

    key = jax.random.PRNGKey(0)
    kx, kp = jax.random.split(key)
    x = jax.random.normal(kx, (B, T, N, C), jnp.float32)
    entity2squad_idx = jnp.array([0, 0, 1, 1, 2, 2, 3, 3], dtype=jnp.int32)
    ii, jj = jnp.meshgrid(jnp.arange(num_squads), jnp.arange(num_squads), indexing="ij")
    squad2squad_idx = jnp.stack([ii.reshape(-1), jj.reshape(-1)], axis=0).astype(jnp.int32)

    params = init_gru_classifier_params(kp, C, hid_dim, out_channels, num_layers)

    int_prob, atk_prob = gru_classifier_forward(
        params, x, entity2squad_idx, squad2squad_idx, num_squads, pred="y_int"
    )
    jax.block_until_ready(int_prob)
    assert int_prob.shape == (B, num_squads, out_channels)
    assert atk_prob is None

    _, atk_prob = gru_classifier_forward(
        params, x, entity2squad_idx, squad2squad_idx, num_squads, pred="y_atk"
    )
    jax.block_until_ready(atk_prob)
    assert atk_prob.shape == (B, num_squads, num_squads)

    print("KERNEL_OK")
</pallas_src>

<mosaic_0001>
module attributes {stable_mosaic.version = 11 : i64} {
  func.func @gru_bidir_kernel(%arg0: memref<128x16xf32, #tpu.memory_space<vmem>>, %arg1: memref<16x96xbf16, #tpu.memory_space<vmem>>, %arg2: memref<16x48xbf16, #tpu.memory_space<vmem>>, %arg3: memref<16x48xbf16, #tpu.memory_space<vmem>>, %arg4: memref<1x96xf32, #tpu.memory_space<vmem>>, %arg5: memref<1x96xf32, #tpu.memory_space<vmem>>, %arg6: memref<8x16x32xf32, #tpu.memory_space<vmem>>, %arg7: memref<128x96xf32, #tpu.memory_space<vmem>>) attributes {dimension_semantics = [], scalar_prefetch = 0 : i64, scratch_operands = 1 : i64, tpu.core_type = #tpu.core_type<tc>} {
    %c0 = arith.constant 0 : index
    %c0_0 = arith.constant 0 : index
    %0 = vector.load %arg0[%c0, %c0_0] : memref<128x16xf32, #tpu.memory_space<vmem>>, vector<128x16xf32>
    %1 = arith.truncf %0 : vector<128x16xf32> to vector<128x16xbf16>
    %c0_1 = arith.constant 0 : index
    %c0_2 = arith.constant 0 : index
    %2 = vector.load %arg1[%c0_1, %c0_2] : memref<16x96xbf16, #tpu.memory_space<vmem>>, vector<16x96xbf16>
    %cst = arith.constant dense<0.000000e+00> : vector<128x96xf32>
    %3 = tpu.matmul %1, %2, %cst {dimension_numbers = #tpu.dot_dimension_numbers<[1], [0], [0], [1], [0, 0, 1, 1], [], []>} : vector<128x16xbf16>, vector<16x96xbf16>, vector<128x96xf32> -> vector<128x96xf32>
    %c0_3 = arith.constant 0 : index
    %c0_4 = arith.constant 0 : index
    %4 = vector.load %arg4[%c0_3, %c0_4] : memref<1x96xf32, #tpu.memory_space<vmem>>, vector<1x96xf32>
    %5 = vector.broadcast %4 : vector<1x96xf32> to vector<128x96xf32>
    %6 = arith.addf %3, %5 : vector<128x96xf32>
    %c0_5 = arith.constant 0 : index
    %c0_6 = arith.constant 0 : index
    %7 = vector.load %arg7[%c0_5, %c0_6] : memref<128x96xf32, #tpu.memory_space<vmem>>, vector<128x96xf32>
    tpu.vector_store %arg7[%c0_5, %c0_6], %6 {strides = array<i32>} : memref<128x96xf32, #tpu.memory_space<vmem>>, vector<128x96xf32>,
    %c0_7 = arith.constant 0 : index
    %c0_8 = arith.constant 0 : index
    %8 = vector.load %arg2[%c0_7, %c0_8] : memref<16x48xbf16, #tpu.memory_space<vmem>>, vector<16x48xbf16>
    %c0_9 = arith.constant 0 : index
    %c0_10 = arith.constant 0 : index
    %9 = vector.load %arg3[%c0_9, %c0_10] : memref<16x48xbf16, #tpu.memory_space<vmem>>, vector<16x48xbf16>
    %c0_11 = arith.constant 0 : index
    %c0_12 = arith.constant 0 : index
    %10 = vector.load %arg5[%c0_11, %c0_12] : memref<1x96xf32, #tpu.memory_space<vmem>>, vector<1x96xf32>
    %11 = vector.extract_strided_slice %10 {offsets = [0, 0], sizes = [1, 48], strides = [1, 1]} : vector<1x96xf32> to vector<1x48xf32>
    %12 = vector.extract_strided_slice %10 {offsets = [0, 48], sizes = [1, 48], strides = [1, 1]} : vector<1x96xf32> to vector<1x48xf32>
    %cst_13 = arith.constant 0.000000e+00 : f32
    %13 = vector.broadcast %cst_13 : f32 to vector<16x16xf32>
    %c0_i32 = arith.constant 0 : i32
    %c7_i32 = arith.constant 7 : i32
    %14 = arith.subi %c7_i32, %c0_i32 : i32
    %c16_i32 = arith.constant 16 : i32
    %15 = arith.muli %c0_i32, %c16_i32 : i32
    %16 = tpu.assume_multiple %15, 16 : i32
    %17 = arith.index_cast %16 : i32 to index
    %c0_14 = arith.constant 0 : index
    %18 = vector.load %arg7[%17, %c0_14] : memref<128x96xf32, #tpu.memory_space<vmem>>, vector<16x96xf32>
    %c16_i32_15 = arith.constant 16 : i32
    %19 = arith.muli %14, %c16_i32_15 : i32
    %20 = tpu.assume_multiple %19, 16 : i32
    %21 = arith.index_cast %20 : i32 to index
    %c0_16 = arith.constant 0 : index
    %22 = vector.load %arg7[%21, %c0_16] : memref<128x96xf32, #tpu.memory_space<vmem>>, vector<16x96xf32>
    %23 = vector.extract_strided_slice %18 {offsets = [0, 0], sizes = [16, 48], strides = [1, 1]} : vector<16x96xf32> to vector<16x48xf32>
    %24 = vector.extract_strided_slice %22 {offsets = [0, 48], sizes = [16, 48], strides = [1, 1]} : vector<16x96xf32> to vector<16x48xf32>
    %25 = arith.truncf %13 : vector<16x16xf32> to vector<16x16xbf16>
    %cst_17 = arith.constant dense<0.000000e+00> : vector<16x48xf32>
    %26 = tpu.matmul %25, %8, %cst_17 {dimension_numbers = #tpu.dot_dimension_numbers<[1], [0], [0], [1], [0, 0, 1, 1], [], []>} : vector<16x16xbf16>, vector<16x48xbf16>, vector<16x48xf32> -> vector<16x48xf32>
    %27 = vector.broadcast %11 : vector<1x48xf32> to vector<16x48xf32>
    %28 = arith.addf %26, %27 : vector<16x48xf32>
    %29 = arith.truncf %13 : vector<16x16xf32> to vector<16x16xbf16>
    %cst_18 = arith.constant dense<0.000000e+00> : vector<16x48xf32>
    %30 = tpu.matmul %29, %9, %cst_18 {dimension_numbers = #tpu.dot_dimension_numbers<[1], [0], [0], [1], [0, 0, 1, 1], [], []>} : vector<16x16xbf16>, vector<16x48xbf16>, vector<16x48xf32> -> vector<16x48xf32>
    %31 = vector.broadcast %12 : vector<1x48xf32> to vector<16x48xf32>
    %32 = arith.addf %30, %31 : vector<16x48xf32>
    %33 = vector.extract_strided_slice %23 {offsets = [0, 0], sizes = [16, 32], strides = [1, 1]} : vector<16x48xf32> to vector<16x32xf32>
    %34 = vector.extract_strided_slice %28 {offsets = [0, 0], sizes = [16, 32], strides = [1, 1]} : vector<16x48xf32> to vector<16x32xf32>
    %35 = arith.addf %33, %34 : vector<16x32xf32>
    %36 = arith.negf %35 : vector<16x32xf32>
    %37 = math.exp %36 : vector<16x32xf32>
    %cst_19 = arith.constant 1.000000e+00 : f32
    %38 = vector.broadcast %cst_19 : f32 to vector<16x32xf32>
    %39 = arith.addf %38, %37 : vector<16x32xf32>
    %40 = arith.divf %38, %39 : vector<16x32xf32>
    %41 = vector.extract_strided_slice %40 {offsets = [0, 0], sizes = [16, 16], strides = [1, 1]} : vector<16x32xf32> to vector<16x16xf32>
    %42 = vector.extract_strided_slice %40 {offsets = [0, 16], sizes = [16, 16], strides = [1, 1]} : vector<16x32xf32> to vector<16x16xf32>
    %43 = vector.extract_strided_slice %23 {offsets = [0, 32], sizes = [16, 16], strides = [1, 1]} : vector<16x48xf32> to vector<16x16xf32>
    %44 = vector.extract_strided_slice %28 {offsets = [0, 32], sizes = [16, 16], strides = [1, 1]} : vector<16x48xf32> to vector<16x16xf32>
    %45 = arith.mulf %41, %44 : vector<16x16xf32>
    %46 = arith.addf %43, %45 : vector<16x16xf32>
    %47 = math.tanh %46 : vector<16x16xf32>
    %48 = arith.subf %13, %47 : vector<16x16xf32>
    %49 = arith.mulf %42, %48 : vector<16x16xf32>
    %50 = arith.addf %47, %49 : vector<16x16xf32>
    %51 = vector.extract_strided_slice %24 {offsets = [0, 0], sizes = [16, 32], strides = [1, 1]} : vector<16x48xf32> to vector<16x32xf32>
    %52 = vector.extract_strided_slice %32 {offsets = [0, 0], sizes = [16, 32], strides = [1, 1]} : vector<16x48xf32> to vector<16x32xf32>
    %53 = arith.addf %51, %52 : vector<16x32xf32>
    %54 = arith.negf %53 : vector<16x32xf32>
    %55 = math.exp %54 : vector<16x32xf32>
    %cst_20 = arith.constant 1.000000e+00 : f32
    %56 = vector.broadcast %cst_20 : f32 to vector<16x32xf32>
    %57 = arith.addf %56, %55 : vector<16x32xf32>
    %58 = arith.divf %56, %57 : vector<16x32xf32>
    %59 = vector.extract_strided_slice %58 {offsets = [0, 0], sizes = [16, 16], strides = [1, 1]} : vector<16x32xf32> to vector<16x16xf32>
    %60 = vector.extract_strided_slice %58 {offsets = [0, 16], sizes = [16, 16], strides = [1, 1]} : vector<16x32xf32> to vector<16x16xf32>
    %61 = vector.extract_strided_slice %24 {offsets = [0, 32], sizes = [16, 16], strides = [1, 1]} : vector<16x48xf32> to vector<16x16xf32>
    %62 = vector.extract_strided_slice %32 {offsets = [0, 32], sizes = [16, 16], strides = [1, 1]} : vector<16x48xf32> to vector<16x16xf32>
    %63 = arith.mulf %59, %62 : vector<16x16xf32>
    %64 = arith.addf %61, %63 : vector<16x16xf32>
    %65 = math.tanh %64 : vector<16x16xf32>
    %66 = arith.subf %13, %65 : vector<16x16xf32>
    %67 = arith.mulf %60, %66 : vector<16x16xf32>
    %68 = arith.addf %65, %67 : vector<16x16xf32>
    %69 = arith.index_cast %c0_i32 : i32 to index
    %c0_21 = arith.constant 0 : index
    %c0_22 = arith.constant 0 : index
    %70 = vector.load %arg6[%69, %c0_21, %c0_22] : memref<8x16x32xf32, #tpu.memory_space<vmem>>, vector<1x16x16xf32>
    %71 = vector.shape_cast %70 : vector<1x16x16xf32> to vector<16x16xf32>
    %72 = vector.shape_cast %50 : vector<16x16xf32> to vector<1x16x16xf32>
    tpu.vector_store %arg6[%69, %c0_21, %c0_22], %72 {strides = array<i32>} : memref<8x16x32xf32, #tpu.memory_space<vmem>>, vector<1x16x16xf32>,
    %73 = arith.index_cast %14 : i32 to index
    %c0_23 = arith.constant 0 : index
    %c16 = arith.constant 16 : index
    %74 = vector.load %arg6[%73, %c0_23, %c16] : memref<8x16x32xf32, #tpu.memory_space<vmem>>, vector<1x16x16xf32>
    %75 = vector.shape_cast %74 : vector<1x16x16xf32> to vector<16x16xf32>
    %76 = vector.shape_cast %68 : vector<16x16xf32> to vector<1x16x16xf32>
    tpu.vector_store %arg6[%73, %c0_23, %c16], %76 {strides = array<i32>} : memref<8x16x32xf32, #tpu.memory_space<vmem>>, vector<1x16x16xf32>,
    %c1_i32 = arith.constant 1 : i32
    %c7_i32_24 = arith.constant 7 : i32
    %77 = arith.subi %c7_i32_24, %c1_i32 : i32
    %c16_i32_25 = arith.constant 16 : i32
    %78 = arith.muli %c1_i32, %c16_i32_25 : i32
    %79 = tpu.assume_multiple %78, 16 : i32
    %80 = arith.index_cast %79 : i32 to index
    %c0_26 = arith.constant 0 : index
    %81 = vector.load %arg7[%80, %c0_26] : memref<128x96xf32, #tpu.memory_space<vmem>>, vector<16x96xf32>
    %c16_i32_27 = arith.constant 16 : i32
    %82 = arith.muli %77, %c16_i32_27 : i32
    %83 = tpu.assume_multiple %82, 16 : i32
    %84 = arith.index_cast %83 : i32 to index
    %c0_28 = arith.constant 0 : index
    %85 = vector.load %arg7[%84, %c0_28] : memref<128x96xf32, #tpu.memory_space<vmem>>, vector<16x96xf32>
    %86 = vector.extract_strided_slice %81 {offsets = [0, 0], sizes = [16, 48], strides = [1, 1]} : vector<16x96xf32> to vector<16x48xf32>
    %87 = vector.extract_strided_slice %85 {offsets = [0, 48], sizes = [16, 48], strides = [1, 1]} : vector<16x96xf32> to vector<16x48xf32>
    %88 = arith.truncf %50 : vector<16x16xf32> to vector<16x16xbf16>
    %cst_29 = arith.constant dense<0.000000e+00> : vector<16x48xf32>
    %89 = tpu.matmul %88, %8, %cst_29 {dimension_numbers = #tpu.dot_dimension_numbers<[1], [0], [0], [1], [0, 0, 1, 1], [], []>} : vector<16x16xbf16>, vector<16x48xbf16>, vector<16x48xf32> -> vector<16x48xf32>
    %90 = vector.broadcast %11 : vector<1x48xf32> to vector<16x48xf32>
    %91 = arith.addf %89, %90 : vector<16x48xf32>
    %92 = arith.truncf %68 : vector<16x16xf32> to vector<16x16xbf16>
    %cst_30 = arith.constant dense<0.000000e+00> : vector<16x48xf32>
    %93 = tpu.matmul %92, %9, %cst_30 {dimension_numbers = #tpu.dot_dimension_numbers<[1], [0], [0], [1], [0, 0, 1, 1], [], []>} : vector<16x16xbf16>, vector<16x48xbf16>, vector<16x48xf32> -> vector<16x48xf32>
    %94 = vector.broadcast %12 : vector<1x48xf32> to vector<16x48xf32>
    %95 = arith.addf %93, %94 : vector<16x48xf32>
    %96 = vector.extract_strided_slice %86 {offsets = [0, 0], sizes = [16, 32], strides = [1, 1]} : vector<16x48xf32> to vector<16x32xf32>
    %97 = vector.extract_strided_slice %91 {offsets = [0, 0], sizes = [16, 32], strides = [1, 1]} : vector<16x48xf32> to vector<16x32xf32>
    %98 = arith.addf %96, %97 : vector<16x32xf32>
    %99 = arith.negf %98 : vector<16x32xf32>
    %100 = math.exp %99 : vector<16x32xf32>
    %cst_31 = arith.constant 1.000000e+00 : f32
    %101 = vector.broadcast %cst_31 : f32 to vector<16x32xf32>
    %102 = arith.addf %101, %100 : vector<16x32xf32>
    %103 = arith.divf %101, %102 : vector<16x32xf32>
    %104 = vector.extract_strided_slice %103 {offsets = [0, 0], sizes = [16, 16], strides = [1, 1]} : vector<16x32xf32> to vector<16x16xf32>
    %105 = vector.extract_strided_slice %103 {offsets = [0, 16], sizes = [16, 16], strides = [1, 1]} : vector<16x32xf32> to vector<16x16xf32>
    %106 = vector.extract_strided_slice %86 {offsets = [0, 32], sizes = [16, 16], strides = [1, 1]} : vector<16x48xf32> to vector<16x16xf32>
    %107 = vector.extract_strided_slice %91 {offsets = [0, 32], sizes = [16, 16], strides = [1, 1]} : vector<16x48xf32> to vector<16x16xf32>
    %108 = arith.mulf %104, %107 : vector<16x16xf32>
    %109 = arith.addf %106, %108 : vector<16x16xf32>
    %110 = math.tanh %109 : vector<16x16xf32>
    %111 = arith.subf %50, %110 : vector<16x16xf32>
    %112 = arith.mulf %105, %111 : vector<16x16xf32>
    %113 = arith.addf %110, %112 : vector<16x16xf32>
    %114 = vector.extract_strided_slice %87 {offsets = [0, 0], sizes = [16, 32], strides = [1, 1]} : vector<16x48xf32> to vector<16x32xf32>
    %115 = vector.extract_strided_slice %95 {offsets = [0, 0], sizes = [16, 32], strides = [1, 1]} : vector<16x48xf32> to vector<16x32xf32>
    %116 = arith.addf %114, %115 : vector<16x32xf32>
    %117 = arith.negf %116 : vector<16x32xf32>
    %118 = math.exp %117 : vector<16x32xf32>
    %cst_32 = arith.constant 1.000000e+00 : f32
    %119 = vector.broadcast %cst_32 : f32 to vector<16x32xf32>
    %120 = arith.addf %119, %118 : vector<16x32xf32>
    %121 = arith.divf %119, %120 : vector<16x32xf32>
    %122 = vector.extract_strided_slice %121 {offsets = [0, 0], sizes = [16, 16], strides = [1, 1]} : vector<16x32xf32> to vector<16x16xf32>
    %123 = vector.extract_strided_slice %121 {offsets = [0, 16], sizes = [16, 16], strides = [1, 1]} : vector<16x32xf32> to vector<16x16xf32>
    %124 = vector.extract_strided_slice %87 {offsets = [0, 32], sizes = [16, 16], strides = [1, 1]} : vector<16x48xf32> to vector<16x16xf32>
    %125 = vector.extract_strided_slice %95 {offsets = [0, 32], sizes = [16, 16], strides = [1, 1]} : vector<16x48xf32> to vector<16x16xf32>
    %126 = arith.mulf %122, %125 : vector<16x16xf32>
    %127 = arith.addf %124, %126 : vector<16x16xf32>
    %128 = math.tanh %127 : vector<16x16xf32>
    %129 = arith.subf %68, %128 : vector<16x16xf32>
    %130 = arith.mulf %123, %129 : vector<16x16xf32>
    %131 = arith.addf %128, %130 : vector<16x16xf32>
    %132 = arith.index_cast %c1_i32 : i32 to index
    %c0_33 = arith.constant 0 : index
    %c0_34 = arith.constant 0 : index
    %133 = vector.load %arg6[%132, %c0_33, %c0_34] : memref<8x16x32xf32, #tpu.memory_space<vmem>>, vector<1x16x16xf32>
    %134 = vector.shape_cast %133 : vector<1x16x16xf32> to vector<16x16xf32>
    %135 = vector.shape_cast %113 : vector<16x16xf32> to vector<1x16x16xf32>
    tpu.vector_store %arg6[%132, %c0_33, %c0_34], %135 {strides = array<i32>} : memref<8x16x32xf32, #tpu.memory_space<vmem>>, vector<1x16x16xf32>,
    %136 = arith.index_cast %77 : i32 to index
    %c0_35 = arith.constant 0 : index
    %c16_36 = arith.constant 16 : index
    %137 = vector.load %arg6[%136, %c0_35, %c16_36] : memref<8x16x32xf32, #tpu.memory_space<vmem>>, vector<1x16x16xf32>
    %138 = vector.shape_cast %137 : vector<1x16x16xf32> to vector<16x16xf32>
    %139 = vector.shape_cast %131 : vector<16x16xf32> to vector<1x16x16xf32>
    tpu.vector_store %arg6[%136, %c0_35, %c16_36], %139 {strides = array<i32>} : memref<8x16x32xf32, #tpu.memory_space<vmem>>, vector<1x16x16xf32>,
    %c2_i32 = arith.constant 2 : i32
    %c7_i32_37 = arith.constant 7 : i32
    %140 = arith.subi %c7_i32_37, %c2_i32 : i32
    %c16_i32_38 = arith.constant 16 : i32
    %141 = arith.muli %c2_i32, %c16_i32_38 : i32
    %142 = tpu.assume_multiple %141, 16 : i32
    %143 = arith.index_cast %142 : i32 to index
    %c0_39 = arith.constant 0 : index
    %144 = vector.load %arg7[%143, %c0_39] : memref<128x96xf32, #tpu.memory_space<vmem>>, vector<16x96xf32>
    %c16_i32_40 = arith.constant 16 : i32
    %145 = arith.muli %140, %c16_i32_40 : i32
    %146 = tpu.assume_multiple %145, 16 : i32
    %147 = arith.index_cast %146 : i32 to index
    %c0_41 = arith.constant 0 : index
    %148 = vector.load %arg7[%147, %c0_41] : memref<128x96xf32, #tpu.memory_space<vmem>>, vector<16x96xf32>
    %149 = vector.extract_strided_slice %144 {offsets = [0, 0], sizes = [16, 48], strides = [1, 1]} : vector<16x96xf32> to vector<16x48xf32>
    %150 = vector.extract_strided_slice %148 {offsets = [0, 48], sizes = [16, 48], strides = [1, 1]} : vector<16x96xf32> to vector<16x48xf32>
    %151 = arith.truncf %113 : vector<16x16xf32> to vector<16x16xbf16>
    %cst_42 = arith.constant dense<0.000000e+00> : vector<16x48xf32>
    %152 = tpu.matmul %151, %8, %cst_42 {dimension_numbers = #tpu.dot_dimension_numbers<[1], [0], [0], [1], [0, 0, 1, 1], [], []>} : vector<16x16xbf16>, vector<16x48xbf16>, vector<16x48xf32> -> vector<16x48xf32>
    %153 = vector.broadcast %11 : vector<1x48xf32> to vector<16x48xf32>
    %154 = arith.addf %152, %153 : vector<16x48xf32>
    %155 = arith.truncf %131 : vector<16x16xf32> to vector<16x16xbf16>
    %cst_43 = arith.constant dense<0.000000e+00> : vector<16x48xf32>
    %156 = tpu.matmul %155, %9, %cst_43 {dimension_numbers = #tpu.dot_dimension_numbers<[1], [0], [0], [1], [0, 0, 1, 1], [], []>} : vector<16x16xbf16>, vector<16x48xbf16>, vector<16x48xf32> -> vector<16x48xf32>
    %157 = vector.broadcast %12 : vector<1x48xf32> to vector<16x48xf32>
    %158 = arith.addf %156, %157 : vector<16x48xf32>
    %159 = vector.extract_strided_slice %149 {offsets = [0, 0], sizes = [16, 32], strides = [1, 1]} : vector<16x48xf32> to vector<16x32xf32>
    %160 = vector.extract_strided_slice %154 {offsets = [0, 0], sizes = [16, 32], strides = [1, 1]} : vector<16x48xf32> to vector<16x32xf32>
    %161 = arith.addf %159, %160 : vector<16x32xf32>
    %162 = arith.negf %161 : vector<16x32xf32>
    %163 = math.exp %162 : vector<16x32xf32>
    %cst_44 = arith.constant 1.000000e+00 : f32
    %164 = vector.broadcast %cst_44 : f32 to vector<16x32xf32>
    %165 = arith.addf %164, %163 : vector<16x32xf32>
    %166 = arith.divf %164, %165 : vector<16x32xf32>
    %167 = vector.extract_strided_slice %166 {offsets = [0, 0], sizes = [16, 16], strides = [1, 1]} : vector<16x32xf32> to vector<16x16xf32>
    %168 = vector.extract_strided_slice %166 {offsets = [0, 16], sizes = [16, 16], strides = [1, 1]} : vector<16x32xf32> to vector<16x16xf32>
    %169 = vector.extract_strided_slice %149 {offsets = [0, 32], sizes = [16, 16], strides = [1, 1]} : vector<16x48xf32> to vector<16x16xf32>
    %170 = vector.extract_strided_slice %154 {offsets = [0, 32], sizes = [16, 16], strides = [1, 1]} : vector<16x48xf32> to vector<16x16xf32>
    %171 = arith.mulf %167, %170 : vector<16x16xf32>
    %172 = arith.addf %169, %171 : vector<16x16xf32>
    %173 = math.tanh %172 : vector<16x16xf32>
    %174 = arith.subf %113, %173 : vector<16x16xf32>
    %175 = arith.mulf %168, %174 : vector<16x16xf32>
    %176 = arith.addf %173, %175 : vector<16x16xf32>
    %177 = vector.extract_strided_slice %150 {offsets = [0, 0], sizes = [16, 32], strides = [1, 1]} : vector<16x48xf32> to vector<16x32xf32>
    %178 = vector.extract_strided_slice %158 {offsets = [0, 0], sizes = [16, 32], strides = [1, 1]} : vector<16x48xf32> to vector<16x32xf32>
    %179 = arith.addf %177, %178 : vector<16x32xf32>
    %180 = arith.negf %179 : vector<16x32xf32>
    %181 = math.exp %180 : vector<16x32xf32>
    %cst_45 = arith.constant 1.000000e+00 : f32
    %182 = vector.broadcast %cst_45 : f32 to vector<16x32xf32>
    %183 = arith.addf %182, %181 : vector<16x32xf32>
    %184 = arith.divf %182, %183 : vector<16x32xf32>
    %185 = vector.extract_strided_slice %184 {offsets = [0, 0], sizes = [16, 16], strides = [1, 1]} : vector<16x32xf32> to vector<16x16xf32>
    %186 = vector.extract_strided_slice %184 {offsets = [0, 16], sizes = [16, 16], strides = [1, 1]} : vector<16x32xf32> to vector<16x16xf32>
    %187 = vector.extract_strided_slice %150 {offsets = [0, 32], sizes = [16, 16], strides = [1, 1]} : vector<16x48xf32> to vector<16x16xf32>
    %188 = vector.extract_strided_slice %158 {offsets = [0, 32], sizes = [16, 16], strides = [1, 1]} : vector<16x48xf32> to vector<16x16xf32>
    %189 = arith.mulf %185, %188 : vector<16x16xf32>
    %190 = arith.addf %187, %189 : vector<16x16xf32>
    %191 = math.tanh %190 : vector<16x16xf32>
    %192 = arith.subf %131, %191 : vector<16x16xf32>
    %193 = arith.mulf %186, %192 : vector<16x16xf32>
    %194 = arith.addf %191, %193 : vector<16x16xf32>
    %195 = arith.index_cast %c2_i32 : i32 to index
    %c0_46 = arith.constant 0 : index
    %c0_47 = arith.constant 0 : index
    %196 = vector.load %arg6[%195, %c0_46, %c0_47] : memref<8x16x32xf32, #tpu.memory_space<vmem>>, vector<1x16x16xf32>
    %197 = vector.shape_cast %196 : vector<1x16x16xf32> to vector<16x16xf32>
    %198 = vector.shape_cast %176 : vector<16x16xf32> to vector<1x16x16xf32>
    tpu.vector_store %arg6[%195, %c0_46, %c0_47], %198 {strides = array<i32>} : memref<8x16x32xf32, #tpu.memory_space<vmem>>, vector<1x16x16xf32>,
    %199 = arith.index_cast %140 : i32 to index
    %c0_48 = arith.constant 0 : index
    %c16_49 = arith.constant 16 : index
    %200 = vector.load %arg6[%199, %c0_48, %c16_49] : memref<8x16x32xf32, #tpu.memory_space<vmem>>, vector<1x16x16xf32>
    %201 = vector.shape_cast %200 : vector<1x16x16xf32> to vector<16x16xf32>
    %202 = vector.shape_cast %194 : vector<16x16xf32> to vector<1x16x16xf32>
    tpu.vector_store %arg6[%199, %c0_48, %c16_49], %202 {strides = array<i32>} : memref<8x16x32xf32, #tpu.memory_space<vmem>>, vector<1x16x16xf32>,
    %c3_i32 = arith.constant 3 : i32
    %c7_i32_50 = arith.constant 7 : i32
    %203 = arith.subi %c7_i32_50, %c3_i32 : i32
    %c16_i32_51 = arith.constant 16 : i32
    %204 = arith.muli %c3_i32, %c16_i32_51 : i32
    %205 = tpu.assume_multiple %204, 16 : i32
    %206 = arith.index_cast %205 : i32 to index
    %c0_52 = arith.constant 0 : index
    %207 = vector.load %arg7[%206, %c0_52] : memref<128x96xf32, #tpu.memory_space<vmem>>, vector<16x96xf32>
    %c16_i32_53 = arith.constant 16 : i32
    %208 = arith.muli %203, %c16_i32_53 : i32
    %209 = tpu.assume_multiple %208, 16 : i32
    %210 = arith.index_cast %209 : i32 to index
    %c0_54 = arith.constant 0 : index
    %211 = vector.load %arg7[%210, %c0_54] : memref<128x96xf32, #tpu.memory_space<vmem>>, vector<16x96xf32>
    %212 = vector.extract_strided_slice %207 {offsets = [0, 0], sizes = [16, 48], strides = [1, 1]} : vector<16x96xf32> to vector<16x48xf32>
    %213 = vector.extract_strided_slice %211 {offsets = [0, 48], sizes = [16, 48], strides = [1, 1]} : vector<16x96xf32> to vector<16x48xf32>
    %214 = arith.truncf %176 : vector<16x16xf32> to vector<16x16xbf16>
    %cst_55 = arith.constant dense<0.000000e+00> : vector<16x48xf32>
    %215 = tpu.matmul %214, %8, %cst_55 {dimension_numbers = #tpu.dot_dimension_numbers<[1], [0], [0], [1], [0, 0, 1, 1], [], []>} : vector<16x16xbf16>, vector<16x48xbf16>, vector<16x48xf32> -> vector<16x48xf32>
    %216 = vector.broadcast %11 : vector<1x48xf32> to vector<16x48xf32>
    %217 = arith.addf %215, %216 : vector<16x48xf32>
    %218 = arith.truncf %194 : vector<16x16xf32> to vector<16x16xbf16>
    %cst_56 = arith.constant dense<0.000000e+00> : vector<16x48xf32>
    %219 = tpu.matmul %218, %9, %cst_56 {dimension_numbers = #tpu.dot_dimension_numbers<[1], [0], [0], [1], [0, 0, 1, 1], [], []>} : vector<16x16xbf16>, vector<16x48xbf16>, vector<16x48xf32> -> vector<16x48xf32>
    %220 = vector.broadcast %12 : vector<1x48xf32> to vector<16x48xf32>
    %221 = arith.addf %219, %220 : vector<16x48xf32>
    %222 = vector.extract_strided_slice %212 {offsets = [0, 0], sizes = [16, 32], strides = [1, 1]} : vector<16x48xf32> to vector<16x32xf32>
    %223 = vector.extract_strided_slice %217 {offsets = [0, 0], sizes = [16, 32], strides = [1, 1]} : vector<16x48xf32> to vector<16x32xf32>
    %224 = arith.addf %222, %223 : vector<16x32xf32>
    %225 = arith.negf %224 : vector<16x32xf32>
    %226 = math.exp %225 : vector<16x32xf32>
    %cst_57 = arith.constant 1.000000e+00 : f32
    %227 = vector.broadcast %cst_57 : f32 to vector<16x32xf32>
    %228 = arith.addf %227, %226 : vector<16x32xf32>
    %229 = arith.divf %227, %228 : vector<16x32xf32>
    %230 = vector.extract_strided_slice %229 {offsets = [0, 0], sizes = [16, 16], strides = [1, 1]} : vector<16x32xf32> to vector<16x16xf32>
    %231 = vector.extract_strided_slice %229 {offsets = [0, 16], sizes = [16, 16], strides = [1, 1]} : vector<16x32xf32> to vector<16x16xf32>
    %232 = vector.extract_strided_slice %212 {offsets = [0, 32], sizes = [16, 16], strides = [1, 1]} : vector<16x48xf32> to vector<16x16xf32>
    %233 = vector.extract_strided_slice %217 {offsets = [0, 32], sizes = [16, 16], strides = [1, 1]} : vector<16x48xf32> to vector<16x16xf32>
    %234 = arith.mulf %230, %233 : vector<16x16xf32>
    %235 = arith.addf %232, %234 : vector<16x16xf32>
    %236 = math.tanh %235 : vector<16x16xf32>
    %237 = arith.subf %176, %236 : vector<16x16xf32>
    %238 = arith.mulf %231, %237 : vector<16x16xf32>
    %239 = arith.addf %236, %238 : vector<16x16xf32>
    %240 = vector.extract_strided_slice %213 {offsets = [0, 0], sizes = [16, 32], strides = [1, 1]} : vector<16x48xf32> to vector<16x32xf32>
    %241 = vector.extract_strided_slice %221 {offsets = [0, 0], sizes = [16, 32], strides = [1, 1]} : vector<16x48xf32> to vector<16x32xf32>
    %242 = arith.addf %240, %241 : vector<16x32xf32>
    %243 = arith.negf %242 : vector<16x32xf32>
    %244 = math.exp %243 : vector<16x32xf32>
    %cst_58 = arith.constant 1.000000e+00 : f32
    %245 = vector.broadcast %cst_58 : f32 to vector<16x32xf32>
    %246 = arith.addf %245, %244 : vector<16x32xf32>
    %247 = arith.divf %245, %246 : vector<16x32xf32>
    %248 = vector.extract_strided_slice %247 {offsets = [0, 0], sizes = [16, 16], strides = [1, 1]} : vector<16x32xf32> to vector<16x16xf32>
    %249 = vector.extract_strided_slice %247 {offsets = [0, 16], sizes = [16, 16], strides = [1, 1]} : vector<16x32xf32> to vector<16x16xf32>
    %250 = vector.extract_strided_slice %213 {offsets = [0, 32], sizes = [16, 16], strides = [1, 1]} : vector<16x48xf32> to vector<16x16xf32>
    %251 = vector.extract_strided_slice %221 {offsets = [0, 32], sizes = [16, 16], strides = [1, 1]} : vector<16x48xf32> to vector<16x16xf32>
    %252 = arith.mulf %248, %251 : vector<16x16xf32>
    %253 = arith.addf %250, %252 : vector<16x16xf32>
    %254 = math.tanh %253 : vector<16x16xf32>
    %255 = arith.subf %194, %254 : vector<16x16xf32>
    %256 = arith.mulf %249, %255 : vector<16x16xf32>
    %257 = arith.addf %254, %256 : vector<16x16xf32>
    %258 = arith.index_cast %c3_i32 : i32 to index
    %c0_59 = arith.constant 0 : index
    %c0_60 = arith.constant 0 : index
    %259 = vector.load %arg6[%258, %c0_59, %c0_60] : memref<8x16x32xf32, #tpu.memory_space<vmem>>, vector<1x16x16xf32>
    %260 = vector.shape_cast %259 : vector<1x16x16xf32> to vector<16x16xf32>
    %261 = vector.shape_cast %239 : vector<16x16xf32> to vector<1x16x16xf32>
    tpu.vector_store %arg6[%258, %c0_59, %c0_60], %261 {strides = array<i32>} : memref<8x16x32xf32, #tpu.memory_space<vmem>>, vector<1x16x16xf32>,
    %262 = arith.index_cast %203 : i32 to index
    %c0_61 = arith.constant 0 : index
    %c16_62 = arith.constant 16 : index
    %263 = vector.load %arg6[%262, %c0_61, %c16_62] : memref<8x16x32xf32, #tpu.memory_space<vmem>>, vector<1x16x16xf32>
    %264 = vector.shape_cast %263 : vector<1x16x16xf32> to vector<16x16xf32>
    %265 = vector.shape_cast %257 : vector<16x16xf32> to vector<1x16x16xf32>
    tpu.vector_store %arg6[%262, %c0_61, %c16_62], %265 {strides = array<i32>} : memref<8x16x32xf32, #tpu.memory_space<vmem>>, vector<1x16x16xf32>,
    %c4_i32 = arith.constant 4 : i32
    %c7_i32_63 = arith.constant 7 : i32
    %266 = arith.subi %c7_i32_63, %c4_i32 : i32
    %c16_i32_64 = arith.constant 16 : i32
    %267 = arith.muli %c4_i32, %c16_i32_64 : i32
    %268 = tpu.assume_multiple %267, 16 : i32
    %269 = arith.index_cast %268 : i32 to index
    %c0_65 = arith.constant 0 : index
    %270 = vector.load %arg7[%269, %c0_65] : memref<128x96xf32, #tpu.memory_space<vmem>>, vector<16x96xf32>
    %c16_i32_66 = arith.constant 16 : i32
    %271 = arith.muli %266, %c16_i32_66 : i32
    %272 = tpu.assume_multiple %271, 16 : i32
    %273 = arith.index_cast %272 : i32 to index
    %c0_67 = arith.constant 0 : index
    %274 = vector.load %arg7[%273, %c0_67] : memref<128x96xf32, #tpu.memory_space<vmem>>, vector<16x96xf32>
    %275 = vector.extract_strided_slice %270 {offsets = [0, 0], sizes = [16, 48], strides = [1, 1]} : vector<16x96xf32> to vector<16x48xf32>
    %276 = vector.extract_strided_slice %274 {offsets = [0, 48], sizes = [16, 48], strides = [1, 1]} : vector<16x96xf32> to vector<16x48xf32>
    %277 = arith.truncf %239 : vector<16x16xf32> to vector<16x16xbf16>
    %cst_68 = arith.constant dense<0.000000e+00> : vector<16x48xf32>
    %278 = tpu.matmul %277, %8, %cst_68 {dimension_numbers = #tpu.dot_dimension_numbers<[1], [0], [0], [1], [0, 0, 1, 1], [], []>} : vector<16x16xbf16>, vector<16x48xbf16>, vector<16x48xf32> -> vector<16x48xf32>
    %279 = vector.broadcast %11 : vector<1x48xf32> to vector<16x48xf32>
    %280 = arith.addf %278, %279 : vector<16x48xf32>
    %281 = arith.truncf %257 : vector<16x16xf32> to vector<16x16xbf16>
    %cst_69 = arith.constant dense<0.000000e+00> : vector<16x48xf32>
    %282 = tpu.matmul %281, %9, %cst_69 {dimension_numbers = #tpu.dot_dimension_numbers<[1], [0], [0], [1], [0, 0, 1, 1], [], []>} : vector<16x16xbf16>, vector<16x48xbf16>, vector<16x48xf32> -> vector<16x48xf32>
    %283 = vector.broadcast %12 : vector<1x48xf32> to vector<16x48xf32>
    %284 = arith.addf %282, %283 : vector<16x48xf32>
    %285 = vector.extract_strided_slice %275 {offsets = [0, 0], sizes = [16, 32], strides = [1, 1]} : vector<16x48xf32> to vector<16x32xf32>
    %286 = vector.extract_strided_slice %280 {offsets = [0, 0], sizes = [16, 32], strides = [1, 1]} : vector<16x48xf32> to vector<16x32xf32>
    %287 = arith.addf %285, %286 : vector<16x32xf32>
    %288 = arith.negf %287 : vector<16x32xf32>
    %289 = math.exp %288 : vector<16x32xf32>
    %cst_70 = arith.constant 1.000000e+00 : f32
    %290 = vector.broadcast %cst_70 : f32 to vector<16x32xf32>
    %291 = arith.addf %290, %289 : vector<16x32xf32>
    %292 = arith.divf %290, %291 : vector<16x32xf32>
    %293 = vector.extract_strided_slice %292 {offsets = [0, 0], sizes = [16, 16], strides = [1, 1]} : vector<16x32xf32> to vector<16x16xf32>
    %294 = vector.extract_strided_slice %292 {offsets = [0, 16], sizes = [16, 16], strides = [1, 1]} : vector<16x32xf32> to vector<16x16xf32>
    %295 = vector.extract_strided_slice %275 {offsets = [0, 32], sizes = [16, 16], strides = [1, 1]} : vector<16x48xf32> to vector<16x16xf32>
    %296 = vector.extract_strided_slice %280 {offsets = [0, 32], sizes = [16, 16], strides = [1, 1]} : vector<16x48xf32> to vector<16x16xf32>
    %297 = arith.mulf %293, %296 : vector<16x16xf32>
    %298 = arith.addf %295, %297 : vector<16x16xf32>
    %299 = math.tanh %298 : vector<16x16xf32>
    %300 = arith.subf %239, %299 : vector<16x16xf32>
    %301 = arith.mulf %294, %300 : vector<16x16xf32>
    %302 = arith.addf %299, %301 : vector<16x16xf32>
    %303 = vector.extract_strided_slice %276 {offsets = [0, 0], sizes = [16, 32], strides = [1, 1]} : vector<16x48xf32> to vector<16x32xf32>
    %304 = vector.extract_strided_slice %284 {offsets = [0, 0], sizes = [16, 32], strides = [1, 1]} : vector<16x48xf32> to vector<16x32xf32>
    %305 = arith.addf %303, %304 : vector<16x32xf32>
    %306 = arith.negf %305 : vector<16x32xf32>
    %307 = math.exp %306 : vector<16x32xf32>
    %cst_71 = arith.constant 1.000000e+00 : f32
    %308 = vector.broadcast %cst_71 : f32 to vector<16x32xf32>
    %309 = arith.addf %308, %307 : vector<16x32xf32>
    %310 = arith.divf %308, %309 : vector<16x32xf32>
    %311 = vector.extract_strided_slice %310 {offsets = [0, 0], sizes = [16, 16], strides = [1, 1]} : vector<16x32xf32> to vector<16x16xf32>
    %312 = vector.extract_strided_slice %310 {offsets = [0, 16], sizes = [16, 16], strides = [1, 1]} : vector<16x32xf32> to vector<16x16xf32>
    %313 = vector.extract_strided_slice %276 {offsets = [0, 32], sizes = [16, 16], strides = [1, 1]} : vector<16x48xf32> to vector<16x16xf32>
    %314 = vector.extract_strided_slice %284 {offsets = [0, 32], sizes = [16, 16], strides = [1, 1]} : vector<16x48xf32> to vector<16x16xf32>
    %315 = arith.mulf %311, %314 : vector<16x16xf32>
    %316 = arith.addf %313, %315 : vector<16x16xf32>
    %317 = math.tanh %316 : vector<16x16xf32>
    %318 = arith.subf %257, %317 : vector<16x16xf32>
    %319 = arith.mulf %312, %318 : vector<16x16xf32>
    %320 = arith.addf %317, %319 : vector<16x16xf32>
    %321 = arith.index_cast %c4_i32 : i32 to index
    %c0_72 = arith.constant 0 : index
    %c0_73 = arith.constant 0 : index
    %322 = vector.load %arg6[%321, %c0_72, %c0_73] : memref<8x16x32xf32, #tpu.memory_space<vmem>>, vector<1x16x16xf32>
    %323 = vector.shape_cast %322 : vector<1x16x16xf32> to vector<16x16xf32>
    %324 = vector.shape_cast %302 : vector<16x16xf32> to vector<1x16x16xf32>
    tpu.vector_store %arg6[%321, %c0_72, %c0_73], %324 {strides = array<i32>} : memref<8x16x32xf32, #tpu.memory_space<vmem>>, vector<1x16x16xf32>,
    %325 = arith.index_cast %266 : i32 to index
    %c0_74 = arith.constant 0 : index
    %c16_75 = arith.constant 16 : index
    %326 = vector.load %arg6[%325, %c0_74, %c16_75] : memref<8x16x32xf32, #tpu.memory_space<vmem>>, vector<1x16x16xf32>
    %327 = vector.shape_cast %326 : vector<1x16x16xf32> to vector<16x16xf32>
    %328 = vector.shape_cast %320 : vector<16x16xf32> to vector<1x16x16xf32>
    tpu.vector_store %arg6[%325, %c0_74, %c16_75], %328 {strides = array<i32>} : memref<8x16x32xf32, #tpu.memory_space<vmem>>, vector<1x16x16xf32>,
    %c5_i32 = arith.constant 5 : i32
    %c7_i32_76 = arith.constant 7 : i32
    %329 = arith.subi %c7_i32_76, %c5_i32 : i32
    %c16_i32_77 = arith.constant 16 : i32
    %330 = arith.muli %c5_i32, %c16_i32_77 : i32
    %331 = tpu.assume_multiple %330, 16 : i32
    %332 = arith.index_cast %331 : i32 to index
    %c0_78 = arith.constant 0 : index
    %333 = vector.load %arg7[%332, %c0_78] : memref<128x96xf32, #tpu.memory_space<vmem>>, vector<16x96xf32>
    %c16_i32_79 = arith.constant 16 : i32
    %334 = arith.muli %329, %c16_i32_79 : i32
    %335 = tpu.assume_multiple %334, 16 : i32
    %336 = arith.index_cast %335 : i32 to index
    %c0_80 = arith.constant 0 : index
    %337 = vector.load %arg7[%336, %c0_80] : memref<128x96xf32, #tpu.memory_space<vmem>>, vector<16x96xf32>
    %338 = vector.extract_strided_slice %333 {offsets = [0, 0], sizes = [16, 48], strides = [1, 1]} : vector<16x96xf32> to vector<16x48xf32>
    %339 = vector.extract_strided_slice %337 {offsets = [0, 48], sizes = [16, 48], strides = [1, 1]} : vector<16x96xf32> to vector<16x48xf32>
    %340 = arith.truncf %302 : vector<16x16xf32> to vector<16x16xbf16>
    %cst_81 = arith.constant dense<0.000000e+00> : vector<16x48xf32>
    %341 = tpu.matmul %340, %8, %cst_81 {dimension_numbers = #tpu.dot_dimension_numbers<[1], [0], [0], [1], [0, 0, 1, 1], [], []>} : vector<16x16xbf16>, vector<16x48xbf16>, vector<16x48xf32> -> vector<16x48xf32>
    %342 = vector.broadcast %11 : vector<1x48xf32> to vector<16x48xf32>
    %343 = arith.addf %341, %342 : vector<16x48xf32>
    %344 = arith.truncf %320 : vector<16x16xf32> to vector<16x16xbf16>
    %cst_82 = arith.constant dense<0.000000e+00> : vector<16x48xf32>
    %345 = tpu.matmul %344, %9, %cst_82 {dimension_numbers = #tpu.dot_dimension_numbers<[1], [0], [0], [1], [0, 0, 1, 1], [], []>} : vector<16x16xbf16>, vector<16x48xbf16>, vector<16x48xf32> -> vector<16x48xf32>
    %346 = vector.broadcast %12 : vector<1x48xf32> to vector<16x48xf32>
    %347 = arith.addf %345, %346 : vector<16x48xf32>
    %348 = vector.extract_strided_slice %338 {offsets = [0, 0], sizes = [16, 32], strides = [1, 1]} : vector<16x48xf32> to vector<16x32xf32>
    %349 = vector.extract_strided_slice %343 {offsets = [0, 0], sizes = [16, 32], strides = [1, 1]} : vector<16x48xf32> to vector<16x32xf32>
    %350 = arith.addf %348, %349 : vector<16x32xf32>
    %351 = arith.negf %350 : vector<16x32xf32>
    %352 = math.exp %351 : vector<16x32xf32>
    %cst_83 = arith.constant 1.000000e+00 : f32
    %353 = vector.broadcast %cst_83 : f32 to vector<16x32xf32>
    %354 = arith.addf %353, %352 : vector<16x32xf32>
    %355 = arith.divf %353, %354 : vector<16x32xf32>
    %356 = vector.extract_strided_slice %355 {offsets = [0, 0], sizes = [16, 16], strides = [1, 1]} : vector<16x32xf32> to vector<16x16xf32>
    %357 = vector.extract_strided_slice %355 {offsets = [0, 16], sizes = [16, 16], strides = [1, 1]} : vector<16x32xf32> to vector<16x16xf32>
    %358 = vector.extract_strided_slice %338 {offsets = [0, 32], sizes = [16, 16], strides = [1, 1]} : vector<16x48xf32> to vector<16x16xf32>
    %359 = vector.extract_strided_slice %343 {offsets = [0, 32], sizes = [16, 16], strides = [1, 1]} : vector<16x48xf32> to vector<16x16xf32>
    %360 = arith.mulf %356, %359 : vector<16x16xf32>
    %361 = arith.addf %358, %360 : vector<16x16xf32>
    %362 = math.tanh %361 : vector<16x16xf32>
    %363 = arith.subf %302, %362 : vector<16x16xf32>
    %364 = arith.mulf %357, %363 : vector<16x16xf32>
    %365 = arith.addf %362, %364 : vector<16x16xf32>
    %366 = vector.extract_strided_slice %339 {offsets = [0, 0], sizes = [16, 32], strides = [1, 1]} : vector<16x48xf32> to vector<16x32xf32>
    %367 = vector.extract_strided_slice %347 {offsets = [0, 0], sizes = [16, 32], strides = [1, 1]} : vector<16x48xf32> to vector<16x32xf32>
    %368 = arith.addf %366, %367 : vector<16x32xf32>
    %369 = arith.negf %368 : vector<16x32xf32>
    %370 = math.exp %369 : vector<16x32xf32>
    %cst_84 = arith.constant 1.000000e+00 : f32
    %371 = vector.broadcast %cst_84 : f32 to vector<16x32xf32>
    %372 = arith.addf %371, %370 : vector<16x32xf32>
    %373 = arith.divf %371, %372 : vector<16x32xf32>
    %374 = vector.extract_strided_slice %373 {offsets = [0, 0], sizes = [16, 16], strides = [1, 1]} : vector<16x32xf32> to vector<16x16xf32>
    %375 = vector.extract_strided_slice %373 {offsets = [0, 16], sizes = [16, 16], strides = [1, 1]} : vector<16x32xf32> to vector<16x16xf32>
    %376 = vector.extract_strided_slice %339 {offsets = [0, 32], sizes = [16, 16], strides = [1, 1]} : vector<16x48xf32> to vector<16x16xf32>
    %377 = vector.extract_strided_slice %347 {offsets = [0, 32], sizes = [16, 16], strides = [1, 1]} : vector<16x48xf32> to vector<16x16xf32>
    %378 = arith.mulf %374, %377 : vector<16x16xf32>
    %379 = arith.addf %376, %378 : vector<16x16xf32>
    %380 = math.tanh %379 : vector<16x16xf32>
    %381 = arith.subf %320, %380 : vector<16x16xf32>
    %382 = arith.mulf %375, %381 : vector<16x16xf32>
    %383 = arith.addf %380, %382 : vector<16x16xf32>
    %384 = arith.index_cast %c5_i32 : i32 to index
    %c0_85 = arith.constant 0 : index
    %c0_86 = arith.constant 0 : index
    %385 = vector.load %arg6[%384, %c0_85, %c0_86] : memref<8x16x32xf32, #tpu.memory_space<vmem>>, vector<1x16x16xf32>
    %386 = vector.shape_cast %385 : vector<1x16x16xf32> to vector<16x16xf32>
    %387 = vector.shape_cast %365 : vector<16x16xf32> to vector<1x16x16xf32>
    tpu.vector_store %arg6[%384, %c0_85, %c0_86], %387 {strides = array<i32>} : memref<8x16x32xf32, #tpu.memory_space<vmem>>, vector<1x16x16xf32>,
    %388 = arith.index_cast %329 : i32 to index
    %c0_87 = arith.constant 0 : index
    %c16_88 = arith.constant 16 : index
    %389 = vector.load %arg6[%388, %c0_87, %c16_88] : memref<8x16x32xf32, #tpu.memory_space<vmem>>, vector<1x16x16xf32>
    %390 = vector.shape_cast %389 : vector<1x16x16xf32> to vector<16x16xf32>
    %391 = vector.shape_cast %383 : vector<16x16xf32> to vector<1x16x16xf32>
    tpu.vector_store %arg6[%388, %c0_87, %c16_88], %391 {strides = array<i32>} : memref<8x16x32xf32, #tpu.memory_space<vmem>>, vector<1x16x16xf32>,
    %c6_i32 = arith.constant 6 : i32
    %c7_i32_89 = arith.constant 7 : i32
    %392 = arith.subi %c7_i32_89, %c6_i32 : i32
    %c16_i32_90 = arith.constant 16 : i32
    %393 = arith.muli %c6_i32, %c16_i32_90 : i32
    %394 = tpu.assume_multiple %393, 16 : i32
    %395 = arith.index_cast %394 : i32 to index
    %c0_91 = arith.constant 0 : index
    %396 = vector.load %arg7[%395, %c0_91] : memref<128x96xf32, #tpu.memory_space<vmem>>, vector<16x96xf32>
    %c16_i32_92 = arith.constant 16 : i32
    %397 = arith.muli %392, %c16_i32_92 : i32
    %398 = tpu.assume_multiple %397, 16 : i32
    %399 = arith.index_cast %398 : i32 to index
    %c0_93 = arith.constant 0 : index
    %400 = vector.load %arg7[%399, %c0_93] : memref<128x96xf32, #tpu.memory_space<vmem>>, vector<16x96xf32>
    %401 = vector.extract_strided_slice %396 {offsets = [0, 0], sizes = [16, 48], strides = [1, 1]} : vector<16x96xf32> to vector<16x48xf32>
    %402 = vector.extract_strided_slice %400 {offsets = [0, 48], sizes = [16, 48], strides = [1, 1]} : vector<16x96xf32> to vector<16x48xf32>
    %403 = arith.truncf %365 : vector<16x16xf32> to vector<16x16xbf16>
    %cst_94 = arith.constant dense<0.000000e+00> : vector<16x48xf32>
    %404 = tpu.matmul %403, %8, %cst_94 {dimension_numbers = #tpu.dot_dimension_numbers<[1], [0], [0], [1], [0, 0, 1, 1], [], []>} : vector<16x16xbf16>, vector<16x48xbf16>, vector<16x48xf32> -> vector<16x48xf32>
    %405 = vector.broadcast %11 : vector<1x48xf32> to vector<16x48xf32>
    %406 = arith.addf %404, %405 : vector<16x48xf32>
    %407 = arith.truncf %383 : vector<16x16xf32> to vector<16x16xbf16>
    %cst_95 = arith.constant dense<0.000000e+00> : vector<16x48xf32>
    %408 = tpu.matmul %407, %9, %cst_95 {dimension_numbers = #tpu.dot_dimension_numbers<[1], [0], [0], [1], [0, 0, 1, 1], [], []>} : vector<16x16xbf16>, vector<16x48xbf16>, vector<16x48xf32> -> vector<16x48xf32>
    %409 = vector.broadcast %12 : vector<1x48xf32> to vector<16x48xf32>
    %410 = arith.addf %408, %409 : vector<16x48xf32>
    %411 = vector.extract_strided_slice %401 {offsets = [0, 0], sizes = [16, 32], strides = [1, 1]} : vector<16x48xf32> to vector<16x32xf32>
    %412 = vector.extract_strided_slice %406 {offsets = [0, 0], sizes = [16, 32], strides = [1, 1]} : vector<16x48xf32> to vector<16x32xf32>
    %413 = arith.addf %411, %412 : vector<16x32xf32>
    %414 = arith.negf %413 : vector<16x32xf32>
    %415 = math.exp %414 : vector<16x32xf32>
    %cst_96 = arith.constant 1.000000e+00 : f32
    %416 = vector.broadcast %cst_96 : f32 to vector<16x32xf32>
    %417 = arith.addf %416, %415 : vector<16x32xf32>
    %418 = arith.divf %416, %417 : vector<16x32xf32>
    %419 = vector.extract_strided_slice %418 {offsets = [0, 0], sizes = [16, 16], strides = [1, 1]} : vector<16x32xf32> to vector<16x16xf32>
    %420 = vector.extract_strided_slice %418 {offsets = [0, 16], sizes = [16, 16], strides = [1, 1]} : vector<16x32xf32> to vector<16x16xf32>
    %421 = vector.extract_strided_slice %401 {offsets = [0, 32], sizes = [16, 16], strides = [1, 1]} : vector<16x48xf32> to vector<16x16xf32>
    %422 = vector.extract_strided_slice %406 {offsets = [0, 32], sizes = [16, 16], strides = [1, 1]} : vector<16x48xf32> to vector<16x16xf32>
    %423 = arith.mulf %419, %422 : vector<16x16xf32>
    %424 = arith.addf %421, %423 : vector<16x16xf32>
    %425 = math.tanh %424 : vector<16x16xf32>
    %426 = arith.subf %365, %425 : vector<16x16xf32>
    %427 = arith.mulf %420, %426 : vector<16x16xf32>
    %428 = arith.addf %425, %427 : vector<16x16xf32>
    %429 = vector.extract_strided_slice %402 {offsets = [0, 0], sizes = [16, 32], strides = [1, 1]} : vector<16x48xf32> to vector<16x32xf32>
    %430 = vector.extract_strided_slice %410 {offsets = [0, 0], sizes = [16, 32], strides = [1, 1]} : vector<16x48xf32> to vector<16x32xf32>
    %431 = arith.addf %429, %430 : vector<16x32xf32>
    %432 = arith.negf %431 : vector<16x32xf32>
    %433 = math.exp %432 : vector<16x32xf32>
    %cst_97 = arith.constant 1.000000e+00 : f32
    %434 = vector.broadcast %cst_97 : f32 to vector<16x32xf32>
    %435 = arith.addf %434, %433 : vector<16x32xf32>
    %436 = arith.divf %434, %435 : vector<16x32xf32>
    %437 = vector.extract_strided_slice %436 {offsets = [0, 0], sizes = [16, 16], strides = [1, 1]} : vector<16x32xf32> to vector<16x16xf32>
    %438 = vector.extract_strided_slice %436 {offsets = [0, 16], sizes = [16, 16], strides = [1, 1]} : vector<16x32xf32> to vector<16x16xf32>
    %439 = vector.extract_strided_slice %402 {offsets = [0, 32], sizes = [16, 16], strides = [1, 1]} : vector<16x48xf32> to vector<16x16xf32>
    %440 = vector.extract_strided_slice %410 {offsets = [0, 32], sizes = [16, 16], strides = [1, 1]} : vector<16x48xf32> to vector<16x16xf32>
    %441 = arith.mulf %437, %440 : vector<16x16xf32>
    %442 = arith.addf %439, %441 : vector<16x16xf32>
    %443 = math.tanh %442 : vector<16x16xf32>
    %444 = arith.subf %383, %443 : vector<16x16xf32>
    %445 = arith.mulf %438, %444 : vector<16x16xf32>
    %446 = arith.addf %443, %445 : vector<16x16xf32>
    %447 = arith.index_cast %c6_i32 : i32 to index
    %c0_98 = arith.constant 0 : index
    %c0_99 = arith.constant 0 : index
    %448 = vector.load %arg6[%447, %c0_98, %c0_99] : memref<8x16x32xf32, #tpu.memory_space<vmem>>, vector<1x16x16xf32>
    %449 = vector.shape_cast %448 : vector<1x16x16xf32> to vector<16x16xf32>
    %450 = vector.shape_cast %428 : vector<16x16xf32> to vector<1x16x16xf32>
    tpu.vector_store %arg6[%447, %c0_98, %c0_99], %450 {strides = array<i32>} : memref<8x16x32xf32, #tpu.memory_space<vmem>>, vector<1x16x16xf32>,
    %451 = arith.index_cast %392 : i32 to index
    %c0_100 = arith.constant 0 : index
    %c16_101 = arith.constant 16 : index
    %452 = vector.load %arg6[%451, %c0_100, %c16_101] : memref<8x16x32xf32, #tpu.memory_space<vmem>>, vector<1x16x16xf32>
    %453 = vector.shape_cast %452 : vector<1x16x16xf32> to vector<16x16xf32>
    %454 = vector.shape_cast %446 : vector<16x16xf32> to vector<1x16x16xf32>
    tpu.vector_store %arg6[%451, %c0_100, %c16_101], %454 {strides = array<i32>} : memref<8x16x32xf32, #tpu.memory_space<vmem>>, vector<1x16x16xf32>,
    %c7_i32_102 = arith.constant 7 : i32
    %c7_i32_103 = arith.constant 7 : i32
    %455 = arith.subi %c7_i32_103, %c7_i32_102 : i32
    %c16_i32_104 = arith.constant 16 : i32
    %456 = arith.muli %c7_i32_102, %c16_i32_104 : i32
    %457 = tpu.assume_multiple %456, 16 : i32
    %458 = arith.index_cast %457 : i32 to index
    %c0_105 = arith.constant 0 : index
    %459 = vector.load %arg7[%458, %c0_105] : memref<128x96xf32, #tpu.memory_space<vmem>>, vector<16x96xf32>
    %c16_i32_106 = arith.constant 16 : i32
    %460 = arith.muli %455, %c16_i32_106 : i32
    %461 = tpu.assume_multiple %460, 16 : i32
    %462 = arith.index_cast %461 : i32 to index
    %c0_107 = arith.constant 0 : index
    %463 = vector.load %arg7[%462, %c0_107] : memref<128x96xf32, #tpu.memory_space<vmem>>, vector<16x96xf32>
    %464 = vector.extract_strided_slice %459 {offsets = [0, 0], sizes = [16, 48], strides = [1, 1]} : vector<16x96xf32> to vector<16x48xf32>
    %465 = vector.extract_strided_slice %463 {offsets = [0, 48], sizes = [16, 48], strides = [1, 1]} : vector<16x96xf32> to vector<16x48xf32>
    %466 = arith.truncf %428 : vector<16x16xf32> to vector<16x16xbf16>
    %cst_108 = arith.constant dense<0.000000e+00> : vector<16x48xf32>
    %467 = tpu.matmul %466, %8, %cst_108 {dimension_numbers = #tpu.dot_dimension_numbers<[1], [0], [0], [1], [0, 0, 1, 1], [], []>} : vector<16x16xbf16>, vector<16x48xbf16>, vector<16x48xf32> -> vector<16x48xf32>
    %468 = vector.broadcast %11 : vector<1x48xf32> to vector<16x48xf32>
    %469 = arith.addf %467, %468 : vector<16x48xf32>
    %470 = arith.truncf %446 : vector<16x16xf32> to vector<16x16xbf16>
    %cst_109 = arith.constant dense<0.000000e+00> : vector<16x48xf32>
    %471 = tpu.matmul %470, %9, %cst_109 {dimension_numbers = #tpu.dot_dimension_numbers<[1], [0], [0], [1], [0, 0, 1, 1], [], []>} : vector<16x16xbf16>, vector<16x48xbf16>, vector<16x48xf32> -> vector<16x48xf32>
    %472 = vector.broadcast %12 : vector<1x48xf32> to vector<16x48xf32>
    %473 = arith.addf %471, %472 : vector<16x48xf32>
    %474 = vector.extract_strided_slice %464 {offsets = [0, 0], sizes = [16, 32], strides = [1, 1]} : vector<16x48xf32> to vector<16x32xf32>
    %475 = vector.extract_strided_slice %469 {offsets = [0, 0], sizes = [16, 32], strides = [1, 1]} : vector<16x48xf32> to vector<16x32xf32>
    %476 = arith.addf %474, %475 : vector<16x32xf32>
    %477 = arith.negf %476 : vector<16x32xf32>
    %478 = math.exp %477 : vector<16x32xf32>
    %cst_110 = arith.constant 1.000000e+00 : f32
    %479 = vector.broadcast %cst_110 : f32 to vector<16x32xf32>
    %480 = arith.addf %479, %478 : vector<16x32xf32>
    %481 = arith.divf %479, %480 : vector<16x32xf32>
    %482 = vector.extract_strided_slice %481 {offsets = [0, 0], sizes = [16, 16], strides = [1, 1]} : vector<16x32xf32> to vector<16x16xf32>
    %483 = vector.extract_strided_slice %481 {offsets = [0, 16], sizes = [16, 16], strides = [1, 1]} : vector<16x32xf32> to vector<16x16xf32>
    %484 = vector.extract_strided_slice %464 {offsets = [0, 32], sizes = [16, 16], strides = [1, 1]} : vector<16x48xf32> to vector<16x16xf32>
    %485 = vector.extract_strided_slice %469 {offsets = [0, 32], sizes = [16, 16], strides = [1, 1]} : vector<16x48xf32> to vector<16x16xf32>
    %486 = arith.mulf %482, %485 : vector<16x16xf32>
    %487 = arith.addf %484, %486 : vector<16x16xf32>
    %488 = math.tanh %487 : vector<16x16xf32>
    %489 = arith.subf %428, %488 : vector<16x16xf32>
    %490 = arith.mulf %483, %489 : vector<16x16xf32>
    %491 = arith.addf %488, %490 : vector<16x16xf32>
    %492 = vector.extract_strided_slice %465 {offsets = [0, 0], sizes = [16, 32], strides = [1, 1]} : vector<16x48xf32> to vector<16x32xf32>
    %493 = vector.extract_strided_slice %473 {offsets = [0, 0], sizes = [16, 32], strides = [1, 1]} : vector<16x48xf32> to vector<16x32xf32>
    %494 = arith.addf %492, %493 : vector<16x32xf32>
    %495 = arith.negf %494 : vector<16x32xf32>
    %496 = math.exp %495 : vector<16x32xf32>
    %cst_111 = arith.constant 1.000000e+00 : f32
    %497 = vector.broadcast %cst_111 : f32 to vector<16x32xf32>
    %498 = arith.addf %497, %496 : vector<16x32xf32>
    %499 = arith.divf %497, %498 : vector<16x32xf32>
    %500 = vector.extract_strided_slice %499 {offsets = [0, 0], sizes = [16, 16], strides = [1, 1]} : vector<16x32xf32> to vector<16x16xf32>
    %501 = vector.extract_strided_slice %499 {offsets = [0, 16], sizes = [16, 16], strides = [1, 1]} : vector<16x32xf32> to vector<16x16xf32>
    %502 = vector.extract_strided_slice %465 {offsets = [0, 32], sizes = [16, 16], strides = [1, 1]} : vector<16x48xf32> to vector<16x16xf32>
    %503 = vector.extract_strided_slice %473 {offsets = [0, 32], sizes = [16, 16], strides = [1, 1]} : vector<16x48xf32> to vector<16x16xf32>
    %504 = arith.mulf %500, %503 : vector<16x16xf32>
    %505 = arith.addf %502, %504 : vector<16x16xf32>
    %506 = math.tanh %505 : vector<16x16xf32>
    %507 = arith.subf %446, %506 : vector<16x16xf32>
    %508 = arith.mulf %501, %507 : vector<16x16xf32>
    %509 = arith.addf %506, %508 : vector<16x16xf32>
    %510 = arith.index_cast %c7_i32_102 : i32 to index
    %c0_112 = arith.constant 0 : index
    %c0_113 = arith.constant 0 : index
    %511 = vector.load %arg6[%510, %c0_112, %c0_113] : memref<8x16x32xf32, #tpu.memory_space<vmem>>, vector<1x16x16xf32>
    %512 = vector.shape_cast %511 : vector<1x16x16xf32> to vector<16x16xf32>
    %513 = vector.shape_cast %491 : vector<16x16xf32> to vector<1x16x16xf32>
    tpu.vector_store %arg6[%510, %c0_112, %c0_113], %513 {strides = array<i32>} : memref<8x16x32xf32, #tpu.memory_space<vmem>>, vector<1x16x16xf32>,
    %514 = arith.index_cast %455 : i32 to index
    %c0_114 = arith.constant 0 : index
    %c16_115 = arith.constant 16 : index
    %515 = vector.load %arg6[%514, %c0_114, %c16_115] : memref<8x16x32xf32, #tpu.memory_space<vmem>>, vector<1x16x16xf32>
    %516 = vector.shape_cast %515 : vector<1x16x16xf32> to vector<16x16xf32>
    %517 = vector.shape_cast %509 : vector<16x16xf32> to vector<1x16x16xf32>
    tpu.vector_store %arg6[%514, %c0_114, %c16_115], %517 {strides = array<i32>} : memref<8x16x32xf32, #tpu.memory_space<vmem>>, vector<1x16x16xf32>,
    %c8_i32 = arith.constant 8 : i32
    return
  }
}

</mosaic_0001>

<bundles_post_ra>
// kernel: tpu_custom_call.1
= control target key start
LH: loop header
LB: loop body
LE: loop exit
PB: predicated region body
PF: predicated region fallthrough
CT: control target
= control target key end

     0   :  { %vm61_vm0 = vcmask 130048   ;;  %s2423_s10 = smov 80   ;;  %s3194_s0 = inlined_call_operand.vmem [shape: f32[128,16], index: 0, kind: input, shape index: {}]   ;;  %s3195_s1 = inlined_call_operand.vmem [shape: bf16[16,96], index: 1, kind: input, shape index: {}]   ;;  %s3196_s2 = inlined_call_operand.vmem [shape: bf16[16,48], index: 2, kind: input, shape index: {}]   ;;  %s3197_s3 = inlined_call_operand.vmem [shape: bf16[16,48], index: 3, kind: input, shape index: {}]   ;;  %s3198_s4 = inlined_call_operand.vmem [shape: f32[1,96], index: 4, kind: input, shape index: {}]   ;;  %s3199_s5 = inlined_call_operand.vmem [shape: f32[1,96], index: 5, kind: input, shape index: {}]   ;;  %s3200_s6 = inlined_call_operand.hbm [shape: f32[8,16,32], index: 6, kind: output, shape index: {}]  }
   0x1   :  { %v2183_v0 = vld [vmem:[%s3195_s1] sm:$0xff]  ;;  %v38_v2 = vld [vmem:[%s3194_s0 + $0x68] sm:$0xff]  ;;  %v39_v6 = vld [vmem:[%s3194_s0 + $0x70] sm:$0xff] }
   0x2   :  { %v37_v1 = vld [vmem:[%s3194_s0 + $0x60] sm:$0xff]  ;;  %2186 = vmatpush.bf16.msra.mxu2 %v2183_v0  ;;  %2187 = vmatpush.bf16.msra.mxu3 %v2183_v0  ;;  %v40_v7 = vld [vmem:[%s3194_s0 + $0x78] sm:$0xff] }
   0x3   :  { %v47_v3 = vpack.c.bf16 %v38_v2, %v37_v1  ;;  %v2481_v4 = vld [vmem:[%s3197_s3] sm:$0xff]  ;;  %v48_v8 = vpack.c.bf16 %v40_v7, %v39_v6 }
   0x4   :  { %v2486_v5 = vld [vmem:[%s3199_s5] ss:$0 sm:$0xff] }
   0x5   :  { %194 = vrot.lane.b32.xlu0 %v2486_v5, %s2423_s10 }
   0x6   :  { %204 = vmatpush.bf16.msrb.mxu2 %v2481_v4 }
   0x7   :  { %11 = vsyncpa [#allocation4], 0  ;;  %93 = vmatpush.bf16.msra.mxu0 %v2183_v0  ;;  %2127 = vmatmul.msk.bf16.vlgmr.msra.gmra.mxu2 %vm61_vm0, %v47_v3  ;;  %v2424_v9 = vmov 0   ;;  %v2501_v10 = vld [vmem:[%s3198_s4] ss:$0 sm:$0xff]  ;;  %vm135_vm1 = vcmask 785408  }
   0x8   :  { %2128 = vmatmul.msk.bf16.vlgmr.msra.gmra.mxu3 %vm61_vm0, %v48_v8  ;;  %s2425_s4 = smov 48   ;;  %s2426_s13 = smov 16   ;;  %v25_v31 = vld [vmem:[%s3194_s0] sm:$0xff]  ;;  %v26_v32 = vld [vmem:[%s3194_s0 + $0x8] sm:$0xff] }
   0x9   :  { %v2534_v33 = vld [vmem:[%s3196_s2] sm:$0xff]  ;;  %v41_v34 = vpack.c.bf16 %v26_v32, %v25_v31  ;;  %s2427_s20 = smov 32   ;;  %s2428_s21 = smov 112  }
   0xa   :  { %181 = vmatpush.bf16.msra.mxu1 %v2534_v33  ;;  %427 = vmatpush.bf16.msrb.mxu3 %v2534_v33  ;;  %s2429_s22 = smov 96   ;;  %s2432_s27 = smov 128  }
   0xb   :  { %2121 = vmatmul.msk.bf16.vlgmr.msra.gmra.mxu0 %vm61_vm0, %v41_v34  ;;  %671 = vmatpush.bf16.msra.mxu2 %v2534_v33  ;;  %s2433_s28 = smov 8  }
   0xd   :  { %182 = vmatmul.bf16.vlgmr.msra.gmra.mxu1 %v2424_v9 }
   0xe   :  { %448 = vmatpush.bf16.msrb.mxu1 %v2481_v4  ;;  %692 = vmatpush.bf16.msra.mxu3 %v2481_v4 }
  0x12   :  { %915 = vmatpush.bf16.msra.mxu1 %v2534_v33 }
  0x17   :  { %205 = vmatmul.bf16.vlgmr.msrb.gmra.mxu2 %v2424_v9 }
  0x18   :  { %936 = vmatpush.bf16.msrb.mxu2 %v2481_v4 }
  0x77   :  { %v2509_v17 = vpop.permute.xlu0 %194 }
  0x88   :  { %v95_v6 = vpop.f32.mrf.mxu0 }
  0x89   :  { %v96_v7 = vadd.f32 %v2501_v10, %v95_v6 }
  0x8a   :  { %v125_v11 = vpop.f32.mrf.mxu2 }
  0x8b   :  { %v126_v12 = vadd.f32 %v2501_v10, %v125_v11  ;;  %v130_v13 = vpop.f32.mrf.mxu3  ;;  %136 = vst.msk [vmem:[#allocation2] sm:$0xff] %vm135_vm1, %v96_v7 }
  0x8c   :  { %v131_v14 = vadd.f32 %v2501_v10, %v130_v13 }
  0x8d   :  { %148 = vst.msk [vmem:[#allocation2 + $0x60] sm:$0xff] %vm135_vm1, %v126_v12 }
  0x8e   :  { %150 = vst.msk [vmem:[#allocation2 + $0x70] sm:$0xff] %vm135_vm1, %v131_v14 }
  0x90   :  { %v97_v8 = vpop.f32.mrf.mxu0 }
  0x91   :  { %v98_v9 = vadd.f32 %v2501_v10, %v97_v8 }
  0x92   :  { %v127_v15 = vpop.f32.mrf.mxu2 }
  0x93   :  { %v128_v16 = vadd.f32 %v2501_v10, %v127_v15  ;;  %v132_v22 = vpop.f32.mrf.mxu3  ;;  %137 = vst.msk [vmem:[#allocation2 + $0x8] sm:$0xff] %vm135_vm1, %v98_v9 }
  0x94   :  { %v133_v23 = vadd.f32 %v2501_v10, %v132_v22 }
  0x95   :  { %149 = vst.msk [vmem:[#allocation2 + $0x68] sm:$0xff] %vm135_vm1, %v128_v16  ;;  %v2519_v24 = vld [vmem:[#allocation2 + $0x70] sm:$0xff] }
  0x96   :  { %151 = vst.msk [vmem:[#allocation2 + $0x78] sm:$0xff] %vm135_vm1, %v133_v23 }
  0x9a   :  { %v206_v18 = vpop.f32.mrf.mxu2 }
  0x9b   :  { %v207_v19 = vadd.f32 %v206_v18, %v2509_v17  ;;  %v183_v18 = vpop.f32.mrf.mxu1 }
  0x9d   :  { %297 = vrot.lane.b32.xlu0 %v207_v19, %s2425_s4  ;;  %v2522_v28 = vld [vmem:[#allocation2 + $0x78] sm:$0xff] }
  0xa2   :  { %v208_v20 = vpop.f32.mrf.mxu2 }
  0xa3   :  { %v209_v21 = vadd.f32 %v208_v20, %v2509_v17  ;;  %v184_v20 = vadd.f32 %v2486_v5, %v183_v18  ;;  %v185_v22 = vpop.f32.mrf.mxu1 }
  0xa4   :  { %v186_v23 = vadd.f32 %v2486_v5, %v185_v22 }
  0xa5   :  { %345 = vrot.lane.b32.xlu2 %v209_v21, %s2426_s13  ;;  %299 = vrot.lane.b32.xlu1 %v209_v21, %s2425_s4 }
  0xad   :  { %343 = vrot.lane.b32.xlu1 %v207_v19, %s2426_s13 }
  0xff   :  { %v346_v61 = vpop.permute.xlu2 %345 }
 0x10f   :  { %v298_v25 = vpop.permute.xlu0 %297 }
 0x110   :  { %v303_v26 = vadd.f32 %v298_v25, %v2519_v24  ;;  %v157_v25 = vld [vmem:[#allocation2] sm:$0xff] }
 0x112   :  { %v2139_v27 = vmul.f32 -1.442695, %v303_v26 }
 0x114   :  { %2201 = vpow2.f32 %v2139_v27  ;;  %v211_v27 = vadd.f32 %v184_v20, %v157_v25 }
 0x117   :  { %v300_v29 = vpop.permute.xlu1 %299 }
 0x118   :  { %v304_v30 = vadd.f32 %v300_v29, %v2522_v28  ;;  %v2137_v29 = vmul.f32 -1.442695, %v211_v27 }
 0x11a   :  { %v2202_v35 = vpop.eup %2201  ;;  %v2140_v36 = vmul.f32 -1.442695, %v304_v30 }
 0x11b   :  { %v311_v37 = vadd.f32 1.0, %v2202_v35 }
 0x11c   :  { %2203 = vpow2.f32 %v2140_v36 }
 0x11d   :  { %2205 = vrcp.f32 %v311_v37  ;;  %v324_v43 = vand.u32 2147483648, %v311_v37  ;;  %v322_v45 = vand.u32 2147483647, %v311_v37  ;;  %vm318_vm3 = vweird.f32 %v311_v37 }
 0x11f   :  { %v325_v48 = vor.u32 1.1754944e-38, %v324_v43  ;;  %vm323_vm5 = vcmp.eq.f32.partialorder %v322_v45, 8.507059e+37  ;;  %v344_v51 = vpop.permute.xlu1 %343 }
 0x122   :  { %v2204_v38 = vpop.eup %2203 }
 0x123   :  { %v2206_v39 = vpop.eup %2205  ;;  %v312_v40 = vadd.f32 1.0, %v2204_v38 }
 0x124   :  { %v314_v41 = vmul.f32 %v2206_v39, %v311_v37  ;;  %vm319_vm2 = vweird.f32 %v2206_v39 }
 0x125   :  { %2207 = vrcp.f32 %v312_v40  ;;  %vm320_vm4 = vmor %vm318_vm3, %vm319_vm2  ;;  %v339_v55 = vand.u32 2147483648, %v312_v40  ;;  %v337_v57 = vand.u32 2147483647, %v312_v40  ;;  %vm333_vm7 = vweird.f32 %v312_v40 }
 0x126   :  { %v315_v42 = vsub.f32 1.0, %v314_v41 }
 0x127   :  { %v340_v59 = vor.u32 1.1754944e-38, %v339_v55  ;;  %vm338_vm9 = vcmp.eq.f32.partialorder %v337_v57, 8.507059e+37 }
 0x128   :  { %v316_v44 = vmul.f32 %v2206_v39, %v315_v42 }
 0x12a   :  { %v317_v46 = vadd.f32 %v2206_v39, %v316_v44 }
 0x12b   :  { %v2208_v47 = vpop.eup %2207 }
 0x12c   :  { %v321_v49 = vsel %vm320_vm4, %v2206_v39, %v317_v46  ;;  %v329_v50 = vmul.f32 %v2208_v47, %v312_v40  ;;  %vm334_vm6 = vweird.f32 %v2208_v47 }
 0x12d   :  { %v326_v52 = vsel %vm323_vm5, %v325_v48, %v321_v49  ;;  %vm335_vm8 = vmor %vm333_vm7, %vm334_vm6 }
 0x12e   :  { %v349_v53 = vmul.f32 %v344_v51, %v326_v52  ;;  %v330_v54 = vsub.f32 1.0, %v329_v50 }
 0x130   :  { %353 = vrot.lane.b32.xlu2 %v349_v53, %s2427_s20  ;;  %v331_v56 = vmul.f32 %v2208_v47, %v330_v54 }
 0x132   :  { %v332_v58 = vadd.f32 %v2208_v47, %v331_v56 }
 0x134   :  { %v336_v60 = vsel %vm335_vm8, %v2208_v47, %v332_v58 }
 0x135   :  { %v341_v62 = vsel %vm338_vm9, %v340_v59, %v336_v60 }
 0x136   :  { %v350_v63 = vmul.f32 %v346_v61, %v341_v62 }
 0x138   :  { %355 = vrot.lane.b32.xlu0 %v350_v63, %s2427_s20 }
 0x18a   :  { %v354_v0 = vpop.permute.xlu2 %353 }
 0x18b   :  { %v359_v1 = vadd.f32 %v354_v0, %v2519_v24  ;;  %v2560_v24 = vld [vmem:[#allocation2 + $0x8] sm:$0xff] }
 0x18c   :  { %v212_v26 = vadd.f32 %v186_v23, %v2560_v24 }
 0x18d   :  { %2209 = vtanh.f32 %v359_v1 }
 0x193   :  { %v2210_v2 = vpop.eup %2209 }
 0x194   :  { %v363_v3 = vsub.f32 0.0, %v2210_v2 }
 0x196   :  { %367 = vrot.lane.b32.xlu1 %v363_v3, %s2428_s21 }
 0x1aa   :  { %v356_v11 = vpop.permute.xlu0 %355 }
 0x1ab   :  { %v360_v12 = vadd.f32 %v356_v11, %v2522_v28  ;;  %v2138_v28 = vmul.f32 -1.442695, %v212_v26 }
 0x1ad   :  { %2211 = vtanh.f32 %v360_v12 }
 0x1ae   :  { %2213 = vpow2.f32 %v2138_v28 }
 0x1af   :  { %2215 = vpow2.f32 %v2137_v29 }
 0x1b3   :  { %v2212_v13 = vpop.eup %2211 }
 0x1b4   :  { %v364_v14 = vsub.f32 0.0, %v2212_v13  ;;  %v2214_v30 = vpop.eup %2213 }
 0x1b5   :  { %v2216_v31 = vpop.eup %2215  ;;  %v220_v32 = vadd.f32 1.0, %v2214_v30 }
 0x1b6   :  { %369 = vrot.lane.b32.xlu2 %v364_v14, %s2428_s21  ;;  %v219_v34 = vadd.f32 1.0, %v2216_v31 }
 0x1b7   :  { %2217 = vrcp.f32 %v220_v32  ;;  %vm241_vm10 = vweird.f32 %v220_v32  ;;  %v247_v45 = vand.u32 2147483648, %v220_v32  ;;  %v245_v49 = vand.u32 2147483647, %v220_v32 }
 0x1b8   :  { %2219 = vrcp.f32 %v219_v34  ;;  %vm226_vm12 = vweird.f32 %v219_v34  ;;  %v232_v50 = vand.u32 2147483648, %v219_v34 }
 0x1b9   :  { %v248_v54 = vor.u32 1.1754944e-38, %v247_v45  ;;  %vm246_vm2 = vcmp.eq.f32.partialorder %v245_v49, 8.507059e+37  ;;  %v28_v49 = vld [vmem:[%s3194_s0 + $0x18] sm:$0xff] }
 0x1ba   :  { %v233_v56 = vor.u32 1.1754944e-38, %v232_v50 }
 0x1bd   :  { %v2218_v35 = vpop.eup %2217 }
 0x1be   :  { %v2220_v36 = vpop.eup %2219  ;;  %v237_v37 = vmul.f32 %v2218_v35, %v220_v32  ;;  %vm242_vm11 = vweird.f32 %v2218_v35 }
 0x1bf   :  { %v222_v38 = vmul.f32 %v2220_v36, %v219_v34  ;;  %vm227_vm13 = vweird.f32 %v2220_v36  ;;  %vm243_vm14 = vmor %vm241_vm10, %vm242_vm11 }
 0x1c0   :  { %v238_v39 = vsub.f32 1.0, %v237_v37  ;;  %vm228_vm15 = vmor %vm226_vm12, %vm227_vm13 }
 0x1c1   :  { %v223_v40 = vsub.f32 1.0, %v222_v38 }
 0x1c2   :  { %v239_v41 = vmul.f32 %v2218_v35, %v238_v39 }
 0x1c3   :  { %v224_v43 = vmul.f32 %v2220_v36, %v223_v40 }
 0x1c4   :  { %v240_v48 = vadd.f32 %v2218_v35, %v239_v41 }
 0x1c5   :  { %v225_v51 = vadd.f32 %v2220_v36, %v224_v43  ;;  %v412_v43 = vld [vmem:[#allocation2 + $0x68] sm:$0xff] }
 0x1c6   :  { %v244_v55 = vsel %vm243_vm14, %v2218_v35, %v240_v48  ;;  %v27_v48 = vld [vmem:[%s3194_s0 + $0x10] sm:$0xff] }
 0x1c7   :  { %v229_v57 = vsel %vm228_vm15, %v2220_v36, %v225_v51  ;;  %v249_v60 = vsel %vm246_vm2, %v248_v54, %v244_v55  ;;  %v42_v51 = vpack.c.bf16 %v28_v49, %v27_v48 }
 0x1c9   :  { %2122 = vmatmul.msk.bf16.gmra.mxu0 %vm61_vm0, %v42_v51 }
 0x208   :  { %v368_v15 = vpop.permute.xlu1 %367 }
 0x209   :  { %v373_v16 = vmul.f32 %v368_v15, %v326_v52  ;;  %v230_v52 = vand.u32 2147483647, %v219_v34 }
 0x20b   :  { %377 = vrot.lane.b32.xlu0 %v373_v16, %s2426_s13  ;;  %vm231_vm3 = vcmp.eq.f32.partialorder %v230_v52, 8.507059e+37 }
 0x210   :  { %v370_v19 = vpop.permute.xlu2 %369 }
 0x211   :  { %v374_v21 = vmul.f32 %v370_v19, %v341_v62  ;;  %v234_v62 = vsel %vm231_vm3, %v233_v56, %v229_v57 }
 0x213   :  { %253 = vrot.lane.b32.xlu0 %v184_v20, %s2429_s22  ;;  %379 = vrot.lane.b32.xlu1 %v374_v21, %s2426_s13  ;;  %v2585_v21 = vld [vmem:[#allocation2 + $0x60] sm:$0xff] }
 0x21b   :  { %255 = vrot.lane.b32.xlu1 %v186_v23, %s2429_s22 }
 0x27d   :  { %v378_v42 = vpop.permute.xlu0 %377 }
 0x27e   :  { %v2563_v46 = vadd.f32 %v2210_v2, %v378_v42 }
 0x285   :  { %v380_v44 = vpop.permute.xlu1 %379  ;;  %v254_v58 = vpop.permute.xlu0 %253 }
 0x286   :  { %v2565_v47 = vadd.f32 %v2212_v13, %v380_v44  ;;  %v259_v63 = vmul.f32 %v254_v58, %v234_v62 }
 0x288   :  { %v434_v53 = vpack.c.bf16 %v2565_v47, %v2563_v46 }
 0x28a   :  { %436 = vrot.lane.b32.xlu2 %v434_v53, %s2425_s4 }
 0x28d   :  { %v256_v59 = vpop.permute.xlu1 %255 }
 0x28e   :  { %v260_v61 = vmul.f32 %v256_v59, %v249_v60 }
 0x290   :  { %265 = vrot.lane.b32.xlu0 %v260_v61, %s2427_s20 }
 0x292   :  { %263 = vrot.lane.b32.xlu2 %v259_v63, %s2427_s20 }
 0x2e4   :  { %v437_v0 = vpop.permute.xlu2 %436 }
 0x2e5   :  { %2142 = vmatmul.msk.bf16.vlgmr.msrb.gmra.mxu1 %vm61_vm0, %v437_v0 }
 0x2e6   :  { %1178 = vmatpush.bf16.msrb.mxu1 %v2481_v4 }
 0x2ec   :  { %v264_v1 = vpop.permute.xlu2 %263 }
 0x2ed   :  { %v269_v2 = vadd.f32 %v264_v1, %v157_v25 }
 0x2ef   :  { %2221 = vtanh.f32 %v269_v2 }
 0x2f5   :  { %v2222_v3 = vpop.eup %2221 }
 0x2f6   :  { %v273_v6 = vsub.f32 0.0, %v2222_v3 }
 0x2f8   :  { %277 = vrot.lane.b32.xlu1 %v273_v6, %s2428_s21 }
 0x302   :  { %v266_v7 = vpop.permute.xlu0 %265 }
 0x303   :  { %v270_v8 = vadd.f32 %v266_v7, %v2560_v24 }
 0x305   :  { %2223 = vtanh.f32 %v270_v8 }
 0x30b   :  { %v2224_v9 = vpop.eup %2223 }
 0x30c   :  { %v274_v11 = vsub.f32 0.0, %v2224_v9 }
 0x30e   :  { %279 = vrot.lane.b32.xlu2 %v274_v11, %s2428_s21 }
 0x362   :  { %v450_v12 = vpop.f32.mrf.mxu1 }
 0x363   :  { %v451_v13 = vadd.f32 %v450_v12, %v2509_v17 }
 0x365   :  { %541 = vrot.lane.b32.xlu2 %v451_v13, %s2425_s4 }
 0x368   :  { %v280_v14 = vpop.permute.xlu2 %279 }
 0x369   :  { %v284_v15 = vmul.f32 %v280_v14, %v249_v60  ;;  %v100_v14 = vpop.f32.mrf.mxu0 }
 0x36a   :  { %v278_v16 = vpop.permute.xlu1 %277  ;;  %v452_v19 = vpop.f32.mrf.mxu1 }
 0x36b   :  { %v283_v18 = vmul.f32 %v278_v16, %v234_v62  ;;  %289 = vrot.lane.b32.xlu1 %v284_v15, %s2426_s13  ;;  %v453_v20 = vadd.f32 %v452_v19, %v2509_v17  ;;  %v101_v15 = vadd.f32 %v2501_v10, %v100_v14  ;;  %v29_v14 = vld [vmem:[%s3194_s0 + $0x20] sm:$0xff] }
 0x36d   :  { %587 = vrot.lane.b32.xlu2 %v451_v13, %s2426_s13  ;;  %287 = vrot.lane.b32.xlu0 %v283_v18, %s2426_s13  ;;  %138 = vst.msk [vmem:[#allocation2 + $0x10] sm:$0xff] %vm135_vm1, %v101_v15  ;;  %v30_v15 = vld [vmem:[%s3194_s0 + $0x28] sm:$0xff] }
 0x371   :  { %v102_v19 = vpop.f32.mrf.mxu0 }
 0x375   :  { %543 = vrot.lane.b32.xlu0 %v453_v20, %s2425_s4 }
 0x37d   :  { %589 = vrot.lane.b32.xlu0 %v453_v20, %s2426_s13  ;;  %v103_v20 = vadd.f32 %v2501_v10, %v102_v19 }
 0x37f   :  { %139 = vst.msk [vmem:[#allocation2 + $0x18] sm:$0xff] %vm135_vm1, %v103_v20 }
 0x3bf   :  { %v542_v22 = vpop.permute.xlu2 %541 }
 0x3c0   :  { %v547_v23 = vadd.f32 %v542_v22, %v2585_v21 }
 0x3c2   :  { %v2145_v24 = vmul.f32 -1.442695, %v547_v23 }
 0x3c4   :  { %2225 = vpow2.f32 %v2145_v24 }
 0x3c7   :  { %v588_v50 = vpop.permute.xlu2 %587 }
 0x3ca   :  { %v2226_v25 = vpop.eup %2225 }
 0x3cb   :  { %v555_v26 = vadd.f32 1.0, %v2226_v25 }
 0x3cd   :  { %2227 = vrcp.f32 %v555_v26  ;;  %v568_v37 = vand.u32 2147483648, %v555_v26  ;;  %vm562_vm5 = vweird.f32 %v555_v26  ;;  %v566_v38 = vand.u32 2147483647, %v555_v26 }
 0x3cf   :  { %v569_v41 = vor.u32 1.1754944e-38, %v568_v37  ;;  %vm567_vm7 = vcmp.eq.f32.partialorder %v566_v38, 8.507059e+37 }
 0x3d3   :  { %v2228_v27 = vpop.eup %2227 }
 0x3d4   :  { %v558_v28 = vmul.f32 %v2228_v27, %v555_v26  ;;  %vm563_vm4 = vweird.f32 %v2228_v27 }
 0x3d5   :  { %vm564_vm6 = vmor %vm562_vm5, %vm563_vm4 }
 0x3d6   :  { %v559_v29 = vsub.f32 1.0, %v558_v28 }
 0x3d8   :  { %v560_v30 = vmul.f32 %v2228_v27, %v559_v29  ;;  %v409_v29 = vld [vmem:[#allocation2 + $0x18] sm:$0xff] }
 0x3da   :  { %v561_v34 = vadd.f32 %v2228_v27, %v560_v30  ;;  %v2621_v30 = vld [vmem:[#allocation2 + $0x10] sm:$0xff] }
 0x3dc   :  { %v565_v40 = vsel %vm564_vm6, %v2228_v27, %v561_v34 }
 0x3dd   :  { %v290_v31 = vpop.permute.xlu1 %289  ;;  %v570_v42 = vsel %vm567_vm7, %v569_v41, %v565_v40 }
 0x3de   :  { %v2588_v35 = vadd.f32 %v2224_v9, %v290_v31  ;;  %v593_v52 = vmul.f32 %v588_v50, %v570_v42 }
 0x3df   :  { %v288_v32 = vpop.permute.xlu0 %287 }
 0x3e0   :  { %v2590_v36 = vadd.f32 %v2222_v3, %v288_v32 }
 0x3e2   :  { %v413_v39 = vpack.c.bf16 %v2588_v35, %v2590_v36 }
 0x3e4   :  { %415 = vrot.lane.b32.xlu1 %v413_v39, %s2429_s22 }
 0x3e7   :  { %v544_v44 = vpop.permute.xlu0 %543 }
 0x3e8   :  { %v548_v45 = vadd.f32 %v544_v44, %v412_v43 }
 0x3ea   :  { %v2146_v53 = vmul.f32 -1.442695, %v548_v45 }
 0x3ec   :  { %2229 = vpow2.f32 %v2146_v53  ;;  %597 = vrot.lane.b32.xlu1 %v593_v52, %s2427_s20 }
 0x3ef   :  { %v590_v2 = vpop.permute.xlu0 %589 }
 0x3f2   :  { %v2230_v54 = vpop.eup %2229 }
 0x3f3   :  { %v556_v55 = vadd.f32 1.0, %v2230_v54 }
 0x3f5   :  { %2231 = vrcp.f32 %v556_v55  ;;  %v583_v59 = vand.u32 2147483648, %v556_v55  ;;  %v581_v61 = vand.u32 2147483647, %v556_v55  ;;  %vm577_vm9 = vweird.f32 %v556_v55 }
 0x3f7   :  { %v584_v63 = vor.u32 1.1754944e-38, %v583_v59  ;;  %vm582_vm11 = vcmp.eq.f32.partialorder %v581_v61, 8.507059e+37 }
 0x3fb   :  { %v2232_v56 = vpop.eup %2231 }
 0x3fc   :  { %v573_v57 = vmul.f32 %v2232_v56, %v556_v55  ;;  %vm578_vm8 = vweird.f32 %v2232_v56 }
 0x3fd   :  { %vm579_vm10 = vmor %vm577_vm9, %vm578_vm8 }
 0x3fe   :  { %v574_v58 = vsub.f32 1.0, %v573_v57 }
 0x400   :  { %v575_v60 = vmul.f32 %v2232_v56, %v574_v58 }
 0x402   :  { %v576_v62 = vadd.f32 %v2232_v56, %v575_v60 }
 0x404   :  { %v580_v0 = vsel %vm579_vm10, %v2232_v56, %v576_v62 }
 0x405   :  { %v585_v1 = vsel %vm582_vm11, %v584_v63, %v580_v0 }
 0x406   :  { %v594_v3 = vmul.f32 %v590_v2, %v585_v1 }
 0x408   :  { %599 = vrot.lane.b32.xlu2 %v594_v3, %s2427_s20 }
 0x456   :  { %v416_v6 = vpop.permute.xlu1 %415 }
 0x457   :  { %2141 = vmatmul.msk.bf16.vlgmr.msrb.gmra.mxu3 %vm61_vm0, %v416_v6 }
 0x458   :  { %1157 = vmatpush.bf16.msrb.mxu3 %v2534_v33 }
 0x45e   :  { %v598_v7 = vpop.permute.xlu1 %597 }
 0x45f   :  { %v603_v8 = vadd.f32 %v598_v7, %v2585_v21 }
 0x461   :  { %2233 = vtanh.f32 %v603_v8 }
 0x462   :  { %v600_v9 = vpop.permute.xlu2 %599 }
 0x463   :  { %v604_v11 = vadd.f32 %v600_v9, %v412_v43 }
 0x465   :  { %2235 = vtanh.f32 %v604_v11 }
 0x467   :  { %v2234_v12 = vpop.eup %2233 }
 0x468   :  { %v607_v13 = vsub.f32 %v2563_v46, %v2234_v12 }
 0x46a   :  { %611 = vrot.lane.b32.xlu0 %v607_v13, %s2428_s21 }
 0x46b   :  { %v2236_v16 = vpop.eup %2235 }
 0x46c   :  { %v608_v18 = vsub.f32 %v2565_v47, %v2236_v16 }
 0x46e   :  { %613 = vrot.lane.b32.xlu1 %v608_v18, %s2428_s21 }
 0x4da   :  { %v429_v21 = vpop.f32.mrf.mxu3 }
 0x4db   :  { %v430_v26 = vadd.f32 %v2486_v5, %v429_v21  ;;  %v31_v21 = vld [vmem:[%s3194_s0 + $0x30] sm:$0xff] }
 0x4dc   :  { %v612_v22 = vpop.permute.xlu0 %611 }
 0x4dd   :  { %v617_v23 = vmul.f32 %v612_v22, %v570_v42  ;;  %v455_v32 = vadd.f32 %v430_v26, %v2621_v30  ;;  %v32_v22 = vld [vmem:[%s3194_s0 + $0x38] sm:$0xff] }
 0x4df   :  { %621 = vrot.lane.b32.xlu2 %v617_v23, %s2426_s13  ;;  %v2143_v37 = vmul.f32 -1.442695, %v455_v32  ;;  %v44_v23 = vpack.c.bf16 %v32_v22, %v31_v21 }
 0x4e0   :  { %v614_v24 = vpop.permute.xlu1 %613 }
 0x4e1   :  { %v618_v25 = vmul.f32 %v614_v24, %v585_v1 }
 0x4e2   :  { %v431_v27 = vpop.f32.mrf.mxu3 }
 0x4e3   :  { %623 = vrot.lane.b32.xlu0 %v618_v25, %s2426_s13  ;;  %v432_v28 = vadd.f32 %v2486_v5, %v431_v27  ;;  %v34_v27 = vld [vmem:[%s3194_s0 + $0x48] sm:$0xff] }
 0x4e5   :  { %v456_v31 = vadd.f32 %v432_v28, %v409_v29 }
 0x4e7   :  { %497 = vrot.lane.b32.xlu2 %v430_v26, %s2429_s22  ;;  %v2144_v34 = vmul.f32 -1.442695, %v456_v31  ;;  %v33_v26 = vld [vmem:[%s3194_s0 + $0x40] sm:$0xff] }
 0x4e8   :  { %v45_v31 = vpack.c.bf16 %v34_v27, %v33_v26 }
 0x4e9   :  { %2237 = vpow2.f32 %v2144_v34 }
 0x4ea   :  { %2239 = vpow2.f32 %v2143_v37 }
 0x4eb   :  { %499 = vrot.lane.b32.xlu0 %v432_v28, %s2429_s22 }
 0x4ef   :  { %v2238_v38 = vpop.eup %2237 }
 0x4f0   :  { %v2240_v39 = vpop.eup %2239  ;;  %v464_v40 = vadd.f32 1.0, %v2238_v38 }
 0x4f1   :  { %v463_v41 = vadd.f32 1.0, %v2240_v39 }
 0x4f2   :  { %2241 = vrcp.f32 %v464_v40  ;;  %v491_v57 = vand.u32 2147483648, %v464_v40  ;;  %vm485_vm14 = vweird.f32 %v464_v40  ;;  %v489_v60 = vand.u32 2147483647, %v464_v40 }
 0x4f3   :  { %2243 = vrcp.f32 %v463_v41  ;;  %v476_v61 = vand.u32 2147483648, %v463_v41  ;;  %vm470_vm2 = vweird.f32 %v463_v41  ;;  %v474_v62 = vand.u32 2147483647, %v463_v41 }
 0x4f4   :  { %v492_v0 = vor.u32 1.1754944e-38, %v491_v57  ;;  %vm490_vm4 = vcmp.eq.f32.partialorder %v489_v60, 8.507059e+37 }
 0x4f5   :  { %v477_v2 = vor.u32 1.1754944e-38, %v476_v61  ;;  %vm475_vm5 = vcmp.eq.f32.partialorder %v474_v62, 8.507059e+37 }
 0x4f8   :  { %v2242_v42 = vpop.eup %2241 }
 0x4f9   :  { %v2244_v43 = vpop.eup %2243  ;;  %v481_v44 = vmul.f32 %v2242_v42, %v464_v40  ;;  %vm486_vm12 = vweird.f32 %v2242_v42 }
 0x4fa   :  { %v466_v45 = vmul.f32 %v2244_v43, %v463_v41  ;;  %vm471_vm13 = vweird.f32 %v2244_v43  ;;  %vm487_vm15 = vmor %vm485_vm14, %vm486_vm12 }
 0x4fb   :  { %v482_v48 = vsub.f32 1.0, %v481_v44  ;;  %vm472_vm3 = vmor %vm470_vm2, %vm471_vm13 }
 0x4fc   :  { %v467_v49 = vsub.f32 1.0, %v466_v45 }
 0x4fd   :  { %v483_v50 = vmul.f32 %v2242_v42, %v482_v48 }
 0x4fe   :  { %v468_v52 = vmul.f32 %v2244_v43, %v467_v49 }
 0x4ff   :  { %v484_v56 = vadd.f32 %v2242_v42, %v483_v50 }
 0x500   :  { %v469_v58 = vadd.f32 %v2244_v43, %v468_v52 }
 0x501   :  { %v488_v63 = vsel %vm487_vm15, %v2242_v42, %v484_v56 }
 0x502   :  { %v473_v1 = vsel %vm472_vm3, %v2244_v43, %v469_v58  ;;  %v493_v6 = vsel %vm490_vm4, %v492_v0, %v488_v63 }
 0x503   :  { %v478_v9 = vsel %vm475_vm5, %v477_v2, %v473_v1 }
 0x539   :  { %v622_v51 = vpop.permute.xlu2 %621 }
 0x53a   :  { %v2624_v54 = vadd.f32 %v2234_v12, %v622_v51 }
 0x541   :  { %v498_v3 = vpop.permute.xlu2 %497 }
 0x542   :  { %v503_v11 = vmul.f32 %v498_v3, %v478_v9 }
 0x555   :  { %v624_v53 = vpop.permute.xlu0 %623 }
 0x556   :  { %v2626_v55 = vadd.f32 %v2236_v16, %v624_v53  ;;  %v43_v16 = vpack.c.bf16 %v30_v15, %v29_v14 }
 0x558   :  { %v678_v59 = vpack.c.bf16 %v2626_v55, %v2624_v54  ;;  %2123 = vmatmul.msk.bf16.gmra.mxu0 %vm61_vm0, %v43_v16 }
 0x55a   :  { %680 = vrot.lane.b32.xlu1 %v678_v59, %s2425_s4 }
 0x55d   :  { %v500_v7 = vpop.permute.xlu0 %499 }
 0x55e   :  { %v504_v8 = vmul.f32 %v500_v7, %v493_v6 }
 0x560   :  { %509 = vrot.lane.b32.xlu2 %v504_v8, %s2427_s20 }
 0x562   :  { %507 = vrot.lane.b32.xlu1 %v503_v11, %s2427_s20 }
 0x568   :  { %2124 = vmatmul.msk.bf16.gmra.mxu0 %vm61_vm0, %v44_v23 }
 0x578   :  { %2125 = vmatmul.msk.bf16.gmra.mxu0 %vm61_vm0, %v45_v31 }
 0x5ba   :  { %v510_v12 = vpop.permute.xlu2 %509 }
 0x5bb   :  { %v514_v13 = vadd.f32 %v510_v12, %v409_v29 }
 0x5bd   :  { %2245 = vtanh.f32 %v514_v13 }
 0x5c3   :  { %v2639_v18 = vpop.eup %2245 }
 0x5c4   :  { %v518_v19 = vsub.f32 %v2588_v35, %v2639_v18 }
 0x5c6   :  { %523 = vrot.lane.b32.xlu1 %v518_v19, %s2428_s21 }
 0x5cc   :  { %v681_v20 = vpop.permute.xlu1 %680 }
 0x5cd   :  { %2148 = vmatmul.msk.bf16.vlgmr.msra.gmra.mxu3 %vm61_vm0, %v681_v20 }
 0x5ce   :  { %1418 = vmatpush.bf16.msra.mxu3 %v2481_v4  ;;  %v35_v4 = vld [vmem:[%s3194_s0 + $0x50] sm:$0xff] }
 0x5d4   :  { %v508_v24 = vpop.permute.xlu1 %507 }
 0x5d5   :  { %v513_v25 = vadd.f32 %v508_v24, %v2621_v30  ;;  %v36_v30 = vld [vmem:[%s3194_s0 + $0x58] sm:$0xff]  ;;  %v105_v38 = vpop.f32.mrf.mxu0 }
 0x5d6   :  { %v46_v32 = vpack.c.bf16 %v36_v30, %v35_v4  ;;  %v106_v39 = vadd.f32 %v2501_v10, %v105_v38 }
 0x5d7   :  { %2247 = vtanh.f32 %v513_v25 }
 0x5d8   :  { %2126 = vmatmul.msk.bf16.gmra.mxu0 %vm61_vm0, %v46_v32  ;;  %140 = vst.msk [vmem:[#allocation2 + $0x20] sm:$0xff] %vm135_vm1, %v106_v39 }
 0x5dd   :  { %v2248_v28 = vpop.eup %2247  ;;  %v107_v40 = vpop.f32.mrf.mxu0 }
 0x5de   :  { %v517_v29 = vsub.f32 %v2590_v36, %v2248_v28  ;;  %v108_v41 = vadd.f32 %v2501_v10, %v107_v40 }
 0x5e0   :  { %521 = vrot.lane.b32.xlu0 %v517_v29, %s2428_s21  ;;  %141 = vst.msk [vmem:[#allocation2 + $0x28] sm:$0xff] %vm135_vm1, %v108_v41 }
 0x5e5   :  { %v110_v45 = vpop.f32.mrf.mxu0 }
 0x5e6   :  { %v111_v48 = vadd.f32 %v2501_v10, %v110_v45 }
 0x5e8   :  { %142 = vst.msk [vmem:[#allocation2 + $0x30] sm:$0xff] %vm135_vm1, %v111_v48 }
 0x5ed   :  { %v112_v52 = vpop.f32.mrf.mxu0 }
 0x5ee   :  { %v113_v53 = vadd.f32 %v2501_v10, %v112_v52 }
 0x5f0   :  { %143 = vst.msk [vmem:[#allocation2 + $0x38] sm:$0xff] %vm135_vm1, %v113_v53 }
 0x5f5   :  { %v115_v56 = vpop.f32.mrf.mxu0 }
 0x5f6   :  { %v116_v57 = vadd.f32 %v2501_v10, %v115_v56 }
 0x5f8   :  { %144 = vst.msk [vmem:[#allocation2 + $0x40] sm:$0xff] %vm135_vm1, %v116_v57 }
 0x5fd   :  { %v117_v58 = vpop.f32.mrf.mxu0 }
 0x5fe   :  { %v118_v59 = vadd.f32 %v2501_v10, %v117_v58 }
 0x600   :  { %145 = vst.msk [vmem:[#allocation2 + $0x48] sm:$0xff] %vm135_vm1, %v118_v59 }
 0x638   :  { %v524_v34 = vpop.permute.xlu1 %523 }
 0x639   :  { %v528_v37 = vmul.f32 %v524_v34, %v493_v6 }
 0x63b   :  { %533 = vrot.lane.b32.xlu0 %v528_v37, %s2426_s13 }
 0x650   :  { %v694_v42 = vpop.f32.mrf.mxu3 }
 0x651   :  { %v695_v51 = vadd.f32 %v694_v42, %v2509_v17 }
 0x652   :  { %v522_v43 = vpop.permute.xlu0 %521 }
 0x653   :  { %v527_v44 = vmul.f32 %v522_v43, %v478_v9 }
 0x655   :  { %531 = vrot.lane.b32.xlu2 %v527_v44, %s2426_s13  ;;  %v120_v60 = vpop.f32.mrf.mxu0 }
 0x656   :  { %v121_v61 = vadd.f32 %v2501_v10, %v120_v60 }
 0x658   :  { %v696_v49 = vpop.f32.mrf.mxu3  ;;  %146 = vst.msk [vmem:[#allocation2 + $0x50] sm:$0xff] %vm135_vm1, %v121_v61 }
 0x659   :  { %v697_v50 = vadd.f32 %v696_v49, %v2509_v17 }
 0x65b   :  { %787 = vrot.lane.b32.xlu0 %v697_v50, %s2425_s4 }
 0x65d   :  { %785 = vrot.lane.b32.xlu2 %v695_v51, %s2425_s4  ;;  %v122_v62 = vpop.f32.mrf.mxu0 }
 0x65e   :  { %v123_v63 = vadd.f32 %v2501_v10, %v122_v62  ;;  %v2714_v62 = vld [vmem:[#allocation2 + $0x20] sm:$0xff] }
 0x65f   :  { %v655_v27 = vld [vmem:[#allocation2 + $0x50] sm:$0xff] }
 0x660   :  { %147 = vst.msk [vmem:[#allocation2 + $0x58] sm:$0xff] %vm135_vm1, %v123_v63 }
 0x665   :  { %833 = vrot.lane.b32.xlu2 %v697_v50, %s2426_s13 }
 0x667   :  { %v656_v7 = vld [vmem:[#allocation2 + $0x58] sm:$0xff] }
 0x6ad   :  { %v534_v0 = vpop.permute.xlu0 %533 }
 0x6ae   :  { %v2695_v2 = vadd.f32 %v2639_v18, %v534_v0 }
 0x6af   :  { %v532_v1 = vpop.permute.xlu2 %531 }
 0x6b0   :  { %v2697_v3 = vadd.f32 %v2248_v28, %v532_v1 }
 0x6b2   :  { %v657_v6 = vpack.c.bf16 %v2695_v2, %v2697_v3 }
 0x6b4   :  { %659 = vrot.lane.b32.xlu1 %v657_v6, %s2429_s22 }
 0x6b7   :  { %v786_v14 = vpop.permute.xlu2 %785 }
 0x6b8   :  { %v791_v28 = vadd.f32 %v786_v14, %v655_v27 }
 0x6ba   :  { %v2151_v29 = vmul.f32 -1.442695, %v791_v28 }
 0x6bc   :  { %831 = vrot.lane.b32.xlu1 %v695_v51, %s2426_s13 }
 0x6bf   :  { %v834_v24 = vpop.permute.xlu2 %833 }
 0x6cd   :  { %v788_v8 = vpop.permute.xlu0 %787 }
 0x6ce   :  { %v792_v9 = vadd.f32 %v788_v8, %v656_v7 }
 0x6d0   :  { %v2152_v10 = vmul.f32 -1.442695, %v792_v9 }
 0x6d2   :  { %2249 = vpow2.f32 %v2152_v10 }
 0x6d8   :  { %v2250_v11 = vpop.eup %2249 }
 0x6d9   :  { %v800_v12 = vadd.f32 1.0, %v2250_v11 }
 0x6db   :  { %2251 = vrcp.f32 %v800_v12  ;;  %v827_v18 = vand.u32 2147483648, %v800_v12  ;;  %v825_v20 = vand.u32 2147483647, %v800_v12  ;;  %vm821_vm6 = vweird.f32 %v800_v12 }
 0x6dc   :  { %2253 = vpow2.f32 %v2151_v29 }
 0x6dd   :  { %v828_v22 = vor.u32 1.1754944e-38, %v827_v18  ;;  %vm826_vm8 = vcmp.eq.f32.partialorder %v825_v20, 8.507059e+37 }
 0x6e1   :  { %v2252_v13 = vpop.eup %2251 }
 0x6e2   :  { %v817_v15 = vmul.f32 %v2252_v13, %v800_v12  ;;  %vm822_vm1 = vweird.f32 %v2252_v13  ;;  %v2254_v31 = vpop.eup %2253  ;;  %v2721_v12 = vld [vmem:[%s3199_s5] ss:$0 sm:$0xff] }
 0x6e3   :  { %vm823_vm7 = vmor %vm821_vm6, %vm822_vm1  ;;  %v799_v4 = vadd.f32 1.0, %v2254_v31 }
 0x6e4   :  { %v818_v16 = vsub.f32 1.0, %v817_v15 }
 0x6e5   :  { %2255 = vrcp.f32 %v799_v4  ;;  %v812_v40 = vand.u32 2147483648, %v799_v4  ;;  %vm806_vm10 = vweird.f32 %v799_v4  ;;  %v810_v41 = vand.u32 2147483647, %v799_v4 }
 0x6e6   :  { %v819_v19 = vmul.f32 %v2252_v13, %v818_v16 }
 0x6e7   :  { %v813_v43 = vor.u32 1.1754944e-38, %v812_v40  ;;  %vm811_vm12 = vcmp.eq.f32.partialorder %v810_v41, 8.507059e+37 }
 0x6e8   :  { %v820_v21 = vadd.f32 %v2252_v13, %v819_v19 }
 0x6ea   :  { %v824_v23 = vsel %vm823_vm7, %v2252_v13, %v820_v21 }
 0x6eb   :  { %v829_v25 = vsel %vm826_vm8, %v828_v22, %v824_v23  ;;  %v2256_v30 = vpop.eup %2255 }
 0x6ec   :  { %v838_v26 = vmul.f32 %v834_v24, %v829_v25  ;;  %v802_v32 = vmul.f32 %v2256_v30, %v799_v4  ;;  %vm807_vm9 = vweird.f32 %v2256_v30  ;;  %v2726_v24 = vld [vmem:[#allocation2 + $0x28] sm:$0xff] }
 0x6ed   :  { %vm808_vm11 = vmor %vm806_vm10, %vm807_vm9 }
 0x6ee   :  { %843 = vrot.lane.b32.xlu1 %v838_v26, %s2427_s20  ;;  %v803_v34 = vsub.f32 1.0, %v802_v32 }
 0x6f0   :  { %v804_v37 = vmul.f32 %v2256_v30, %v803_v34 }
 0x6f2   :  { %v805_v39 = vadd.f32 %v2256_v30, %v804_v37 }
 0x6f4   :  { %v809_v42 = vsel %vm808_vm11, %v2256_v30, %v805_v39 }
 0x6f5   :  { %v814_v45 = vsel %vm811_vm12, %v813_v43, %v809_v42 }
 0x726   :  { %v660_v38 = vpop.permute.xlu1 %659 }
 0x727   :  { %2147 = vmatmul.msk.bf16.vlgmr.msra.gmra.mxu2 %vm61_vm0, %v660_v38 }
 0x728   :  { %1397 = vmatpush.bf16.msra.mxu2 %v2534_v33 }
 0x72e   :  { %v832_v44 = vpop.permute.xlu1 %831 }
 0x72f   :  { %v837_v48 = vmul.f32 %v832_v44, %v814_v45 }
 0x731   :  { %841 = vrot.lane.b32.xlu0 %v837_v48, %s2427_s20 }
 0x760   :  { %v844_v49 = vpop.permute.xlu1 %843 }
 0x761   :  { %v848_v50 = vadd.f32 %v844_v49, %v656_v7 }
 0x763   :  { %2257 = vtanh.f32 %v848_v50 }
 0x769   :  { %v2258_v51 = vpop.eup %2257 }
 0x76a   :  { %v852_v52 = vsub.f32 %v2626_v55, %v2258_v51 }
 0x76c   :  { %857 = vrot.lane.b32.xlu0 %v852_v52, %s2428_s21 }
 0x7a3   :  { %v842_v33 = vpop.permute.xlu0 %841 }
 0x7a4   :  { %v847_v53 = vadd.f32 %v842_v33, %v655_v27 }
 0x7a6   :  { %2259 = vtanh.f32 %v847_v53 }
 0x7aa   :  { %v673_v56 = vpop.f32.mrf.mxu2 }
 0x7ab   :  { %v674_v57 = vadd.f32 %v2486_v5, %v673_v56  ;;  %v2744_v56 = vld [vmem:[%s3197_s3] sm:$0xff] }
 0x7ac   :  { %v2260_v58 = vpop.eup %2259 }
 0x7ad   :  { %741 = vrot.lane.b32.xlu0 %v674_v57, %s2429_s22  ;;  %v851_v59 = vsub.f32 %v2624_v54, %v2260_v58  ;;  %v699_v63 = vadd.f32 %v674_v57, %v2714_v62 }
 0x7af   :  { %855 = vrot.lane.b32.xlu2 %v851_v59, %s2428_s21  ;;  %v2149_v0 = vmul.f32 -1.442695, %v699_v63 }
 0x7b1   :  { %2261 = vpow2.f32 %v2149_v0 }
 0x7b2   :  { %v675_v10 = vpop.f32.mrf.mxu2 }
 0x7b3   :  { %v676_v13 = vadd.f32 %v2721_v12, %v675_v10 }
 0x7b7   :  { %v2262_v1 = vpop.eup %2261 }
 0x7b8   :  { %v707_v6 = vadd.f32 1.0, %v2262_v1 }
 0x7ba   :  { %2263 = vrcp.f32 %v707_v6  ;;  %v720_v16 = vand.u32 2147483648, %v707_v6  ;;  %vm714_vm14 = vweird.f32 %v707_v6  ;;  %v718_v18 = vand.u32 2147483647, %v707_v6 }
 0x7bc   :  { %v721_v20 = vor.u32 1.1754944e-38, %v720_v16  ;;  %vm719_vm2 = vcmp.eq.f32.partialorder %v718_v18, 8.507059e+37 }
 0x7c0   :  { %v2264_v5 = vpop.eup %2263 }
 0x7c1   :  { %v710_v9 = vmul.f32 %v2264_v5, %v707_v6  ;;  %vm715_vm13 = vweird.f32 %v2264_v5 }
 0x7c2   :  { %vm716_vm15 = vmor %vm714_vm14, %vm715_vm13 }
 0x7c3   :  { %v711_v11 = vsub.f32 1.0, %v710_v9 }
 0x7c5   :  { %v712_v14 = vmul.f32 %v2264_v5, %v711_v11 }
 0x7c7   :  { %v713_v15 = vadd.f32 %v2264_v5, %v712_v14 }
 0x7c9   :  { %v717_v19 = vsel %vm716_vm15, %v2264_v5, %v713_v15  ;;  %v2764_v15 = vld [vmem:[#allocation2 + $0x48] sm:$0xff] }
 0x7ca   :  { %v722_v21 = vsel %vm719_vm2, %v721_v20, %v717_v19 }
 0x7de   :  { %v858_v60 = vpop.permute.xlu0 %857 }
 0x7df   :  { %v862_v61 = vmul.f32 %v858_v60, %v829_v25  ;;  %v700_v25 = vadd.f32 %v676_v13, %v2726_v24 }
 0x7e1   :  { %867 = vrot.lane.b32.xlu2 %v862_v61, %s2426_s13  ;;  %v2150_v26 = vmul.f32 -1.442695, %v700_v25 }
 0x7e3   :  { %2265 = vpow2.f32 %v2150_v26 }
 0x7e9   :  { %v2266_v27 = vpop.eup %2265 }
 0x7ea   :  { %v708_v28 = vadd.f32 1.0, %v2266_v27 }
 0x7ec   :  { %2267 = vrcp.f32 %v708_v28  ;;  %v735_v40 = vand.u32 2147483648, %v708_v28  ;;  %vm729_vm4 = vweird.f32 %v708_v28  ;;  %v733_v42 = vand.u32 2147483647, %v708_v28 }
 0x7ee   :  { %v736_v44 = vor.u32 1.1754944e-38, %v735_v40  ;;  %vm734_vm1 = vcmp.eq.f32.partialorder %v733_v42, 8.507059e+37  ;;  %v2769_v40 = vld [vmem:[#allocation2 + $0x40] sm:$0xff] }
 0x7f2   :  { %v2268_v29 = vpop.eup %2267 }
 0x7f3   :  { %v725_v31 = vmul.f32 %v2268_v29, %v708_v28  ;;  %vm730_vm3 = vweird.f32 %v2268_v29 }
 0x7f4   :  { %vm731_vm5 = vmor %vm729_vm4, %vm730_vm3 }
 0x7f5   :  { %v726_v4 = vsub.f32 1.0, %v725_v31 }
 0x7f7   :  { %v727_v30 = vmul.f32 %v2268_v29, %v726_v4 }
 0x7f9   :  { %v728_v39 = vadd.f32 %v2268_v29, %v727_v30 }
 0x7fb   :  { %v732_v43 = vsel %vm731_vm5, %v2268_v29, %v728_v39 }
 0x809   :  { %v856_v7 = vpop.permute.xlu2 %855 }
 0x80a   :  { %v861_v8 = vmul.f32 %v856_v7, %v814_v45  ;;  %v737_v45 = vsel %vm734_vm1, %v736_v44, %v732_v43 }
 0x80c   :  { %865 = vrot.lane.b32.xlu1 %v861_v8, %s2426_s13 }
 0x814   :  { %743 = vrot.lane.b32.xlu1 %v676_v13, %s2429_s22 }
 0x81f   :  { %v742_v22 = vpop.permute.xlu0 %741 }
 0x820   :  { %v747_v23 = vmul.f32 %v742_v22, %v722_v21 }
 0x822   :  { %751 = vrot.lane.b32.xlu0 %v747_v23, %s2427_s20 }
 0x83b   :  { %v868_v32 = vpop.permute.xlu2 %867 }
 0x83c   :  { %v2729_v37 = vadd.f32 %v2258_v51, %v868_v32 }
 0x87e   :  { %v866_v34 = vpop.permute.xlu1 %865 }
 0x87f   :  { %v2731_v38 = vadd.f32 %v2260_v58, %v866_v34 }
 0x881   :  { %v922_v41 = vpack.c.bf16 %v2729_v37, %v2731_v38 }
 0x883   :  { %924 = vrot.lane.b32.xlu2 %v922_v41, %s2425_s4 }
 0x886   :  { %v744_v48 = vpop.permute.xlu1 %743 }
 0x887   :  { %v748_v49 = vmul.f32 %v744_v48, %v737_v45 }
 0x889   :  { %753 = vrot.lane.b32.xlu1 %v748_v49, %s2427_s20 }
 0x894   :  { %v752_v50 = vpop.permute.xlu0 %751 }
 0x895   :  { %v757_v51 = vadd.f32 %v752_v50, %v2714_v62 }
 0x897   :  { %2269 = vtanh.f32 %v757_v51 }
 0x89d   :  { %v2270_v52 = vpop.eup %2269 }
 0x89e   :  { %v761_v33 = vsub.f32 %v2697_v3, %v2270_v52 }
 0x8a0   :  { %765 = vrot.lane.b32.xlu2 %v761_v33, %s2428_s21 }
 0x8dd   :  { %v925_v53 = vpop.permute.xlu2 %924 }
 0x8de   :  { %2154 = vmatmul.msk.bf16.vlgmr.msrb.gmra.mxu2 %vm61_vm0, %v925_v53  ;;  %v2776_v53 = vld [vmem:[%s3196_s2] sm:$0xff] }
 0x8df   :  { %1658 = vmatpush.bf16.msrb.mxu2 %v2744_v56 }
 0x8fa   :  { %v766_v57 = vpop.permute.xlu2 %765 }
 0x8fb   :  { %v771_v58 = vmul.f32 %v766_v57, %v722_v21  ;;  %v754_v59 = vpop.permute.xlu1 %753 }
 0x8fc   :  { %v758_v60 = vadd.f32 %v754_v59, %v2726_v24 }
 0x8fd   :  { %775 = vrot.lane.b32.xlu1 %v771_v58, %s2426_s13 }
 0x8fe   :  { %2271 = vtanh.f32 %v758_v60 }
 0x904   :  { %v2272_v61 = vpop.eup %2271 }
 0x905   :  { %v762_v63 = vsub.f32 %v2695_v2, %v2272_v61 }
 0x907   :  { %767 = vrot.lane.b32.xlu0 %v762_v63, %s2428_s21 }
 0x961   :  { %v938_v0 = vpop.f32.mrf.mxu2 }
 0x962   :  { %v939_v1 = vadd.f32 %v938_v0, %v2509_v17 }
 0x964   :  { %1029 = vrot.lane.b32.xlu1 %v939_v1, %s2425_s4 }
 0x969   :  { %v940_v6 = vpop.f32.mrf.mxu2 }
 0x96a   :  { %v941_v5 = vadd.f32 %v940_v6, %v2509_v17 }
 0x96c   :  { %1077 = vrot.lane.b32.xlu1 %v941_v5, %s2426_s13 }
 0x96f   :  { %v776_v9 = vpop.permute.xlu1 %775 }
 0x970   :  { %v2757_v11 = vadd.f32 %v2270_v52, %v776_v9 }
 0x979   :  { %v768_v7 = vpop.permute.xlu0 %767 }
 0x97a   :  { %v772_v8 = vmul.f32 %v768_v7, %v737_v45 }
 0x97c   :  { %777 = vrot.lane.b32.xlu2 %v772_v8, %s2426_s13 }
 0x984   :  { %1031 = vrot.lane.b32.xlu2 %v941_v5, %s2425_s4 }
 0x9d6   :  { %v778_v10 = vpop.permute.xlu2 %777  ;;  %v1030_v23 = vpop.permute.xlu1 %1029 }
 0x9d7   :  { %v2759_v13 = vadd.f32 %v2272_v61, %v778_v10  ;;  %v1035_v41 = vadd.f32 %v1030_v23, %v2769_v40 }
 0x9d9   :  { %v901_v14 = vpack.c.bf16 %v2759_v13, %v2757_v11  ;;  %v2157_v42 = vmul.f32 -1.442695, %v1035_v41 }
 0x9db   :  { %903 = vrot.lane.b32.xlu0 %v901_v14, %s2429_s22 }
 0x9de   :  { %v1032_v16 = vpop.permute.xlu2 %1031  ;;  %v1078_v32 = vpop.permute.xlu1 %1077 }
 0x9df   :  { %v1036_v18 = vadd.f32 %v1032_v16, %v2764_v15 }
 0x9e1   :  { %v2158_v19 = vmul.f32 -1.442695, %v1036_v18 }
 0x9e3   :  { %2273 = vpow2.f32 %v2158_v19  ;;  %1075 = vrot.lane.b32.xlu0 %v939_v1, %s2426_s13 }
 0x9e9   :  { %v2274_v20 = vpop.eup %2273 }
 0x9ea   :  { %v1044_v21 = vadd.f32 1.0, %v2274_v20 }
 0x9ec   :  { %2275 = vrcp.f32 %v1044_v21  ;;  %v1071_v27 = vand.u32 2147483648, %v1044_v21  ;;  %v1069_v29 = vand.u32 2147483647, %v1044_v21  ;;  %vm1065_vm7 = vweird.f32 %v1044_v21 }
 0x9ed   :  { %2277 = vpow2.f32 %v2157_v42 }
 0x9ee   :  { %v1072_v4 = vor.u32 1.1754944e-38, %v1071_v27  ;;  %vm1070_vm9 = vcmp.eq.f32.partialorder %v1069_v29, 8.507059e+37 }
 0x9f2   :  { %v2276_v22 = vpop.eup %2275 }
 0x9f3   :  { %v1061_v25 = vmul.f32 %v2276_v22, %v1044_v21  ;;  %vm1066_vm6 = vweird.f32 %v2276_v22  ;;  %v2278_v43 = vpop.eup %2277 }
 0x9f4   :  { %vm1067_vm8 = vmor %vm1065_vm7, %vm1066_vm6  ;;  %v1043_v44 = vadd.f32 1.0, %v2278_v43 }
 0x9f5   :  { %v1062_v26 = vsub.f32 1.0, %v1061_v25 }
 0x9f6   :  { %2279 = vrcp.f32 %v1043_v44  ;;  %v1056_v33 = vand.u32 2147483648, %v1043_v44  ;;  %vm1050_vm11 = vweird.f32 %v1043_v44  ;;  %v1054_v57 = vand.u32 2147483647, %v1043_v44 }
 0x9f7   :  { %v1063_v28 = vmul.f32 %v2276_v22, %v1062_v26  ;;  %v2800_v26 = vld [vmem:[#allocation2 + $0x38] sm:$0xff] }
 0x9f8   :  { %v1057_v59 = vor.u32 1.1754944e-38, %v1056_v33  ;;  %vm1055_vm13 = vcmp.eq.f32.partialorder %v1054_v57, 8.507059e+37 }
 0x9f9   :  { %v1064_v31 = vadd.f32 %v2276_v22, %v1063_v28 }
 0x9fb   :  { %v1068_v30 = vsel %vm1067_vm8, %v2276_v22, %v1064_v31  ;;  %v2797_v22 = vld [vmem:[#allocation2 + $0x30] sm:$0xff] }
 0x9fc   :  { %v1073_v34 = vsel %vm1070_vm9, %v1072_v4, %v1068_v30  ;;  %v2280_v45 = vpop.eup %2279 }
 0x9fd   :  { %v1082_v39 = vmul.f32 %v1078_v32, %v1073_v34  ;;  %v1046_v48 = vmul.f32 %v2280_v45, %v1043_v44  ;;  %vm1051_vm10 = vweird.f32 %v2280_v45 }
 0x9fe   :  { %vm1052_vm12 = vmor %vm1050_vm11, %vm1051_vm10 }
 0x9ff   :  { %1087 = vrot.lane.b32.xlu0 %v1082_v39, %s2427_s20  ;;  %v1047_v49 = vsub.f32 1.0, %v1046_v48 }
 0xa01   :  { %v1048_v50 = vmul.f32 %v2280_v45, %v1047_v49 }
 0xa03   :  { %v1049_v52 = vadd.f32 %v2280_v45, %v1048_v50 }
 0xa05   :  { %v1053_v58 = vsel %vm1052_vm12, %v2280_v45, %v1049_v52 }
 0xa06   :  { %v1058_v60 = vsel %vm1055_vm13, %v1057_v59, %v1053_v58 }
 0xa4d   :  { %v904_v51 = vpop.permute.xlu0 %903 }
 0xa4e   :  { %2153 = vmatmul.msk.bf16.vlgmr.msra.gmra.mxu1 %vm61_vm0, %v904_v51 }
 0xa4f   :  { %1637 = vmatpush.bf16.msra.mxu1 %v2776_v53 }
 0xa55   :  { %v1076_v61 = vpop.permute.xlu0 %1075 }
 0xa56   :  { %v1081_v63 = vmul.f32 %v1076_v61, %v1058_v60 }
 0xa58   :  { %1085 = vrot.lane.b32.xlu2 %v1081_v63, %s2427_s20 }
 0xa71   :  { %v1088_v0 = vpop.permute.xlu0 %1087 }
 0xa72   :  { %v1092_v1 = vadd.f32 %v1088_v0, %v2764_v15 }
 0xa74   :  { %2281 = vtanh.f32 %v1092_v1 }
 0xa7a   :  { %v2781_v6 = vpop.eup %2281 }
 0xa7b   :  { %v1096_v5 = vsub.f32 %v2729_v37, %v2781_v6 }
 0xa7d   :  { %1101 = vrot.lane.b32.xlu2 %v1096_v5, %s2428_s21 }
 0xab2   :  { %v1086_v7 = vpop.permute.xlu2 %1085 }
 0xab3   :  { %v1091_v8 = vadd.f32 %v1086_v7, %v2769_v40 }
 0xab5   :  { %2283 = vtanh.f32 %v1091_v8 }
 0xabb   :  { %v2787_v9 = vpop.eup %2283 }
 0xabc   :  { %v1095_v10 = vsub.f32 %v2731_v38, %v2787_v9 }
 0xabe   :  { %1099 = vrot.lane.b32.xlu1 %v1095_v10, %s2428_s21 }
 0xacb   :  { %v917_v14 = vpop.f32.mrf.mxu1 }
 0xacc   :  { %v918_v16 = vadd.f32 %v2721_v12, %v917_v14 }
 0xace   :  { %985 = vrot.lane.b32.xlu0 %v918_v16, %s2429_s22  ;;  %v943_v23 = vadd.f32 %v918_v16, %v2797_v22 }
 0xad0   :  { %v2155_v25 = vmul.f32 -1.442695, %v943_v23 }
 0xad2   :  { %2285 = vpow2.f32 %v2155_v25 }
 0xad3   :  { %v919_v18 = vpop.f32.mrf.mxu1 }
 0xad4   :  { %v920_v19 = vadd.f32 %v2721_v12, %v919_v18 }
 0xad6   :  { %987 = vrot.lane.b32.xlu1 %v920_v19, %s2429_s22  ;;  %v944_v27 = vadd.f32 %v920_v19, %v2800_v26 }
 0xad7   :  { %v1102_v20 = vpop.permute.xlu2 %1101 }
 0xad8   :  { %v1106_v21 = vmul.f32 %v1102_v20, %v1073_v34  ;;  %v2156_v28 = vmul.f32 -1.442695, %v944_v27  ;;  %v2286_v29 = vpop.eup %2285 }
 0xad9   :  { %v951_v31 = vadd.f32 1.0, %v2286_v29 }
 0xada   :  { %1111 = vrot.lane.b32.xlu0 %v1106_v21, %s2426_s13  ;;  %2287 = vpow2.f32 %v2156_v28 }
 0xadb   :  { %2289 = vrcp.f32 %v951_v31  ;;  %v964_v50 = vand.u32 2147483648, %v951_v31  ;;  %vm958_vm15 = vweird.f32 %v951_v31  ;;  %v962_v51 = vand.u32 2147483647, %v951_v31 }
 0xadd   :  { %v965_v57 = vor.u32 1.1754944e-38, %v964_v50  ;;  %vm963_vm3 = vcmp.eq.f32.partialorder %v962_v51, 8.507059e+37 }
 0xae0   :  { %v2288_v4 = vpop.eup %2287 }
 0xae1   :  { %v952_v30 = vadd.f32 1.0, %v2288_v4  ;;  %v2290_v32 = vpop.eup %2289 }
 0xae2   :  { %v954_v34 = vmul.f32 %v2290_v32, %v951_v31  ;;  %vm959_vm14 = vweird.f32 %v2290_v32 }
 0xae3   :  { %2291 = vrcp.f32 %v952_v30  ;;  %vm960_vm2 = vmor %vm958_vm15, %vm959_vm14  ;;  %v979_v63 = vand.u32 2147483648, %v952_v30  ;;  %vm973_vm5 = vweird.f32 %v952_v30  ;;  %v977_v0 = vand.u32 2147483647, %v952_v30 }
 0xae4   :  { %v955_v42 = vsub.f32 1.0, %v954_v34 }
 0xae5   :  { %v980_v5 = vor.u32 1.1754944e-38, %v979_v63  ;;  %vm978_vm6 = vcmp.eq.f32.partialorder %v977_v0, 8.507059e+37 }
 0xae6   :  { %v956_v44 = vmul.f32 %v2290_v32, %v955_v42 }
 0xae8   :  { %v957_v48 = vadd.f32 %v2290_v32, %v956_v44 }
 0xae9   :  { %v2292_v43 = vpop.eup %2291 }
 0xaea   :  { %v969_v45 = vmul.f32 %v2292_v43, %v952_v30  ;;  %v961_v52 = vsel %vm960_vm2, %v2290_v32, %v957_v48  ;;  %vm974_vm4 = vweird.f32 %v2292_v43 }
 0xaeb   :  { %v966_v58 = vsel %vm963_vm3, %v965_v57, %v961_v52  ;;  %vm975_vm1 = vmor %vm973_vm5, %vm974_vm4 }
 0xaec   :  { %v970_v49 = vsub.f32 1.0, %v969_v45 }
 0xaee   :  { %v971_v33 = vmul.f32 %v2292_v43, %v970_v49 }
 0xaf0   :  { %v972_v61 = vadd.f32 %v2292_v43, %v971_v33 }
 0xaf2   :  { %v976_v1 = vsel %vm975_vm1, %v2292_v43, %v972_v61 }
 0xaf3   :  { %v981_v7 = vsel %vm978_vm6, %v980_v5, %v976_v1 }
 0xb30   :  { %v1100_v39 = vpop.permute.xlu1 %1099 }
 0xb31   :  { %v1105_v41 = vmul.f32 %v1100_v39, %v1058_v60 }
 0xb33   :  { %1109 = vrot.lane.b32.xlu2 %v1105_v41, %s2426_s13 }
 0xb40   :  { %v986_v59 = vpop.permute.xlu0 %985 }
 0xb41   :  { %v991_v60 = vmul.f32 %v986_v59, %v966_v58 }
 0xb43   :  { %995 = vrot.lane.b32.xlu1 %v991_v60, %s2427_s20 }
 0xb48   :  { %v988_v8 = vpop.permute.xlu1 %987 }
 0xb49   :  { %v992_v10 = vmul.f32 %v988_v8, %v981_v7 }
 0xb4b   :  { %997 = vrot.lane.b32.xlu2 %v992_v10, %s2427_s20 }
 0xb4c   :  { %v1112_v14 = vpop.permute.xlu0 %1111 }
 0xb4d   :  { %v2807_v18 = vadd.f32 %v2781_v6, %v1112_v14 }
 0xb8d   :  { %v1110_v16 = vpop.permute.xlu2 %1109 }
 0xb8e   :  { %v2810_v19 = vadd.f32 %v2787_v9, %v1110_v16 }
 0xb90   :  { %v1164_v20 = vpack.c.bf16 %v2807_v18, %v2810_v19 }
 0xb92   :  { %1166 = vrot.lane.b32.xlu0 %v1164_v20, %s2425_s4 }
 0xba5   :  { %v998_v21 = vpop.permute.xlu2 %997 }
 0xba6   :  { %v1002_v23 = vadd.f32 %v998_v21, %v2800_v26 }
 0xba8   :  { %2293 = vtanh.f32 %v1002_v23 }
 0xbae   :  { %v2294_v25 = vpop.eup %2293 }
 0xbaf   :  { %v1006_v27 = vsub.f32 %v2759_v13, %v2294_v25 }
 0xbb1   :  { %1011 = vrot.lane.b32.xlu2 %v1006_v27, %s2428_s21 }
 0xbb5   :  { %v996_v28 = vpop.permute.xlu1 %995 }
 0xbb6   :  { %v1001_v6 = vadd.f32 %v996_v28, %v2797_v22 }
 0xbb8   :  { %2295 = vtanh.f32 %v1001_v6 }
 0xbbe   :  { %v2296_v9 = vpop.eup %2295 }
 0xbbf   :  { %v1005_v29 = vsub.f32 %v2757_v11, %v2296_v9 }
 0xbc1   :  { %1009 = vrot.lane.b32.xlu1 %v1005_v29, %s2428_s21 }
 0xc04   :  { %v1167_v31 = vpop.permute.xlu0 %1166 }
 0xc05   :  { %2160 = vmatmul.msk.bf16.vlgmr.msrb.gmra.mxu1 %vm61_vm0, %v1167_v31 }
 0xc06   :  { %1898 = vmatpush.bf16.msrb.mxu1 %v2744_v56 }
 0xc0b   :  { %v1012_v4 = vpop.permute.xlu2 %1011 }
 0xc0c   :  { %v1016_v30 = vmul.f32 %v1012_v4, %v981_v7 }
 0xc0e   :  { %1021 = vrot.lane.b32.xlu1 %v1016_v30, %s2426_s13 }
 0xc33   :  { %v1010_v32 = vpop.permute.xlu1 %1009 }
 0xc34   :  { %v1015_v34 = vmul.f32 %v1010_v32, %v966_v58 }
 0xc36   :  { %1019 = vrot.lane.b32.xlu0 %v1015_v34, %s2426_s13 }
 0xc80   :  { %v1022_v56 = vpop.permute.xlu1 %1021 }
 0xc81   :  { %v2830_v45 = vadd.f32 %v2294_v25, %v1022_v56 }
 0xc82   :  { %v1180_v39 = vpop.f32.mrf.mxu1 }
 0xc83   :  { %v1181_v41 = vadd.f32 %v1180_v39, %v2509_v17 }
 0xc85   :  { %1271 = vrot.lane.b32.xlu0 %v1181_v41, %s2425_s4 }
 0xc8a   :  { %v1182_v42 = vpop.f32.mrf.mxu1 }
 0xc8b   :  { %v1183_v43 = vadd.f32 %v1182_v42, %v2509_v17 }
 0xc8d   :  { %1319 = vrot.lane.b32.xlu0 %v1183_v43, %s2426_s13  ;;  %1273 = vrot.lane.b32.xlu1 %v1183_v43, %s2425_s4 }
 0xca8   :  { %v1020_v44 = vpop.permute.xlu0 %1019 }
 0xca9   :  { %v2832_v48 = vadd.f32 %v2296_v9, %v1020_v44 }
 0xcab   :  { %v1143_v49 = vpack.c.bf16 %v2830_v45, %v2832_v48 }
 0xcad   :  { %1145 = vrot.lane.b32.xlu2 %v1143_v49, %s2429_s22 }
 0xcb5   :  { %1317 = vrot.lane.b32.xlu2 %v1181_v41, %s2426_s13 }
 0xcf7   :  { %v1272_v50 = vpop.permute.xlu0 %1271 }
 0xcf8   :  { %v1277_v51 = vadd.f32 %v1272_v50, %v2797_v22 }
 0xcfa   :  { %v2163_v52 = vmul.f32 -1.442695, %v1277_v51 }
 0xcfc   :  { %2297 = vpow2.f32 %v2163_v52 }
 0xcff   :  { %v1274_v33 = vpop.permute.xlu1 %1273  ;;  %v1320_v34 = vpop.permute.xlu0 %1319 }
 0xd00   :  { %v1278_v57 = vadd.f32 %v1274_v33, %v2800_v26 }
 0xd02   :  { %v2298_v58 = vpop.eup %2297  ;;  %v2164_v59 = vmul.f32 -1.442695, %v1278_v57 }
 0xd03   :  { %v1285_v60 = vadd.f32 1.0, %v2298_v58 }
 0xd04   :  { %2299 = vpow2.f32 %v2164_v59 }
 0xd05   :  { %2301 = vrcp.f32 %v1285_v60  ;;  %v1298_v8 = vand.u32 2147483648, %v1285_v60  ;;  %v1296_v14 = vand.u32 2147483647, %v1285_v60  ;;  %vm1292_vm8 = vweird.f32 %v1285_v60 }
 0xd07   :  { %v1146_v61 = vpop.permute.xlu2 %1145  ;;  %v1299_v21 = vor.u32 1.1754944e-38, %v1298_v8  ;;  %vm1297_vm10 = vcmp.eq.f32.partialorder %v1296_v14, 8.507059e+37 }
 0xd08   :  { %2159 = vmatmul.msk.bf16.vlgmr.msrb.gmra.mxu3 %vm61_vm0, %v1146_v61 }
 0xd09   :  { %1877 = vmatpush.bf16.msrb.mxu3 %v2776_v53 }
 0xd0a   :  { %v2300_v63 = vpop.eup %2299 }
 0xd0b   :  { %v2302_v0 = vpop.eup %2301  ;;  %v1286_v1 = vadd.f32 1.0, %v2300_v63 }
 0xd0c   :  { %v1288_v5 = vmul.f32 %v2302_v0, %v1285_v60  ;;  %vm1293_vm7 = vweird.f32 %v2302_v0 }
 0xd0d   :  { %2303 = vrcp.f32 %v1286_v1  ;;  %vm1294_vm9 = vmor %vm1292_vm8, %vm1293_vm7  ;;  %v1313_v9 = vand.u32 2147483648, %v1286_v1  ;;  %v1311_v31 = vand.u32 2147483647, %v1286_v1  ;;  %vm1307_vm12 = vweird.f32 %v1286_v1 }
 0xd0e   :  { %v1289_v7 = vsub.f32 1.0, %v1288_v5 }
 0xd0f   :  { %v1318_v53 = vpop.permute.xlu2 %1317  ;;  %v1314_v30 = vor.u32 1.1754944e-38, %v1313_v9  ;;  %vm1312_vm14 = vcmp.eq.f32.partialorder %v1311_v31, 8.507059e+37 }
 0xd10   :  { %v1290_v10 = vmul.f32 %v2302_v0, %v1289_v7 }
 0xd12   :  { %v1291_v16 = vadd.f32 %v2302_v0, %v1290_v10 }
 0xd13   :  { %v2304_v20 = vpop.eup %2303 }
 0xd14   :  { %v1303_v23 = vmul.f32 %v2304_v20, %v1286_v1  ;;  %v1295_v25 = vsel %vm1294_vm9, %v2302_v0, %v1291_v16  ;;  %vm1308_vm11 = vweird.f32 %v2304_v20 }
 0xd15   :  { %v1300_v27 = vsel %vm1297_vm10, %v1299_v21, %v1295_v25  ;;  %vm1309_vm13 = vmor %vm1307_vm12, %vm1308_vm11 }
 0xd16   :  { %v1323_v28 = vmul.f32 %v1318_v53, %v1300_v27  ;;  %v1304_v6 = vsub.f32 1.0, %v1303_v23 }
 0xd18   :  { %1327 = vrot.lane.b32.xlu1 %v1323_v28, %s2427_s20  ;;  %v1305_v29 = vmul.f32 %v2304_v20, %v1304_v6 }
 0xd1a   :  { %v1306_v4 = vadd.f32 %v2304_v20, %v1305_v29 }
 0xd1c   :  { %v1310_v32 = vsel %vm1309_vm13, %v2304_v20, %v1306_v4 }
 0xd1d   :  { %v2843_v39 = vsel %vm1312_vm14, %v1314_v30, %v1310_v32 }
 0xd1e   :  { %v1324_v41 = vmul.f32 %v1320_v34, %v2843_v39 }
 0xd20   :  { %1329 = vrot.lane.b32.xlu2 %v1324_v41, %s2427_s20 }
 0xd7a   :  { %v1330_v42 = vpop.permute.xlu2 %1329 }
 0xd7b   :  { %v1334_v43 = vadd.f32 %v1330_v42, %v2800_v26 }
 0xd7d   :  { %2305 = vtanh.f32 %v1334_v43 }
 0xd83   :  { %v2851_v51 = vpop.eup %2305 }
 0xd84   :  { %v1338_v26 = vsub.f32 %v2807_v18, %v2851_v51 }
 0xd8a   :  { %v1328_v56 = vpop.permute.xlu1 %1327 }
 0xd8b   :  { %v1333_v44 = vadd.f32 %v1328_v56, %v2797_v22  ;;  %v1159_v49 = vpop.f32.mrf.mxu3 }
 0xd8c   :  { %v1160_v50 = vadd.f32 %v2721_v12, %v1159_v49 }
 0xd8d   :  { %2307 = vtanh.f32 %v1333_v44 }
 0xd8e   :  { %1227 = vrot.lane.b32.xlu0 %v1160_v50, %s2429_s22  ;;  %v1185_v22 = vadd.f32 %v1160_v50, %v2769_v40 }
 0xd90   :  { %v2161_v59 = vmul.f32 -1.442695, %v1185_v22 }
 0xd92   :  { %2309 = vpow2.f32 %v2161_v59 }
 0xd93   :  { %v2853_v52 = vpop.eup %2307  ;;  %v1161_v33 = vpop.f32.mrf.mxu3 }
 0xd94   :  { %v1162_v57 = vadd.f32 %v2721_v12, %v1161_v33  ;;  %v1337_v58 = vsub.f32 %v2810_v19, %v2853_v52 }
 0xd96   :  { %1229 = vrot.lane.b32.xlu1 %v1162_v57, %s2429_s22  ;;  %1343 = vrot.lane.b32.xlu0 %v1338_v26, %s2428_s21  ;;  %v1186_v60 = vadd.f32 %v1162_v57, %v2764_v15 }
 0xd97   :  { %1341 = vrot.lane.b32.xlu2 %v1337_v58, %s2428_s21 }
 0xd98   :  { %v2162_v61 = vmul.f32 -1.442695, %v1186_v60  ;;  %v2310_v63 = vpop.eup %2309 }
 0xd99   :  { %v1193_v0 = vadd.f32 1.0, %v2310_v63 }
 0xd9a   :  { %2311 = vpow2.f32 %v2162_v61 }
 0xd9b   :  { %2313 = vrcp.f32 %v1193_v0  ;;  %v1206_v28 = vand.u32 2147483648, %v1193_v0  ;;  %vm1200_vm2 = vweird.f32 %v1193_v0  ;;  %v1204_v6 = vand.u32 2147483647, %v1193_v0 }
 0xd9d   :  { %v1207_v31 = vor.u32 1.1754944e-38, %v1206_v28  ;;  %vm1205_vm4 = vcmp.eq.f32.partialorder %v1204_v6, 8.507059e+37 }
 0xda0   :  { %v2312_v1 = vpop.eup %2311 }
 0xda1   :  { %v1194_v5 = vadd.f32 1.0, %v2312_v1  ;;  %v2314_v7 = vpop.eup %2313 }
 0xda2   :  { %v1196_v8 = vmul.f32 %v2314_v7, %v1193_v0  ;;  %vm1201_vm15 = vweird.f32 %v2314_v7 }
 0xda3   :  { %2315 = vrcp.f32 %v1194_v5  ;;  %vm1202_vm3 = vmor %vm1200_vm2, %vm1201_vm15  ;;  %vm1215_vm1 = vweird.f32 %v1194_v5  ;;  %v1219_v41 = vand.u32 2147483647, %v1194_v5 }
 0xda4   :  { %v1197_v14 = vsub.f32 1.0, %v1196_v8 }
 0xda5   :  { %vm1220_vm7 = vcmp.eq.f32.partialorder %v1219_v41, 8.507059e+37 }
 0xda6   :  { %v1198_v21 = vmul.f32 %v2314_v7, %v1197_v14 }
 0xda8   :  { %v1199_v25 = vadd.f32 %v2314_v7, %v1198_v21 }
 0xda9   :  { %v2316_v16 = vpop.eup %2315 }
 0xdaa   :  { %v1211_v23 = vmul.f32 %v2316_v16, %v1194_v5  ;;  %v1203_v9 = vsel %vm1202_vm3, %v2314_v7, %v1199_v25  ;;  %vm1216_vm5 = vweird.f32 %v2316_v16 }
 0xdab   :  { %v1208_v30 = vsel %vm1205_vm4, %v1207_v31, %v1203_v9  ;;  %vm1217_vm6 = vmor %vm1215_vm1, %vm1216_vm5 }
 0xdac   :  { %v1212_v53 = vsub.f32 1.0, %v1211_v23 }
 0xdae   :  { %v1213_v29 = vmul.f32 %v2316_v16, %v1212_v53 }
 0xdb0   :  { %v1214_v34 = vadd.f32 %v2316_v16, %v1213_v29 }
 0xdb2   :  { %v1218_v42 = vsel %vm1217_vm6, %v2316_v16, %v1214_v34 }
 0xdf1   :  { %v1342_v10 = vpop.permute.xlu2 %1341 }
 0xdf2   :  { %v1347_v20 = vmul.f32 %v1342_v10, %v1300_v27  ;;  %v1221_v27 = vand.u32 2147483648, %v1194_v5 }
 0xdf4   :  { %1351 = vrot.lane.b32.xlu0 %v1347_v20, %s2426_s13  ;;  %v1222_v43 = vor.u32 1.1754944e-38, %v1221_v27 }
 0xdf6   :  { %v1223_v44 = vsel %vm1220_vm7, %v1222_v43, %v1218_v42 }
 0xe00   :  { %v1228_v4 = vpop.permute.xlu0 %1227 }
 0xe01   :  { %v1233_v32 = vmul.f32 %v1228_v4, %v1208_v30 }
 0xe03   :  { %1237 = vrot.lane.b32.xlu1 %v1233_v32, %s2427_s20 }
 0xe08   :  { %v1344_v56 = vpop.permute.xlu0 %1343  ;;  %v1230_v49 = vpop.permute.xlu1 %1229 }
 0xe09   :  { %v1348_v50 = vmul.f32 %v1344_v56, %v2843_v39  ;;  %v1234_v33 = vmul.f32 %v1230_v49, %v1223_v44 }
 0xe0b   :  { %1353 = vrot.lane.b32.xlu1 %v1348_v50, %s2426_s13  ;;  %1239 = vrot.lane.b32.xlu2 %v1234_v33, %s2427_s20 }
 0xe65   :  { %v1240_v57 = vpop.permute.xlu2 %1239 }
 0xe66   :  { %v1244_v26 = vadd.f32 %v1240_v57, %v2764_v15  ;;  %v1352_v61 = vpop.permute.xlu0 %1351 }
 0xe67   :  { %v2875_v0 = vadd.f32 %v2853_v52, %v1352_v61 }
 0xe68   :  { %2317 = vtanh.f32 %v1244_v26 }
 0xe6e   :  { %v2318_v58 = vpop.eup %2317 }
 0xe6f   :  { %v1248_v22 = vsub.f32 %v2830_v45, %v2318_v58 }
 0xe71   :  { %1253 = vrot.lane.b32.xlu1 %v1248_v22, %s2428_s21 }
 0xe75   :  { %v1238_v59 = vpop.permute.xlu1 %1237 }
 0xe76   :  { %v1243_v60 = vadd.f32 %v1238_v59, %v2769_v40 }
 0xe78   :  { %2319 = vtanh.f32 %v1243_v60 }
 0xe7d   :  { %v1354_v39 = vpop.permute.xlu1 %1353 }
 0xe7e   :  { %v2320_v63 = vpop.eup %2319  ;;  %v2878_v1 = vadd.f32 %v2851_v51, %v1354_v39 }
 0xe7f   :  { %v1247_v15 = vsub.f32 %v2832_v48, %v2320_v63 }
 0xe80   :  { %v1404_v5 = vpack.c.bf16 %v2878_v1, %v2875_v0 }
 0xe81   :  { %1251 = vrot.lane.b32.xlu0 %v1247_v15, %s2428_s21 }
 0xe82   :  { %1406 = vrot.lane.b32.xlu2 %v1404_v5, %s2425_s4 }
 0xedc   :  { %v1407_v40 = vpop.permute.xlu2 %1406 }
 0xedd   :  { %2166 = vmatmul.msk.bf16.vlgmr.msra.gmra.mxu3 %vm61_vm0, %v1407_v40 }
 0xee3   :  { %v1254_v7 = vpop.permute.xlu1 %1253 }
 0xee4   :  { %v1258_v8 = vmul.f32 %v1254_v7, %v1223_v44 }
 0xee6   :  { %1263 = vrot.lane.b32.xlu0 %v1258_v8, %s2426_s13 }
 0xef3   :  { %v1252_v52 = vpop.permute.xlu0 %1251 }
 0xef4   :  { %v1257_v10 = vmul.f32 %v1252_v52, %v1208_v30 }
 0xef6   :  { %1261 = vrot.lane.b32.xlu2 %v1257_v10, %s2426_s13 }
 0xf50   :  { %v1262_v51 = vpop.permute.xlu2 %1261 }
 0xf51   :  { %v2888_v16 = vadd.f32 %v2320_v63, %v1262_v51 }
 0xf58   :  { %v1264_v14 = vpop.permute.xlu0 %1263 }
 0xf59   :  { %v2890_v20 = vadd.f32 %v2318_v58, %v1264_v14 }
 0xf5b   :  { %v1383_v21 = vpack.c.bf16 %v2890_v20, %v2888_v16 }
 0xf5d   :  { %1385 = vrot.lane.b32.xlu1 %v1383_v21, %s2429_s22 }
 0xf60   :  { %v1420_v23 = vpop.f32.mrf.mxu3 }
 0xf61   :  { %v1421_v25 = vadd.f32 %v1420_v23, %v2509_v17 }
 0xf63   :  { %1511 = vrot.lane.b32.xlu2 %v1421_v25, %s2425_s4 }
 0xf65   :  { %1557 = vrot.lane.b32.xlu1 %v1421_v25, %s2426_s13 }
 0xf68   :  { %v1422_v53 = vpop.f32.mrf.mxu3 }
 0xf69   :  { %v1423_v28 = vadd.f32 %v1422_v53, %v2509_v17 }
 0xf6b   :  { %1559 = vrot.lane.b32.xlu2 %v1423_v28, %s2426_s13  ;;  %1513 = vrot.lane.b32.xlu0 %v1423_v28, %s2425_s4 }
 0xfbd   :  { %v1512_v6 = vpop.permute.xlu2 %1511 }
 0xfbe   :  { %v1517_v9 = vadd.f32 %v1512_v6, %v2714_v62 }
 0xfc0   :  { %v2169_v29 = vmul.f32 -1.442695, %v1517_v9 }
 0xfc2   :  { %2321 = vpow2.f32 %v2169_v29 }
 0xfc5   :  { %v1560_v10 = vpop.permute.xlu2 %1559 }
 0xfc8   :  { %v2322_v31 = vpop.eup %2321 }
 0xfc9   :  { %v1525_v4 = vadd.f32 1.0, %v2322_v31 }
 0xfcb   :  { %2323 = vrcp.f32 %v1525_v4  ;;  %v1538_v41 = vand.u32 2147483648, %v1525_v4  ;;  %v1536_v43 = vand.u32 2147483647, %v1525_v4  ;;  %vm1532_vm9 = vweird.f32 %v1525_v4 }
 0xfcd   :  { %v1539_v44 = vor.u32 1.1754944e-38, %v1538_v41  ;;  %vm1537_vm11 = vcmp.eq.f32.partialorder %v1536_v43, 8.507059e+37 }
 0xfcf   :  { %v1386_v30 = vpop.permute.xlu1 %1385 }
 0xfd0   :  { %2165 = vmatmul.msk.bf16.vlgmr.msra.gmra.mxu2 %vm61_vm0, %v1386_v30 }
 0xfd1   :  { %v2324_v32 = vpop.eup %2323 }
 0xfd2   :  { %v1528_v34 = vmul.f32 %v2324_v32, %v1525_v4  ;;  %vm1533_vm8 = vweird.f32 %v2324_v32 }
 0xfd3   :  { %vm1534_vm10 = vmor %vm1532_vm9, %vm1533_vm8 }
 0xfd4   :  { %v1529_v27 = vsub.f32 1.0, %v1528_v34 }
 0xfd6   :  { %v1530_v42 = vmul.f32 %v2324_v32, %v1529_v27 }
 0xfd7   :  { %v1558_v33 = vpop.permute.xlu1 %1557 }
 0xfd8   :  { %v1531_v56 = vadd.f32 %v2324_v32, %v1530_v42 }
 0xfda   :  { %v1535_v49 = vsel %vm1534_vm10, %v2324_v32, %v1531_v56  ;;  %v1379_v32 = vld [vmem:[#allocation2 + $0x50] sm:$0xff]  ;;  %v1380_v56 = vld [vmem:[#allocation2 + $0x58] sm:$0xff] }
 0xfdb   :  { %v2903_v50 = vsel %vm1537_vm11, %v1539_v44, %v1535_v49 }
 0xfdc   :  { %v1563_v57 = vmul.f32 %v1558_v33, %v2903_v50 }
 0xfdd   :  { %v1514_v26 = vpop.permute.xlu0 %1513 }
 0xfde   :  { %v1518_v58 = vadd.f32 %v1514_v26, %v2726_v24  ;;  %1567 = vrot.lane.b32.xlu0 %v1563_v57, %s2427_s20 }
 0xfe0   :  { %v2170_v22 = vmul.f32 -1.442695, %v1518_v58 }
 0xfe2   :  { %2325 = vpow2.f32 %v2170_v22 }
 0xfe8   :  { %v2326_v59 = vpop.eup %2325 }
 0xfe9   :  { %v1526_v60 = vadd.f32 1.0, %v2326_v59 }
 0xfeb   :  { %2327 = vrcp.f32 %v1526_v60  ;;  %v1553_v15 = vand.u32 2147483648, %v1526_v60  ;;  %v1551_v40 = vand.u32 2147483647, %v1526_v60  ;;  %vm1547_vm13 = vweird.f32 %v1526_v60 }
 0xfed   :  { %v1554_v8 = vor.u32 1.1754944e-38, %v1553_v15  ;;  %vm1552_vm15 = vcmp.eq.f32.partialorder %v1551_v40, 8.507059e+37 }
 0xff1   :  { %v2328_v61 = vpop.eup %2327 }
 0xff2   :  { %v1543_v39 = vmul.f32 %v2328_v61, %v1526_v60  ;;  %vm1548_vm12 = vweird.f32 %v2328_v61 }
 0xff3   :  { %vm1549_vm14 = vmor %vm1547_vm13, %vm1548_vm12 }
 0xff4   :  { %v1544_v63 = vsub.f32 1.0, %v1543_v39 }
 0xff6   :  { %v1545_v5 = vmul.f32 %v2328_v61, %v1544_v63 }
 0xff8   :  { %v1546_v7 = vadd.f32 %v2328_v61, %v1545_v5 }
 0xffa   :  { %v1550_v52 = vsel %vm1549_vm14, %v2328_v61, %v1546_v7 }
 0xffb   :  { %v2908_v51 = vsel %vm1552_vm15, %v1554_v8, %v1550_v52 }
 0xffc   :  { %v1564_v14 = vmul.f32 %v1560_v10, %v2908_v51 }
 0xffe   :  { %1569 = vrot.lane.b32.xlu1 %v1564_v14, %s2427_s20 }
0x1050   :  { %v1568_v21 = vpop.permute.xlu0 %1567 }
0x1051   :  { %v1573_v23 = vadd.f32 %v1568_v21, %v2714_v62 }
0x1053   :  { %2329 = vtanh.f32 %v1573_v23  ;;  %v1399_v25 = vpop.f32.mrf.mxu2 }
0x1054   :  { %v1400_v53 = vadd.f32 %v2721_v12, %v1399_v25 }
0x1056   :  { %1467 = vrot.lane.b32.xlu2 %v1400_v53, %s2429_s22  ;;  %v1425_v34 = vadd.f32 %v1400_v53, %v1379_v32 }
0x1058   :  { %v2167_v27 = vmul.f32 -1.442695, %v1425_v34 }
0x1059   :  { %v2915_v28 = vpop.eup %2329 }
0x105a   :  { %v1577_v6 = vsub.f32 %v2875_v0, %v2915_v28 }
0x105b   :  { %v1401_v9 = vpop.f32.mrf.mxu2 }
0x105c   :  { %v1402_v29 = vadd.f32 %v2721_v12, %v1401_v9  ;;  %1581 = vrot.lane.b32.xlu1 %v1577_v6, %s2428_s21 }
0x105e   :  { %1469 = vrot.lane.b32.xlu0 %v1402_v29, %s2429_s22  ;;  %v1426_v44 = vadd.f32 %v1402_v29, %v1380_v56 }
0x1060   :  { %v2168_v49 = vmul.f32 -1.442695, %v1426_v44 }
0x1070   :  { %v1570_v31 = vpop.permute.xlu1 %1569 }
0x1071   :  { %v1574_v62 = vadd.f32 %v1570_v31, %v2726_v24 }
0x1073   :  { %2331 = vtanh.f32 %v1574_v62 }
0x1074   :  { %2333 = vpow2.f32 %v2167_v27 }
0x1079   :  { %v2923_v4 = vpop.eup %2331 }
0x107a   :  { %v1578_v30 = vsub.f32 %v2878_v1, %v2923_v4  ;;  %v2334_v12 = vpop.eup %2333 }
0x107b   :  { %v1433_v41 = vadd.f32 1.0, %v2334_v12 }
0x107c   :  { %1583 = vrot.lane.b32.xlu2 %v1578_v30, %s2428_s21 }
0x107d   :  { %2335 = vrcp.f32 %v1433_v41  ;;  %v1446_v26 = vand.u32 2147483648, %v1433_v41  ;;  %vm1440_vm3 = vweird.f32 %v1433_v41  ;;  %v1444_v58 = vand.u32 2147483647, %v1433_v41 }
0x107e   :  { %2337 = vpow2.f32 %v2168_v49 }
0x107f   :  { %v1447_v60 = vor.u32 1.1754944e-38, %v1446_v26  ;;  %vm1445_vm5 = vcmp.eq.f32.partialorder %v1444_v58, 8.507059e+37 }
0x1083   :  { %v2336_v42 = vpop.eup %2335 }
0x1084   :  { %v1436_v43 = vmul.f32 %v2336_v42, %v1433_v41  ;;  %vm1441_vm2 = vweird.f32 %v2336_v42  ;;  %v2338_v22 = vpop.eup %2337 }
0x1085   :  { %vm1442_vm4 = vmor %vm1440_vm3, %vm1441_vm2  ;;  %v1434_v61 = vadd.f32 1.0, %v2338_v22 }
0x1086   :  { %v1437_v24 = vsub.f32 1.0, %v1436_v43 }
0x1087   :  { %2339 = vrcp.f32 %v1434_v61  ;;  %v1461_v10 = vand.u32 2147483648, %v1434_v61  ;;  %vm1455_vm6 = vweird.f32 %v1434_v61  ;;  %v1459_v14 = vand.u32 2147483647, %v1434_v61 }
0x1088   :  { %v1438_v33 = vmul.f32 %v2336_v42, %v1437_v24 }
0x1089   :  { %v1462_v25 = vor.u32 1.1754944e-38, %v1461_v10  ;;  %vm1460_vm8 = vcmp.eq.f32.partialorder %v1459_v14, 8.507059e+37 }
0x108a   :  { %v1439_v57 = vadd.f32 %v2336_v42, %v1438_v33 }
0x108c   :  { %v1443_v59 = vsel %vm1442_vm4, %v2336_v42, %v1439_v57 }
0x108d   :  { %v1448_v63 = vsel %vm1445_vm5, %v1447_v60, %v1443_v59  ;;  %v2340_v5 = vpop.eup %2339 }
0x108e   :  { %v1451_v40 = vmul.f32 %v2340_v5, %v1434_v61  ;;  %vm1456_vm1 = vweird.f32 %v2340_v5 }
0x108f   :  { %vm1457_vm7 = vmor %vm1455_vm6, %vm1456_vm1 }
0x1090   :  { %v1452_v7 = vsub.f32 1.0, %v1451_v40  ;;  %v2964_v40 = vld [vmem:[#allocation2 + $0x10] sm:$0xff] }
0x1092   :  { %v1453_v8 = vmul.f32 %v2340_v5, %v1452_v7 }
0x1094   :  { %v1454_v52 = vadd.f32 %v2340_v5, %v1453_v8 }
0x1096   :  { %v1458_v21 = vsel %vm1457_vm7, %v2340_v5, %v1454_v52 }
0x1097   :  { %v1463_v6 = vsel %vm1460_vm8, %v1462_v25, %v1458_v21 }
0x10b0   :  { %v1468_v39 = vpop.permute.xlu2 %1467 }
0x10b1   :  { %v1473_v15 = vmul.f32 %v1468_v39, %v1448_v63 }
0x10b3   :  { %1477 = vrot.lane.b32.xlu0 %v1473_v15, %s2427_s20 }
0x10ce   :  { %v1582_v23 = vpop.permute.xlu1 %1581 }
0x10cf   :  { %v1587_v53 = vmul.f32 %v1582_v23, %v2903_v50 }
0x10d0   :  { %v1470_v9 = vpop.permute.xlu0 %1469 }
0x10d1   :  { %v1474_v29 = vmul.f32 %v1470_v9, %v1463_v6  ;;  %1591 = vrot.lane.b32.xlu2 %v1587_v53, %s2426_s13 }
0x10d3   :  { %1479 = vrot.lane.b32.xlu1 %v1474_v29, %s2427_s20 }
0x10d6   :  { %v1584_v31 = vpop.permute.xlu2 %1583 }
0x10d7   :  { %v1588_v62 = vmul.f32 %v1584_v31, %v2908_v51 }
0x10d9   :  { %1593 = vrot.lane.b32.xlu0 %v1588_v62, %s2426_s13 }
0x1125   :  { %v1478_v30 = vpop.permute.xlu0 %1477 }
0x1126   :  { %v1483_v34 = vadd.f32 %v1478_v30, %v1379_v32 }
0x1128   :  { %2341 = vtanh.f32 %v1483_v34 }
0x112b   :  { %v1592_v42 = vpop.permute.xlu2 %1591 }
0x112c   :  { %v2937_v44 = vadd.f32 %v2915_v28, %v1592_v42 }
0x112e   :  { %v2342_v27 = vpop.eup %2341 }
0x112f   :  { %v1487_v12 = vsub.f32 %v2888_v16, %v2342_v27 }
0x1131   :  { %1491 = vrot.lane.b32.xlu1 %v1487_v12, %s2428_s21 }
0x1145   :  { %v1480_v50 = vpop.permute.xlu1 %1479 }
0x1146   :  { %v1484_v41 = vadd.f32 %v1480_v50, %v1380_v56  ;;  %v2971_v50 = vld [vmem:[#allocation2 + $0x18] sm:$0xff] }
0x1148   :  { %2343 = vtanh.f32 %v1484_v41 }
0x114b   :  { %v1594_v43 = vpop.permute.xlu0 %1593 }
0x114c   :  { %v2940_v51 = vadd.f32 %v2923_v4, %v1594_v43 }
0x114e   :  { %v2344_v24 = vpop.eup %2343  ;;  %v1644_v32 = vpack.c.bf16 %v2940_v51, %v2937_v44 }
0x114f   :  { %v1488_v49 = vsub.f32 %v2890_v20, %v2344_v24 }
0x1150   :  { %1646 = vrot.lane.b32.xlu0 %v1644_v32, %s2425_s4 }
0x1151   :  { %1493 = vrot.lane.b32.xlu2 %v1488_v49, %s2428_s21 }
0x11a3   :  { %v1492_v56 = vpop.permute.xlu1 %1491 }
0x11a4   :  { %v1497_v33 = vmul.f32 %v1492_v56, %v1448_v63 }
0x11a6   :  { %1501 = vrot.lane.b32.xlu1 %v1497_v33, %s2426_s13 }
0x11ab   :  { %v1494_v57 = vpop.permute.xlu2 %1493 }
0x11ac   :  { %v1498_v28 = vmul.f32 %v1494_v57, %v1463_v6 }
0x11ae   :  { %1503 = vrot.lane.b32.xlu2 %v1498_v28, %s2426_s13 }
0x11c2   :  { %v1647_v4 = vpop.permute.xlu0 %1646 }
0x11c3   :  { %2172 = vmatmul.msk.bf16.vlgmr.msrb.gmra.mxu2 %vm61_vm0, %v1647_v4 }
0x1208   :  { %v1504_v26 = vpop.permute.xlu2 %1503 }
0x1209   :  { %v2950_v22 = vadd.f32 %v2344_v24, %v1504_v26 }
0x1218   :  { %v1502_v58 = vpop.permute.xlu1 %1501 }
0x1219   :  { %v2952_v59 = vadd.f32 %v2342_v27, %v1502_v58  ;;  %v2977_v58 = vld [vmem:[%s3199_s5] ss:$0 sm:$0xff]  ;;  %s2430_s5 = smov 64  }
0x121b   :  { %v1623_v60 = vpack.c.bf16 %v2950_v22, %v2952_v59 }
0x121d   :  { %1625 = vrot.lane.b32.xlu0 %v1623_v60, %s2429_s22 }
0x1246   :  { %v1660_v61 = vpop.f32.mrf.mxu2 }
0x1247   :  { %v1661_v39 = vadd.f32 %v1660_v61, %v2509_v17 }
0x1249   :  { %1797 = vrot.lane.b32.xlu0 %v1661_v39, %s2426_s13  ;;  %1751 = vrot.lane.b32.xlu1 %v1661_v39, %s2425_s4 }
0x124e   :  { %v1662_v63 = vpop.f32.mrf.mxu2 }
0x124f   :  { %v1663_v15 = vadd.f32 %v1662_v63, %v2509_v17 }
0x1251   :  { %1753 = vrot.lane.b32.xlu2 %v1663_v15, %s2425_s4  ;;  %1799 = vrot.lane.b32.xlu1 %v1663_v15, %s2426_s13 }
0x128f   :  { %v1626_v5 = vpop.permute.xlu0 %1625 }
0x1290   :  { %2171 = vmatmul.msk.bf16.vlgmr.msra.gmra.mxu1 %vm61_vm0, %v1626_v5 }
0x12ab   :  { %v1754_v12 = vpop.permute.xlu2 %1753 }
0x12ac   :  { %v1758_v41 = vadd.f32 %v1754_v12, %v2971_v50 }
0x12ae   :  { %v2176_v42 = vmul.f32 -1.442695, %v1758_v41 }
0x12bb   :  { %v1752_v7 = vpop.permute.xlu1 %1751  ;;  %v1798_v34 = vpop.permute.xlu0 %1797 }
0x12bc   :  { %v1757_v8 = vadd.f32 %v1752_v7, %v2964_v40 }
0x12be   :  { %v2175_v52 = vmul.f32 -1.442695, %v1757_v8 }
0x12c0   :  { %2345 = vpow2.f32 %v2175_v52  ;;  %v2987_v52 = vld [vmem:[#allocation2 + $0x60] sm:$0xff] }
0x12c3   :  { %v1800_v15 = vpop.permute.xlu1 %1799 }
0x12c6   :  { %v2346_v10 = vpop.eup %2345 }
0x12c7   :  { %v1765_v14 = vadd.f32 1.0, %v2346_v10 }
0x12c9   :  { %2347 = vrcp.f32 %v1765_v14  ;;  %v1778_v53 = vand.u32 2147483648, %v1765_v14  ;;  %v1776_v9 = vand.u32 2147483647, %v1765_v14  ;;  %vm1772_vm10 = vweird.f32 %v1765_v14 }
0x12ca   :  { %2349 = vpow2.f32 %v2176_v42 }
0x12cb   :  { %v1779_v31 = vor.u32 1.1754944e-38, %v1778_v53  ;;  %vm1777_vm12 = vcmp.eq.f32.partialorder %v1776_v9, 8.507059e+37 }
0x12cf   :  { %v2348_v21 = vpop.eup %2347 }
0x12d0   :  { %v1768_v23 = vmul.f32 %v2348_v21, %v1765_v14  ;;  %vm1773_vm9 = vweird.f32 %v2348_v21  ;;  %v2350_v43 = vpop.eup %2349 }
0x12d1   :  { %vm1774_vm11 = vmor %vm1772_vm10, %vm1773_vm9  ;;  %v1766_v24 = vadd.f32 1.0, %v2350_v43 }
0x12d2   :  { %v1769_v25 = vsub.f32 1.0, %v1768_v23 }
0x12d3   :  { %2351 = vrcp.f32 %v1766_v24  ;;  %v1793_v28 = vand.u32 2147483648, %v1766_v24  ;;  %vm1787_vm14 = vweird.f32 %v1766_v24  ;;  %v1791_v26 = vand.u32 2147483647, %v1766_v24 }
0x12d4   :  { %v1770_v6 = vmul.f32 %v2348_v21, %v1769_v25 }
0x12d5   :  { %v1794_v39 = vor.u32 1.1754944e-38, %v1793_v28  ;;  %vm1792_vm2 = vcmp.eq.f32.partialorder %v1791_v26, 8.507059e+37 }
0x12d6   :  { %v1771_v29 = vadd.f32 %v2348_v21, %v1770_v6 }
0x12d8   :  { %v1775_v62 = vsel %vm1774_vm11, %v2348_v21, %v1771_v29 }
0x12d9   :  { %v2967_v30 = vsel %vm1777_vm12, %v1779_v31, %v1775_v62  ;;  %v2352_v32 = vpop.eup %2351  ;;  %v1620_v31 = vld [vmem:[#allocation2 + $0x68] sm:$0xff] }
0x12da   :  { %v1803_v27 = vmul.f32 %v1798_v34, %v2967_v30  ;;  %v1783_v49 = vmul.f32 %v2352_v32, %v1766_v24  ;;  %vm1788_vm13 = vweird.f32 %v2352_v32 }
0x12db   :  { %vm1789_vm15 = vmor %vm1787_vm14, %vm1788_vm13 }
0x12dc   :  { %1807 = vrot.lane.b32.xlu1 %v1803_v27, %s2427_s20  ;;  %v1784_v56 = vsub.f32 1.0, %v1783_v49 }
0x12de   :  { %v1785_v33 = vmul.f32 %v2352_v32, %v1784_v56 }
0x12e0   :  { %v1786_v57 = vadd.f32 %v2352_v32, %v1785_v33 }
0x12e2   :  { %v1790_v61 = vsel %vm1789_vm15, %v2352_v32, %v1786_v57 }
0x12e3   :  { %v2981_v63 = vsel %vm1792_vm2, %v1794_v39, %v1790_v61 }
0x12e4   :  { %v1804_v7 = vmul.f32 %v1800_v15, %v2981_v63 }
0x130d   :  { %v1639_v4 = vpop.f32.mrf.mxu1 }
0x130e   :  { %v1640_v60 = vadd.f32 %v2977_v58, %v1639_v4 }
0x1310   :  { %1707 = vrot.lane.b32.xlu2 %v1640_v60, %s2429_s22  ;;  %v1665_v10 = vadd.f32 %v1640_v60, %v2987_v52 }
0x1312   :  { %v2173_v14 = vmul.f32 -1.442695, %v1665_v10 }
0x1314   :  { %2353 = vpow2.f32 %v2173_v14 }
0x1315   :  { %v1641_v5 = vpop.f32.mrf.mxu1 }
0x1316   :  { %v1642_v8 = vadd.f32 %v2977_v58, %v1641_v5 }
0x1318   :  { %1709 = vrot.lane.b32.xlu0 %v1642_v8, %s2429_s22  ;;  %1809 = vrot.lane.b32.xlu2 %v1804_v7, %s2427_s20  ;;  %v1666_v34 = vadd.f32 %v1642_v8, %v1620_v31 }
0x131a   :  { %v2354_v21 = vpop.eup %2353  ;;  %v2174_v12 = vmul.f32 -1.442695, %v1666_v34 }
0x131b   :  { %v1673_v23 = vadd.f32 1.0, %v2354_v21 }
0x131d   :  { %2355 = vrcp.f32 %v1673_v23  ;;  %v1686_v43 = vand.u32 2147483648, %v1673_v23  ;;  %vm1680_vm4 = vweird.f32 %v1673_v23 }
0x131f   :  { %v1687_v49 = vor.u32 1.1754944e-38, %v1686_v43 }
0x1323   :  { %v2356_v6 = vpop.eup %2355 }
0x1324   :  { %v1676_v29 = vmul.f32 %v2356_v6, %v1673_v23  ;;  %vm1681_vm3 = vweird.f32 %v2356_v6 }
0x1325   :  { %vm1682_vm5 = vmor %vm1680_vm4, %vm1681_vm3 }
0x1326   :  { %v1677_v27 = vsub.f32 1.0, %v1676_v29 }
0x1328   :  { %v1678_v41 = vmul.f32 %v2356_v6, %v1677_v27 }
0x132a   :  { %v1679_v42 = vadd.f32 %v2356_v6, %v1678_v41 }
0x132c   :  { %v1683_v32 = vsel %vm1682_vm5, %v2356_v6, %v1679_v42 }
0x134e   :  { %v1808_v25 = vpop.permute.xlu1 %1807 }
0x134f   :  { %v1813_v53 = vadd.f32 %v1808_v25, %v2964_v40  ;;  %v1684_v40 = vand.u32 2147483647, %v1673_v23 }
0x1351   :  { %2357 = vtanh.f32 %v1813_v53  ;;  %vm1685_vm1 = vcmp.eq.f32.partialorder %v1684_v40, 8.507059e+37 }
0x1352   :  { %2359 = vpow2.f32 %v2174_v12  ;;  %v1688_v57 = vsel %vm1685_vm1, %v1687_v49, %v1683_v32 }
0x1357   :  { %v2991_v9 = vpop.eup %2357 }
0x1358   :  { %v1817_v62 = vsub.f32 %v2937_v44, %v2991_v9  ;;  %v2360_v24 = vpop.eup %2359 }
0x1359   :  { %v1674_v56 = vadd.f32 1.0, %v2360_v24 }
0x135a   :  { %1821 = vrot.lane.b32.xlu2 %v1817_v62, %s2428_s21 }
0x135b   :  { %2361 = vrcp.f32 %v1674_v56  ;;  %v1701_v10 = vand.u32 2147483648, %v1674_v56  ;;  %vm1695_vm7 = vweird.f32 %v1674_v56  ;;  %v1699_v14 = vand.u32 2147483647, %v1674_v56 }
0x135d   :  { %v1702_v23 = vor.u32 1.1754944e-38, %v1701_v10  ;;  %vm1700_vm9 = vcmp.eq.f32.partialorder %v1699_v14, 8.507059e+37 }
0x1361   :  { %v2362_v60 = vpop.eup %2361 }
0x1362   :  { %v1691_v61 = vmul.f32 %v2362_v60, %v1674_v56  ;;  %vm1696_vm6 = vweird.f32 %v2362_v60 }
0x1363   :  { %vm1697_vm8 = vmor %vm1695_vm7, %vm1696_vm6 }
0x1364   :  { %v1692_v15 = vsub.f32 1.0, %v1691_v61 }
0x1366   :  { %v1693_v7 = vmul.f32 %v2362_v60, %v1692_v15 }
0x1368   :  { %v1694_v8 = vadd.f32 %v2362_v60, %v1693_v7 }
0x136a   :  { %v1708_v33 = vpop.permute.xlu2 %1707  ;;  %v1698_v21 = vsel %vm1697_vm8, %v2362_v60, %v1694_v8 }
0x136b   :  { %v1713_v28 = vmul.f32 %v1708_v33, %v1688_v57 }
0x136d   :  { %1717 = vrot.lane.b32.xlu0 %v1713_v28, %s2427_s20 }
0x1372   :  { %v1810_v4 = vpop.permute.xlu2 %1809 }
0x1373   :  { %v1814_v26 = vadd.f32 %v1810_v4, %v2971_v50  ;;  %v1703_v50 = vsel %vm1700_vm9, %v1702_v23, %v1698_v21 }
0x1375   :  { %2363 = vtanh.f32 %v1814_v26 }
0x137b   :  { %v2364_v39 = vpop.eup %2363 }
0x137c   :  { %v1818_v5 = vsub.f32 %v2940_v51, %v2364_v39 }
0x137e   :  { %1823 = vrot.lane.b32.xlu0 %v1818_v5, %s2428_s21 }
0x138a   :  { %v1710_v25 = vpop.permute.xlu0 %1709 }
0x138b   :  { %v1714_v53 = vmul.f32 %v1710_v25, %v1703_v50  ;;  %v3039_v25 = vld [vmem:[#allocation2] sm:$0xff] }
0x138d   :  { %1719 = vrot.lane.b32.xlu1 %v1714_v53, %s2427_s20 }
0x13b4   :  { %v1822_v6 = vpop.permute.xlu2 %1821 }
0x13b5   :  { %v1827_v29 = vmul.f32 %v1822_v6, %v2967_v30 }
0x13b7   :  { %1831 = vrot.lane.b32.xlu0 %v1827_v29, %s2426_s13 }
0x13df   :  { %v1718_v62 = vpop.permute.xlu0 %1717 }
0x13e0   :  { %v1723_v34 = vadd.f32 %v1718_v62, %v2987_v52 }
0x13e2   :  { %2365 = vtanh.f32 %v1723_v34 }
0x13e8   :  { %v2366_v27 = vpop.eup %2365 }
0x13e9   :  { %v1727_v12 = vsub.f32 %v2952_v59, %v2366_v27 }
0x13eb   :  { %1731 = vrot.lane.b32.xlu1 %v1727_v12, %s2428_s21 }
0x13f0   :  { %v1824_v41 = vpop.permute.xlu0 %1823 }
0x13f1   :  { %v1828_v42 = vmul.f32 %v1824_v41, %v2981_v63 }
0x13f3   :  { %1833 = vrot.lane.b32.xlu1 %v1828_v42, %s2426_s13 }
0x13ff   :  { %v1720_v43 = vpop.permute.xlu1 %1719 }
0x1400   :  { %v1724_v40 = vadd.f32 %v1720_v43, %v1620_v31 }
0x1402   :  { %2367 = vtanh.f32 %v1724_v40 }
0x1408   :  { %v2368_v30 = vpop.eup %2367 }
0x1409   :  { %v1728_v24 = vsub.f32 %v2950_v22, %v2368_v30 }
0x140b   :  { %1733 = vrot.lane.b32.xlu2 %v1728_v24, %s2428_s21 }
0x1429   :  { %v1832_v49 = vpop.permute.xlu0 %1831 }
0x142a   :  { %v3012_v28 = vadd.f32 %v2991_v9, %v1832_v49 }
0x145d   :  { %v1732_v52 = vpop.permute.xlu1 %1731 }
0x145e   :  { %v1737_v32 = vmul.f32 %v1732_v52, %v1688_v57 }
0x1460   :  { %1741 = vrot.lane.b32.xlu2 %v1737_v32, %s2426_s13 }
0x1465   :  { %v1734_v56 = vpop.permute.xlu2 %1733  ;;  %v1834_v33 = vpop.permute.xlu1 %1833 }
0x1466   :  { %v1738_v63 = vmul.f32 %v1734_v56, %v1703_v50  ;;  %v3014_v4 = vadd.f32 %v2364_v39, %v1834_v33 }
0x1468   :  { %1743 = vrot.lane.b32.xlu0 %v1738_v63, %s2426_s13  ;;  %v1884_v31 = vpack.c.bf16 %v3014_v4, %v3012_v28 }
0x146a   :  { %1886 = vrot.lane.b32.xlu1 %v1884_v31, %s2425_s4  ;;  %v3048_v31 = vld [vmem:[#allocation2 + $0x8] sm:$0xff] }
0x14ba   :  { %v1742_v26 = vpop.permute.xlu2 %1741 }
0x14bb   :  { %v3020_v60 = vadd.f32 %v2366_v27, %v1742_v26 }
0x14da   :  { %v1744_v57 = vpop.permute.xlu0 %1743 }
0x14db   :  { %v3022_v61 = vadd.f32 %v2368_v30, %v1744_v57 }
0x14dc   :  { %v1887_v15 = vpop.permute.xlu1 %1886 }
0x14dd   :  { %2178 = vmatmul.msk.bf16.vlgmr.msrb.gmra.mxu1 %vm61_vm0, %v1887_v15  ;;  %v1863_v9 = vpack.c.bf16 %v3022_v61, %v3020_v60 }
0x14df   :  { %1865 = vrot.lane.b32.xlu2 %v1863_v9, %s2429_s22 }
0x1539   :  { %v1866_v39 = vpop.permute.xlu2 %1865 }
0x153a   :  { %2177 = vmatmul.msk.bf16.vlgmr.msrb.gmra.mxu3 %vm61_vm0, %v1866_v39 }
0x155a   :  { %v1900_v5 = vpop.f32.mrf.mxu1 }
0x155b   :  { %v1901_v7 = vadd.f32 %v1900_v5, %v2509_v17 }
0x155d   :  { %1991 = vrot.lane.b32.xlu0 %v1901_v7, %s2425_s4 }
0x1562   :  { %v1902_v8 = vpop.f32.mrf.mxu1 }
0x1563   :  { %v1903_v10 = vadd.f32 %v1902_v8, %v2509_v17 }
0x1565   :  { %1993 = vrot.lane.b32.xlu1 %v1903_v10, %s2425_s4  ;;  %s2431_s4 = smov [#allocation3]  }
0x156d   :  { %2037 = vrot.lane.b32.xlu1 %v1901_v7, %s2426_s13 }
0x15bd   :  { %v1879_v14 = vpop.f32.mrf.mxu3 }
0x15be   :  { %v1880_v21 = vadd.f32 %v2977_v58, %v1879_v14 }
0x15c0   :  { %1947 = vrot.lane.b32.xlu2 %v1880_v21, %s2429_s22 }
0x15c5   :  { %v1881_v23 = vpop.f32.mrf.mxu3 }
0x15c6   :  { %v1882_v50 = vadd.f32 %v2977_v58, %v1881_v23  ;;  %v3042_v58 = vld [vmem:[#allocation2 + $0x70] sm:$0xff] }
0x15c7   :  { %v1905_v30 = vadd.f32 %v1880_v21, %v3042_v58 }
0x15c8   :  { %1949 = vrot.lane.b32.xlu0 %v1882_v50, %s2429_s22  ;;  %2039 = vrot.lane.b32.xlu2 %v1903_v10, %s2426_s13  ;;  %v3052_v10 = vld [vmem:[#allocation2 + $0x78] sm:$0xff] }
0x15c9   :  { %v2179_v49 = vmul.f32 -1.442695, %v1905_v30  ;;  %v1906_v14 = vadd.f32 %v1882_v50, %v3052_v10 }
0x15cf   :  { %v1992_v53 = vpop.permute.xlu0 %1991 }
0x15d0   :  { %v1997_v17 = vadd.f32 %v1992_v53, %v3039_v25  ;;  %v2180_v53 = vmul.f32 -1.442695, %v1906_v14 }
0x15d2   :  { %v2181_v6 = vmul.f32 -1.442695, %v1997_v17 }
0x15d4   :  { %2369 = vpow2.f32 %v2181_v6 }
0x15d7   :  { %v1994_v27 = vpop.permute.xlu1 %1993 }
0x15d8   :  { %v1998_v26 = vadd.f32 %v1994_v27, %v3048_v31 }
0x15da   :  { %v2370_v29 = vpop.eup %2369  ;;  %v2182_v57 = vmul.f32 -1.442695, %v1998_v26 }
0x15db   :  { %v2005_v62 = vadd.f32 1.0, %v2370_v29 }
0x15dd   :  { %2371 = vrcp.f32 %v2005_v62  ;;  %v2018_v42 = vand.u32 2147483648, %v2005_v62  ;;  %v2016_v40 = vand.u32 2147483647, %v2005_v62  ;;  %vm2012_vm11 = vweird.f32 %v2005_v62 }
0x15de   :  { %2373 = vpow2.f32 %v2179_v49 }
0x15df   :  { %v2019_v52 = vor.u32 1.1754944e-38, %v2018_v42  ;;  %vm2017_vm13 = vcmp.eq.f32.partialorder %v2016_v40, 8.507059e+37  ;;  %v2038_v56 = vpop.permute.xlu1 %2037  ;;  %2375 = vpow2.f32 %v2182_v57 }
0x15e3   :  { %v2372_v34 = vpop.eup %2371 }
0x15e4   :  { %v2008_v12 = vmul.f32 %v2372_v34, %v2005_v62  ;;  %vm2013_vm10 = vweird.f32 %v2372_v34  ;;  %v2374_v15 = vpop.eup %2373 }
0x15e5   :  { %vm2014_vm12 = vmor %vm2012_vm11, %vm2013_vm10  ;;  %v1913_v9 = vadd.f32 1.0, %v2374_v15  ;;  %v2376_v39 = vpop.eup %2375  ;;  %vm404_vm11 = vcmask 261248  }
0x15e6   :  { %v2009_v41 = vsub.f32 1.0, %v2008_v12  ;;  %v2006_v5 = vadd.f32 1.0, %v2376_v39 }
0x15e7   :  { %2377 = vrcp.f32 %v1913_v9  ;;  %vm1920_vm15 = vweird.f32 %v1913_v9  ;;  %v1924_v27 = vand.u32 2147483647, %v1913_v9 }
0x15e8   :  { %v2010_v43 = vmul.f32 %v2372_v34, %v2009_v41  ;;  %2379 = vrcp.f32 %v2006_v5  ;;  %vm2027_vm5 = vweird.f32 %v2006_v5  ;;  %v2031_v49 = vand.u32 2147483647, %v2006_v5 }
0x15e9   :  { %2381 = vpow2.f32 %v2180_v53  ;;  %vm1925_vm3 = vcmp.eq.f32.partialorder %v1924_v27, 8.507059e+37 }
0x15ea   :  { %v2011_v24 = vadd.f32 %v2372_v34, %v2010_v43  ;;  %vm2032_vm6 = vcmp.eq.f32.partialorder %v2031_v49, 8.507059e+37 }
0x15ec   :  { %v2015_v32 = vsel %vm2014_vm12, %v2372_v34, %v2011_v24  ;;  %v1926_v34 = vand.u32 2147483648, %v1913_v9 }
0x15ed   :  { %v3045_v33 = vsel %vm2017_vm13, %v2019_v52, %v2015_v32  ;;  %v2378_v7 = vpop.eup %2377  ;;  %v2033_v32 = vand.u32 2147483648, %v2006_v5 }
0x15ee   :  { %v2043_v63 = vmul.f32 %v2038_v56, %v3045_v33  ;;  %v1916_v8 = vmul.f32 %v2378_v7, %v1913_v9  ;;  %v2380_v23 = vpop.eup %2379  ;;  %vm1921_vm14 = vweird.f32 %v2378_v7  ;;  %v1927_v43 = vor.u32 1.1754944e-38, %v1926_v34 }
0x15ef   :  { %v2023_v6 = vmul.f32 %v2380_v23, %v2006_v5  ;;  %vm1922_vm2 = vmor %vm1920_vm15, %vm1921_vm14  ;;  %v2382_v12 = vpop.eup %2381  ;;  %vm2028_vm4 = vweird.f32 %v2380_v23 }
0x15f0   :  { %2047 = vrot.lane.b32.xlu2 %v2043_v63, %s2427_s20  ;;  %v1917_v21 = vsub.f32 1.0, %v1916_v8  ;;  %v1914_v40 = vadd.f32 1.0, %v2382_v12  ;;  %vm2029_vm1 = vmor %vm2027_vm5, %vm2028_vm4  ;;  %v2034_v63 = vor.u32 1.1754944e-38, %v2033_v32 }
0x15f1   :  { %v2024_v62 = vsub.f32 1.0, %v2023_v6 }
0x15f2   :  { %v1918_v17 = vmul.f32 %v2378_v7, %v1917_v21  ;;  %2383 = vrcp.f32 %v1914_v40  ;;  %v1941_v14 = vand.u32 2147483648, %v1914_v40  ;;  %vm1935_vm8 = vweird.f32 %v1914_v40 }
0x15f3   :  { %v2025_v42 = vmul.f32 %v2380_v23, %v2024_v62  ;;  %v1939_v21 = vand.u32 2147483647, %v1914_v40 }
0x15f4   :  { %v1919_v29 = vadd.f32 %v2378_v7, %v1918_v17  ;;  %v1942_v53 = vor.u32 1.1754944e-38, %v1941_v14 }
0x15f5   :  { %v2026_v52 = vadd.f32 %v2380_v23, %v2025_v42  ;;  %vm1940_vm10 = vcmp.eq.f32.partialorder %v1939_v21, 8.507059e+37 }
0x15f6   :  { %v1923_v41 = vsel %vm1922_vm2, %v2378_v7, %v1919_v29 }
0x15f7   :  { %v3055_v30 = vsel %vm1925_vm3, %v1927_v43, %v1923_v41  ;;  %v2030_v56 = vsel %vm2029_vm1, %v2380_v23, %v2026_v52 }
0x15f8   :  { %v3059_v26 = vsel %vm2032_vm6, %v2034_v63, %v2030_v56  ;;  %v2384_v9 = vpop.eup %2383 }
0x15f9   :  { %v1931_v39 = vmul.f32 %v2384_v9, %v1914_v40  ;;  %vm1936_vm7 = vweird.f32 %v2384_v9 }
0x15fa   :  { %vm1937_vm9 = vmor %vm1935_vm8, %vm1936_vm7 }
0x15fb   :  { %v1932_v7 = vsub.f32 1.0, %v1931_v39 }
0x15fd   :  { %v1933_v8 = vmul.f32 %v2384_v9, %v1932_v7 }
0x15ff   :  { %v1934_v5 = vadd.f32 %v2384_v9, %v1933_v8 }
0x1601   :  { %v1938_v23 = vsel %vm1937_vm9, %v2384_v9, %v1934_v5 }
0x1602   :  { %v1943_v17 = vsel %vm1940_vm10, %v1942_v53, %v1938_v23 }
0x161a   :  { %v1948_v50 = vpop.permute.xlu2 %1947 }
0x161b   :  { %v1953_v24 = vmul.f32 %v1948_v50, %v3055_v30 }
0x161d   :  { %1957 = vrot.lane.b32.xlu0 %v1953_v24, %s2427_s20 }
0x1622   :  { %v2040_v57 = vpop.permute.xlu2 %2039 }
0x1623   :  { %v2044_v15 = vmul.f32 %v2040_v57, %v3059_v26 }
0x1625   :  { %2049 = vrot.lane.b32.xlu0 %v2044_v15, %s2427_s20 }
0x162d   :  { %389 = vrot.lane.b32.xlu0 %v2588_v35, %s2429_s22 }
0x163a   :  { %v1950_v6 = vpop.permute.xlu0 %1949 }
0x163b   :  { %v1954_v29 = vmul.f32 %v1950_v6, %v1943_v17 }
0x163d   :  { %1959 = vrot.lane.b32.xlu1 %v1954_v29, %s2427_s20 }
0x164a   :  { %v2048_v62 = vpop.permute.xlu2 %2047 }
0x164b   :  { %v2053_v34 = vadd.f32 %v2048_v62, %v3039_v25 }
0x164d   :  { %2385 = vtanh.f32 %v2053_v34 }
0x1653   :  { %v3067_v35 = vpop.eup %2385 }
0x1654   :  { %v2057_v27 = vsub.f32 %v3012_v28, %v3067_v35 }
0x1656   :  { %2061 = vrot.lane.b32.xlu0 %v2057_v27, %s2428_s21 }
0x165e   :  { %631 = vrot.lane.b32.xlu0 %v2697_v3, %s2429_s22 }
0x1666   :  { %644 = vrot.lane.b32.xlu0 %v2626_v55, %s2430_s5 }
0x168f   :  { %v1958_v12 = vpop.permute.xlu0 %1957 }
0x1690   :  { %v1963_v41 = vadd.f32 %v1958_v12, %v3042_v58 }
0x1692   :  { %2387 = vtanh.f32 %v1963_v41 }
0x1697   :  { %v2050_v25 = vpop.permute.xlu0 %2049 }
0x1698   :  { %v3077_v42 = vpop.eup %2387  ;;  %v2054_v40 = vadd.f32 %v2050_v25, %v3048_v31 }
0x1699   :  { %v1967_v43 = vsub.f32 %v3020_v60, %v3077_v42 }
0x169a   :  { %2389 = vtanh.f32 %v2054_v40 }
0x169b   :  { %1971 = vrot.lane.b32.xlu1 %v1967_v43, %s2428_s21 }
0x169f   :  { %v390_v50 = vpop.permute.xlu0 %389 }
0x16a0   :  { %394 = vst.msk [vmem:[#allocation3 + $0x8] sm:$0xff] %vm61_vm0, %v390_v50  ;;  %v3086_v55 = vpop.eup %2389 }
0x16a1   :  { %v2058_v3 = vsub.f32 %v3014_v4, %v3086_v55 }
0x16a3   :  { %397 = vrot.lane.b32.xlu1 %v2563_v46, %s2430_s5 }
0x16ab   :  { %2063 = vrot.lane.b32.xlu1 %v2058_v3, %s2428_s21 }
0x16af   :  { %v1960_v58 = vpop.permute.xlu1 %1959 }
0x16b0   :  { %v1964_v24 = vadd.f32 %v1960_v58, %v3052_v10 }
0x16b2   :  { %2391 = vtanh.f32 %v1964_v24 }
0x16b3   :  { %633 = vrot.lane.b32.xlu1 %v2695_v2, %s2429_s22 }
0x16b8   :  { %v3094_v31 = vpop.eup %2391 }
0x16b9   :  { %v1968_v52 = vsub.f32 %v3022_v61, %v3094_v31 }
0x16bb   :  { %1973 = vrot.lane.b32.xlu2 %v1968_v52, %s2428_s21  ;;  %875 = vrot.lane.b32.xlu1 %v2757_v11, %s2429_s22 }
0x16c3   :  { %387 = vrot.lane.b32.xlu2 %v2590_v36, %s2429_s22  ;;  %886 = vrot.lane.b32.xlu1 %v2731_v38, %s2430_s5 }
0x16c8   :  { %v2062_v46 = vpop.permute.xlu0 %2061 }
0x16c9   :  { %v2067_v10 = vmul.f32 %v2062_v46, %v3045_v33 }
0x16cb   :  { %399 = vrot.lane.b32.xlu2 %v2565_v47, %s2430_s5  ;;  %1121 = vrot.lane.b32.xlu1 %v2830_v45, %s2429_s22 }
0x16d0   :  { %v632_v2 = vpop.permute.xlu0 %631 }
0x16d1   :  { %638 = vst.msk [vmem:[#allocation3 + $0x10] sm:$0xff] %vm61_vm0, %v632_v2 }
0x16d3   :  { %642 = vrot.lane.b32.xlu2 %v2624_v54, %s2430_s5  ;;  %2071 = vrot.lane.b32.xlu1 %v2067_v10, %s2426_s13 }
0x16d8   :  { %v645_v36 = vpop.permute.xlu0 %644 }
0x16d9   :  { %650 = vst.msk [vmem:[#allocation3 + $0x68] sm:$0xff] %vm404_vm11, %v645_v36 }
0x16db   :  { %1361 = vrot.lane.b32.xlu1 %v2888_v16, %s2429_s22 }
0x16e3   :  { %1373 = vrot.lane.b32.xlu1 %v2878_v1, %s2430_s5 }
0x16eb   :  { %1611 = vrot.lane.b32.xlu1 %v2937_v44, %s2430_s5 }
0x16f3   :  { %1843 = vrot.lane.b32.xlu1 %v3022_v61, %s2429_s22 }
0x170d   :  { %v1972_v47 = vpop.permute.xlu1 %1971 }
0x170e   :  { %v1977_v54 = vmul.f32 %v1972_v47, %v3055_v30 }
0x1710   :  { %1981 = vrot.lane.b32.xlu2 %v1977_v54, %s2426_s13 }
0x1715   :  { %v1974_v38 = vpop.permute.xlu2 %1973  ;;  %v398_v11 = vpop.permute.xlu1 %397 }
0x1716   :  { %v1978_v45 = vmul.f32 %v1974_v38, %v1943_v17  ;;  %405 = vst.msk [vmem:[#allocation3 + $0x70] sm:$0xff] %vm404_vm11, %v398_v11 }
0x1718   :  { %1983 = vrot.lane.b32.xlu0 %v1978_v45, %s2426_s13  ;;  %888 = vrot.lane.b32.xlu2 %v2729_v37, %s2430_s5 }
0x171d   :  { %v388_v1 = vpop.permute.xlu2 %387  ;;  %v2064_v16 = vpop.permute.xlu1 %2063 }
0x171e   :  { %393 = vst.msk [vmem:[#allocation3] sm:$0xff] %vm61_vm0, %v388_v1  ;;  %v2068_v44 = vmul.f32 %v2064_v16, %v3059_v26 }
0x1720   :  { %877 = vrot.lane.b32.xlu0 %v2759_v13, %s2429_s22  ;;  %2073 = vrot.lane.b32.xlu2 %v2068_v44, %s2426_s13  ;;  %s2103_s13 = sshll.u32 %s2431_s4, 4  ;;  %s2104_s13 = int_to_ptr.vmem [resolvable:$true] %s2103_s13 }
0x1725   :  { %v400_v61 = vpop.permute.xlu2 %399  ;;  %v634_v33 = vpop.permute.xlu1 %633 }
0x1726   :  { %406 = vst.msk [vmem:[#allocation3 + $0x78] sm:$0xff] %vm404_vm11, %v400_v61 }
0x1727   :  { %639 = vst.msk [vmem:[#allocation3 + $0x18] sm:$0xff] %vm61_vm0, %v634_v33 }
0x1728   :  { %1119 = vrot.lane.b32.xlu0 %v2832_v48, %s2429_s22  ;;  %1130 = vrot.lane.b32.xlu2 %v2810_v19, %s2430_s5 }
0x172d   :  { %v643_v37 = vpop.permute.xlu2 %642  ;;  %v876_v30 = vpop.permute.xlu1 %875 }
0x172e   :  { %649 = vst.msk [vmem:[#allocation3 + $0x60] sm:$0xff] %vm404_vm11, %v643_v37 }
0x172f   :  { %882 = vst.msk [vmem:[#allocation3 + $0x20] sm:$0xff] %vm61_vm0, %v876_v30 }
0x1730   :  { %1132 = vrot.lane.b32.xlu0 %v2807_v18, %s2430_s5  ;;  %1363 = vrot.lane.b32.xlu2 %v2890_v20, %s2429_s22 }
0x1735   :  { %v887_v13 = vpop.permute.xlu1 %886 }
0x1736   :  { %893 = vst.msk [vmem:[#allocation3 + $0x50] sm:$0xff] %vm404_vm11, %v887_v13 }
0x1738   :  { %1371 = vrot.lane.b32.xlu0 %v2875_v0, %s2430_s5  ;;  %1601 = vrot.lane.b32.xlu2 %v2952_v59, %s2429_s22 }
0x173d   :  { %v1122_v19 = vpop.permute.xlu1 %1121 }
0x173e   :  { %1127 = vst.msk [vmem:[#allocation3 + $0x38] sm:$0xff] %vm61_vm0, %v1122_v19 }
0x1740   :  { %1603 = vrot.lane.b32.xlu0 %v2950_v22, %s2429_s22  ;;  %1613 = vrot.lane.b32.xlu2 %v2940_v51, %s2430_s5 }
0x1745   :  { %v2072_v18 = vpop.permute.xlu1 %2071 }
0x1746   :  { %v2077_v20 = vadd.f32 %v3067_v35, %v2072_v18 }
0x1748   :  { %1841 = vrot.lane.b32.xlu0 %v3020_v60, %s2429_s22  ;;  %1851 = vrot.lane.b32.xlu2 %v3012_v28, %s2430_s5 }
0x174d   :  { %v1362_v48 = vpop.permute.xlu1 %1361 }
0x1750   :  { %1853 = vrot.lane.b32.xlu0 %v3014_v4, %s2430_s5 }
0x1755   :  { %v1374_v0 = vpop.permute.xlu1 %1373 }
0x1756   :  { %1378 = vst.msk [vmem:[#allocation3 + $0x38] sm:$0xff] %vm404_vm11, %v1374_v0 }
0x1758   :  { %2091 = vrot.lane.b32.xlu0 %v2077_v20, %s2430_s5 }
0x175d   :  { %v1612_v22 = vpop.permute.xlu1 %1611 }
0x175e   :  { %1617 = vst.msk [vmem:[#allocation3 + $0x20] sm:$0xff] %vm404_vm11, %v1612_v22 }
0x1765   :  { %v1844_v51 = vpop.permute.xlu1 %1843 }
0x1766   :  { %1848 = vst.msk [vmem:[#allocation3 + $0x68] sm:$0xff] %vm61_vm0, %v1844_v51 }
0x176a   :  { %v1982_v59 = vpop.permute.xlu2 %1981 }
0x176b   :  { %v1987_v28 = vadd.f32 %v3077_v42, %v1982_v59 }
0x176d   :  { %2081 = vrot.lane.b32.xlu1 %v1987_v28, %s2429_s22 }
0x1772   :  { %v889_v60 = vpop.permute.xlu2 %888 }
0x1773   :  { %894 = vst.msk [vmem:[#allocation3 + $0x58] sm:$0xff] %vm404_vm11, %v889_v60 }
0x177a   :  { %v2074_v4 = vpop.permute.xlu2 %2073 }
0x177b   :  { %v2078_v32 = vadd.f32 %v3086_v55, %v2074_v4 }
0x177d   :  { %2093 = vrot.lane.b32.xlu1 %v2078_v32, %s2430_s5 }
0x1782   :  { %v1131_v49 = vpop.permute.xlu2 %1130 }
0x1783   :  { %1137 = vst.msk [vmem:[#allocation3 + $0x40] sm:$0xff] %vm404_vm11, %v1131_v49 }
0x1784   :  { %1367 = vst.msk [vmem:[#allocation3 + $0x40] sm:$0xff] %vm61_vm0, %v1362_v48 }
0x178a   :  { %v1364_v56 = vpop.permute.xlu2 %1363  ;;  %v1984_v63 = vpop.permute.xlu0 %1983 }
0x178b   :  { %v1988_v26 = vadd.f32 %v3094_v31, %v1984_v63 }
0x178d   :  { %2083 = vrot.lane.b32.xlu2 %v1988_v26, %s2429_s22  ;;  %s2105_s22 = sshll.u32 %s3200_s6, 4  ;;  %s2106_s22 = int_to_ptr.hbm [resolvable:$true] %s2105_s22 }
0x1792   :  { %v1602_v57 = vpop.permute.xlu2 %1601  ;;  %v878_v15 = vpop.permute.xlu0 %877 }
0x1793   :  { %1607 = vst.msk [vmem:[#allocation3 + $0x50] sm:$0xff] %vm61_vm0, %v1602_v57 }
0x1794   :  { %883 = vst.msk [vmem:[#allocation3 + $0x28] sm:$0xff] %vm61_vm0, %v878_v15 }
0x179a   :  { %v1614_v9 = vpop.permute.xlu2 %1613  ;;  %v1120_v39 = vpop.permute.xlu0 %1119 }
0x179b   :  { %1618 = vst.msk [vmem:[#allocation3 + $0x28] sm:$0xff] %vm404_vm11, %v1614_v9 }
0x179c   :  { %1126 = vst.msk [vmem:[#allocation3 + $0x30] sm:$0xff] %vm61_vm0, %v1120_v39 }
0x17a2   :  { %v1852_v7 = vpop.permute.xlu2 %1851  ;;  %v1133_v8 = vpop.permute.xlu0 %1132 }
0x17a3   :  { %1857 = vst.msk [vmem:[#allocation3 + $0x10] sm:$0xff] %vm404_vm11, %v1852_v7 }
0x17a4   :  { %1138 = vst.msk [vmem:[#allocation3 + $0x48] sm:$0xff] %vm404_vm11, %v1133_v8 }
0x17a5   :  { %1368 = vst.msk [vmem:[#allocation3 + $0x48] sm:$0xff] %vm61_vm0, %v1364_v56 }
0x17aa   :  { %v1372_v5 = vpop.permute.xlu0 %1371 }
0x17ab   :  { %1377 = vst.msk [vmem:[#allocation3 + $0x30] sm:$0xff] %vm404_vm11, %v1372_v5 }
0x17b2   :  { %v1604_v14 = vpop.permute.xlu0 %1603 }
0x17b3   :  { %1608 = vst.msk [vmem:[#allocation3 + $0x58] sm:$0xff] %vm61_vm0, %v1604_v14 }
0x17ba   :  { %v1842_v21 = vpop.permute.xlu0 %1841 }
0x17bb   :  { %1847 = vst.msk [vmem:[#allocation3 + $0x60] sm:$0xff] %vm61_vm0, %v1842_v21 }
0x17c2   :  { %v1854_v23 = vpop.permute.xlu0 %1853 }
0x17c3   :  { %1858 = vst.msk [vmem:[#allocation3 + $0x18] sm:$0xff] %vm404_vm11, %v1854_v23 }
0x17ca   :  { %v2092_v53 = vpop.permute.xlu0 %2091 }
0x17cb   :  { %2097 = vst.msk [vmem:[#allocation3] sm:$0xff] %vm404_vm11, %v2092_v53 }
0x17df   :  { %v2082_v17 = vpop.permute.xlu1 %2081 }
0x17e0   :  { %2087 = vst.msk [vmem:[#allocation3 + $0x70] sm:$0xff] %vm61_vm0, %v2082_v17 }
0x17e7   :  { %v2084_v6 = vpop.permute.xlu2 %2083 }
0x17e8   :  { %2088 = vst.msk [vmem:[#allocation3 + $0x78] sm:$0xff] %vm61_vm0, %v2084_v6 }
0x17ef   :  { %v2094_v29 = vpop.permute.xlu1 %2093 }
0x17f0   :  { %2098 = vst.msk [vmem:[#allocation3 + $0x8] sm:$0xff] %vm404_vm11, %v2094_v29 }
0x17f1   :  { %2111 = dma.vmem_to_hbm [thread:$0]  %s2104_s13, 2048, %s2106_s22, [#allocation4], %s2432_s27, %s2432_s27, %s2433_s28  }
0x17f2   :  { %2421 = dma.done.wait [#allocation4], 2048  }
0x17f3   :  { %2422 = vsyncadd [#allocation4], 4294965248 }
0x17f4   :  { %2116 = vsyncpa [#allocation4], 1 }

</bundles_post_ra>
